<compile_context>
chip_gen: v7x
topology: tpu7x:2x2x1
jax: 0.10.0
libtpu: 0.0.40
codegen_flags: <defaults>
</compile_context>

<pallas_src>
import numpy as np

import jax
import jax.numpy as jnp
from jax import lax
from jax.experimental import pallas as pl
from jax.experimental.pallas import tpu as pltpu


def _pick_tb(batch):
    """Images per grid step: multiple of 16 (bf16 sublane packing), capped at 128."""
    tb = 16 * ((batch + 15) // 16)
    return max(16, min(128, tb))


# ------------------------------ fused kernel ------------------------------- #

def _fused_cnn_kernel(x_ref, w1_ref, b1_ref, w2_ref, b2_ref,
                      wf1_ref, bf1_ref, wf2_ref, bf2_ref, wf3_ref, bf3_ref,
                      *out_refs):
    if len(out_refs) == 2:
        act_ref, pack_ref = out_refs
    else:
        act_ref = None
        (pack_ref,) = out_refs

    TB = x_ref.shape[1]
    f32, bf16 = jnp.float32, jnp.bfloat16

    # ---- conv1 (5x5, 3->6) as ONE K-stacked Toeplitz matmul -----------------
    # x layout: (H=32, TB, 128) with lane = w*3 + c (lanes 96..127 are zero pad).
    x_bf = x_ref[...].astype(bf16)                       # cast ONCE (hoisted)
    # 5 shifted row-windows concatenated along lanes at 128-aligned offsets.
    xs = jnp.concatenate([x_bf[i:i + 28] for i in range(5)], axis=-1)  # (28,TB,640)
    a1 = jnp.dot(xs.reshape(28 * TB, 640), w1_ref[...],
                 preferred_element_type=f32)             # (28*TB, 168)
    a1 = a1.reshape(28, TB, 168) + b1_ref[...][None]     # lane = x'*6 + o
    a1 = jnp.maximum(a1, 0.0)

    # ---- maxpool 2x2/2 (fused) ----------------------------------------------
    r1 = a1.reshape(14, 2, TB, 168)
    ym1 = jnp.maximum(r1[:, 0], r1[:, 1])                # rows pooled: (14,TB,168)
    p1 = jnp.maximum(ym1[..., 0:162], ym1[..., 6:168])   # cols pooled; lane 12*x2+c

    # ---- conv2 (5x5, 6->16): 5 Toeplitz terms, bf16 cast hoisted -------------
    p1_bf = p1.astype(bf16)                              # cast ONCE
    acc2 = None
    for i in range(5):
        t = jnp.dot(p1_bf[i:i + 10].reshape(10 * TB, 162), w2_ref[i],
                    preferred_element_type=f32)          # (10*TB, 160)
        acc2 = t if acc2 is None else acc2 + t
    a2 = acc2.reshape(10, TB, 160) + b2_ref[...][None]   # lane = x2'*16 + o
    a2 = jnp.maximum(a2, 0.0)

    # ---- maxpool 2x2/2 (fused) ----------------------------------------------
    r2 = a2.reshape(5, 2, TB, 160)
    ym2 = jnp.maximum(r2[:, 0], r2[:, 1])                # (5, TB, 160)
    p2 = jnp.maximum(ym2[..., 0:144], ym2[..., 16:160])  # (5, TB, 144)

    if act_ref is not None:
        # Valid lanes are 32*x3 + o with o < 16; the other lanes carry junk that
        # the host slicing discards (do NOT consume act directly elsewhere).
        act_ref[...] = p2

    # ---- fc1 (400 -> 120, N padded to 128): contraction split over 5 rows ----
    p2_bf = p2.astype(bf16)
    h1 = None
    for y3 in range(5):
        t = jnp.dot(p2_bf[y3], wf1_ref[y3], preferred_element_type=f32)
        h1 = t if h1 is None else h1 + t
    h1 = jnp.maximum(h1 + bf1_ref[...], 0.0)             # (TB, 128), lanes 120: zero

    # ---- fc2 (120 -> 84, padded 128x128) + ReLU ------------------------------
    h2 = jnp.dot(h1.astype(bf16), wf2_ref[...],
                 preferred_element_type=f32) + bf2_ref[...]
    h2 = jnp.maximum(h2, 0.0)                            # (TB, 128), lanes 84: zero

    # ---- fc3 (84 -> 10, padded 128x128) --------------------------------------
    logits = jnp.dot(h2.astype(bf16), wf3_ref[...],
                     preferred_element_type=f32) + bf3_ref[...]   # (TB,128), 10: zero

    # ---- single lane-dense packed output: [0:84]=repr, [128:138]=logits ------
    pack_ref[...] = jnp.concatenate([h2, logits], axis=-1)        # (TB, 256)


def _fc3_kernel(z_ref, w_ref, b_ref, o_ref):
    o_ref[...] = jnp.dot(z_ref[...].astype(jnp.bfloat16), w_ref[...],
                         preferred_element_type=jnp.float32) + b_ref[...]


# --------------------------- host-side weight prep -------------------------- #

def _conv_toeplitz(w, w_in, w_out):
    """w:(O,C,kh,kw) -> T:(kh, w_in*C, w_out*O); T[i, x*C+c, x'*O+o]=w[o,c,i,x-x']."""
    O, C, kh, kw = w.shape
    x = jnp.arange(w_in)[:, None]
    xp = jnp.arange(w_out)[None, :]
    diff = x - xp
    valid = (diff >= 0) & (diff < kw)
    j = jnp.clip(diff, 0, kw - 1)
    w_perm = jnp.transpose(w, (2, 3, 1, 0))               # (kh, kw, C, O)
    g = w_perm[:, j, :, :]                                 # (kh, w_in, w_out, C, O)
    g = jnp.where(valid[None, :, :, None, None], g, 0.0)
    g = jnp.transpose(g, (0, 1, 3, 2, 4))                  # (kh, w_in, C, w_out, O)
    return g.reshape(kh, w_in * C, w_out * O)


def _prepare(params):
    bf16, f32 = jnp.bfloat16, jnp.float32

    # conv1: 5 Toeplitz blocks stacked along K, each lane-padded 96 -> 128 so the
    # in-kernel lane concat is 128-aligned.
    t1 = _conv_toeplitz(params["conv1_w"], 32, 28)                    # (5, 96, 168)
    w1 = jnp.zeros((5, 128, 168), f32).at[:, :96, :].set(t1)
    w1 = w1.reshape(640, 168).astype(bf16)                            # (640, 168)
    b1 = jnp.tile(params["conv1_b"], 28).reshape(1, 168).astype(f32)  # lane x'*6+o

    # conv2: Toeplitz per kernel row; rows scattered to lane index 12*x2 + c with
    # zeros on the junk channels (c >= 6) produced by the fused pool-1 decimation.
    t2 = _conv_toeplitz(params["conv2_w"], 14, 10)                    # (5, 84, 160)
    w2 = jnp.zeros((5, 14, 12, 160), f32).at[:, :, 0:6, :].set(t2.reshape(5, 14, 6, 160))
    w2 = w2.reshape(5, 168, 160)[:, 0:162, :].astype(bf16)            # (5, 162, 160)
    b2 = jnp.tile(params["conv2_b"], 10).reshape(1, 160).astype(f32)  # lane x2'*16+o

    # fc1: rows scattered to lane 32*x3 + c (zeros for c >= 16), N padded to 128.
    f1 = params["fc1_w"].reshape(120, 16, 5, 5)                       # (h, c, y3, x3)
    f1 = jnp.transpose(f1, (2, 3, 1, 0))                              # (y3, x3, c, h)
    wf1 = jnp.zeros((5, 5, 32, 128), f32).at[:, :, 0:16, 0:120].set(f1)
    wf1 = wf1.reshape(5, 160, 128)[:, 0:144, :].astype(bf16)          # (5, 144, 128)
    bf1 = jnp.zeros((1, 128), f32).at[0, :120].set(params["fc1_b"])

    # fc2 / fc3: zero-padded to 128x128 so every FC matmul and the final packed
    # store are lane-dense (no masked partial stores).
    wf2 = jnp.zeros((128, 128), f32).at[:120, :84].set(params["fc2_w"].T).astype(bf16)
    bf2 = jnp.zeros((1, 128), f32).at[0, :84].set(params["fc2_b"])
    wf3 = jnp.zeros((128, 128), f32).at[:84, :10].set(params["fc3_w"].T).astype(bf16)
    bf3 = jnp.zeros((1, 128), f32).at[0, :10].set(params["fc3_b"])
    return (w1, b1, w2, b2, wf1, bf1, wf2, bf2, wf3, bf3)


# --------------------------------- model ----------------------------------- #

def init_params(key):
    def uniform(k, shape, fan_in):
        bound = 1.0 / jnp.sqrt(fan_in)
        return jax.random.uniform(k, shape, jnp.float32, -bound, bound)

    ks = jax.random.split(key, 10)
    return {
        "conv1_w": uniform(ks[0], (6, 3, 5, 5), 3 * 5 * 5),
        "conv1_b": uniform(ks[1], (6,), 3 * 5 * 5),
        "conv2_w": uniform(ks[2], (16, 6, 5, 5), 6 * 5 * 5),
        "conv2_b": uniform(ks[3], (16,), 6 * 5 * 5),
        "fc1_w":   uniform(ks[4], (120, 400), 400),   # PyTorch (out, in)
        "fc1_b":   uniform(ks[5], (120,), 400),
        "fc2_w":   uniform(ks[6], (84, 120), 120),
        "fc2_b":   uniform(ks[7], (84,), 120),
        "fc3_w":   uniform(ks[8], (10, 84), 84),
        "fc3_b":   uniform(ks[9], (10,), 84),
    }


def cnn_cifar10_forward(params, x_nchw, return_activation=True):
    """Equivalent of CNNCifar10.forward(x) with start_layer_idx=0."""
    B, C, H, W = x_nchw.shape
    assert (C, H, W) == (3, 32, 32), "CNNCifar10 requires 3x32x32 inputs"
    TB = _pick_tb(B)                      # >=16, <=128, multiple of 16
    Bp = TB * pl.cdiv(B, TB)
    # NOTE(v7x megacore): with real serving batches keep B >= 2*TB so the
    # "parallel" batch grid has >= 2 steps and both TensorCores are used.

    # NCHW -> (H, B, W*C): lane = w*3 + c; pad batch -> Bp and lanes 96 -> 128 so the
    # input DMA and in-kernel K-stacking are lane-dense / 128-aligned.
    # allow_input_fusion below lets XLA fold this relayout into the Pallas input DMA.
    xk = jnp.transpose(x_nchw.astype(jnp.float32), (2, 0, 3, 1)).reshape(32, B, 96)
    xk = jnp.pad(xk, ((0, 0), (0, Bp - B), (0, 32)))

    w1, b1, w2, b2, wf1, bf1, wf2, bf2, wf3, bf3 = _prepare(params)

    out_shapes, out_specs = [], []
    if return_activation:
        out_shapes.append(jax.ShapeDtypeStruct((5, Bp, 144), jnp.float32))
        out_specs.append(pl.BlockSpec((5, TB, 144), lambda g: (0, g, 0)))
    out_shapes.append(jax.ShapeDtypeStruct((Bp, 256), jnp.float32))
    out_specs.append(pl.BlockSpec((TB, 256), lambda g: (g, 0)))

    results = pl.pallas_call(
        _fused_cnn_kernel,
        out_shape=tuple(out_shapes),
        grid=(Bp // TB,),
        in_specs=[
            pl.BlockSpec((32, TB, 128), lambda g: (0, g, 0)),   # input tile
            pl.BlockSpec((640, 168), lambda g: (0, 0)),         # conv1 K-stacked Toeplitz
            pl.BlockSpec((1, 168), lambda g: (0, 0)),
            pl.BlockSpec((5, 162, 160), lambda g: (0, 0, 0)),   # conv2 Toeplitz
            pl.BlockSpec((1, 160), lambda g: (0, 0)),
            pl.BlockSpec((5, 144, 128), lambda g: (0, 0, 0)),   # fc1 (row-split, N pad)
            pl.BlockSpec((1, 128), lambda g: (0, 0)),
            pl.BlockSpec((128, 128), lambda g: (0, 0)),         # fc2 (padded)
            pl.BlockSpec((1, 128), lambda g: (0, 0)),
            pl.BlockSpec((128, 128), lambda g: (0, 0)),         # fc3 (padded)
            pl.BlockSpec((1, 128), lambda g: (0, 0)),
        ],
        out_specs=tuple(out_specs),
        compiler_params=pltpu.CompilerParams(
            dimension_semantics=("parallel",),
            vmem_limit_bytes=64 * 1024 * 1024,        # above v5e's 16 MiB scoped default
            allow_input_fusion=[True] + [False] * 10,  # fuse input relayout into DMA
        ),
    )(xk, w1, b1, w2, b2, wf1, bf1, wf2, bf2, wf3, bf3)

    if return_activation:
        act_p, pack = results
    else:
        (pack,) = results

    result = {"representation": pack[:B, 0:84], "output": pack[:B, 128:138]}
    if return_activation:
        # pooled activation (y3, b, lane=32*x3+o) -> NCHW (b, o, y3, x3)
        p2 = act_p[:, :B, :]
        p2 = jnp.pad(p2, ((0, 0), (0, 0), (0, 16))).reshape(5, B, 5, 32)[..., :16]
        activation = jnp.transpose(p2, (1, 3, 0, 2))          # (B, 16, 5, 5)
        result["activation"] = activation
        result["hint"] = activation.reshape(B, 16 * 5 * 5)    # matches x.view(-1, 400)
    return result


def cnn_cifar10_mapping(params, z, logit=True):
    """Equivalent of CNNCifar10.mapping (start_layer_idx < 0 path): just fc3."""
    vmem = pl.BlockSpec(memory_space=pltpu.MemorySpace.VMEM)
    w = params["fc3_w"].T.astype(jnp.bfloat16)
    b = params["fc3_b"].reshape(1, 10).astype(jnp.float32)
    out = pl.pallas_call(
        _fc3_kernel,
        out_shape=jax.ShapeDtypeStruct((z.shape[0], 10), jnp.float32),
        in_specs=[vmem, vmem, vmem],
        out_specs=vmem,
    )(z.astype(jnp.float32), w, b)
    result = {"output": out}
    if logit:
        result["logit"] = out
    return result


# ------------------------------ pure-JAX reference -------------------------- #

def _reference_forward(params, x):
    dn = ("NCHW", "OIHW", "NCHW")
    y = lax.conv_general_dilated(x, params["conv1_w"], (1, 1), "VALID",
                                 dimension_numbers=dn)
    y = jax.nn.relu(y + params["conv1_b"][None, :, None, None])
    y = lax.reduce_window(y, -jnp.inf, lax.max, (1, 1, 2, 2), (1, 1, 2, 2), "VALID")
    y = lax.conv_general_dilated(y, params["conv2_w"], (1, 1), "VALID",
                                 dimension_numbers=dn)
    y = jax.nn.relu(y + params["conv2_b"][None, :, None, None])
    y = lax.reduce_window(y, -jnp.inf, lax.max, (1, 1, 2, 2), (1, 1, 2, 2), "VALID")
    act = y
    hint = y.reshape(-1, 400)
    h1 = jax.nn.relu(hint @ params["fc1_w"].T + params["fc1_b"])
    h2 = jax.nn.relu(h1 @ params["fc2_w"].T + params["fc2_b"])
    out = h2 @ params["fc3_w"].T + params["fc3_b"]
    return {"activation": act, "hint": hint, "representation": h2, "output": out}


if __name__ == "__main__":
    key = jax.random.PRNGKey(0)
    k_param, k_x = jax.random.split(key)
    params = init_params(k_param)

    # The module's `x.view(-1, 16*5*5)` forces 3x32x32 inputs; batch kept small.
    x = jax.random.normal(k_x, (2, 3, 32, 32), dtype=jnp.float32)

    result = jax.jit(cnn_cifar10_forward)(params, x)
    jax.block_until_ready(result)

    assert result["activation"].shape == (2, 16, 5, 5)
    assert result["hint"].shape == (2, 400)
    assert result["representation"].shape == (2, 84)
    assert result["output"].shape == (2, 10)

    # numerical check vs pure-JAX f32 reference (bf16 matmul operands -> loose tol)
    ref = _reference_forward(params, x)
    for name in ("activation", "hint", "representation", "output"):
        np.testing.assert_allclose(np.asarray(result[name]), np.asarray(ref[name]),
                                   atol=5e-2, rtol=5e-2)

    # exercise the mapping branch too
    z = jax.random.normal(k_x, (2, 84), dtype=jnp.float32)
    mapped = cnn_cifar10_mapping(params, z)
    jax.block_until_ready(mapped)
    ref_map = z @ params["fc3_w"].T + params["fc3_b"]
    np.testing.assert_allclose(np.asarray(mapped["output"]), np.asarray(ref_map),
                               atol=5e-2, rtol=5e-2)

    print("KERNEL_OK")
</pallas_src>

<mosaic_0001>
module attributes {stable_mosaic.version = 11 : i64} {
  func.func @_fused_cnn_kernel(%arg0: i32, %arg1: memref<32x16x128xf32, #tpu.memory_space<vmem>>, %arg2: memref<640x168xbf16, #tpu.memory_space<vmem>>, %arg3: memref<1x168xf32, #tpu.memory_space<vmem>>, %arg4: memref<5x162x160xbf16, #tpu.memory_space<vmem>>, %arg5: memref<1x160xf32, #tpu.memory_space<vmem>>, %arg6: memref<5x144x128xbf16, #tpu.memory_space<vmem>>, %arg7: memref<1x128xf32, #tpu.memory_space<vmem>>, %arg8: memref<128x128xbf16, #tpu.memory_space<vmem>>, %arg9: memref<1x128xf32, #tpu.memory_space<vmem>>, %arg10: memref<128x128xbf16, #tpu.memory_space<vmem>>, %arg11: memref<1x128xf32, #tpu.memory_space<vmem>>, %arg12: memref<5x16x144xf32, #tpu.memory_space<vmem>>, %arg13: memref<16x256xf32, #tpu.memory_space<vmem>>) attributes {dimension_semantics = [#tpu.dimension_semantics<parallel>], iteration_bounds = array<i64: 1>, scalar_prefetch = 0 : i64, scratch_operands = 0 : i64, tpu.core_type = #tpu.core_type<tc>, window_params = [{transform_indices = @transform_0, window_bounds = array<i64: 32, 16, 128>}, {pipeline_mode = #tpu.pipeline_mode<synchronous>, transform_indices = @transform_1, window_bounds = array<i64: 640, 168>}, {pipeline_mode = #tpu.pipeline_mode<synchronous>, transform_indices = @transform_2, window_bounds = array<i64: 1, 168>}, {pipeline_mode = #tpu.pipeline_mode<synchronous>, transform_indices = @transform_3, window_bounds = array<i64: 5, 162, 160>}, {pipeline_mode = #tpu.pipeline_mode<synchronous>, transform_indices = @transform_4, window_bounds = array<i64: 1, 160>}, {pipeline_mode = #tpu.pipeline_mode<synchronous>, transform_indices = @transform_5, window_bounds = array<i64: 5, 144, 128>}, {pipeline_mode = #tpu.pipeline_mode<synchronous>, transform_indices = @transform_6, window_bounds = array<i64: 1, 128>}, {pipeline_mode = #tpu.pipeline_mode<synchronous>, transform_indices = @transform_7, window_bounds = array<i64: 128, 128>}, {pipeline_mode = #tpu.pipeline_mode<synchronous>, transform_indices = @transform_8, window_bounds = array<i64: 1, 128>}, {pipeline_mode = #tpu.pipeline_mode<synchronous>, transform_indices = @transform_9, window_bounds = array<i64: 128, 128>}, {pipeline_mode = #tpu.pipeline_mode<synchronous>, transform_indices = @transform_10, window_bounds = array<i64: 1, 128>}, {transform_indices = @transform_11, window_bounds = array<i64: 5, 16, 144>}, {transform_indices = @transform_12, window_bounds = array<i64: 16, 256>}]} {
    %c0 = arith.constant 0 : index
    %c0_0 = arith.constant 0 : index
    %c0_1 = arith.constant 0 : index
    %0 = vector.load %arg1[%c0, %c0_0, %c0_1] : memref<32x16x128xf32, #tpu.memory_space<vmem>>, vector<32x16x128xf32>
    %1 = arith.truncf %0 : vector<32x16x128xf32> to vector<32x16x128xbf16>
    %2 = vector.extract_strided_slice %1 {offsets = [0, 0, 0], sizes = [28, 16, 128], strides = [1, 1, 1]} : vector<32x16x128xbf16> to vector<28x16x128xbf16>
    %3 = vector.extract_strided_slice %1 {offsets = [1, 0, 0], sizes = [28, 16, 128], strides = [1, 1, 1]} : vector<32x16x128xbf16> to vector<28x16x128xbf16>
    %4 = vector.extract_strided_slice %1 {offsets = [2, 0, 0], sizes = [28, 16, 128], strides = [1, 1, 1]} : vector<32x16x128xbf16> to vector<28x16x128xbf16>
    %5 = vector.extract_strided_slice %1 {offsets = [3, 0, 0], sizes = [28, 16, 128], strides = [1, 1, 1]} : vector<32x16x128xbf16> to vector<28x16x128xbf16>
    %6 = vector.extract_strided_slice %1 {offsets = [4, 0, 0], sizes = [28, 16, 128], strides = [1, 1, 1]} : vector<32x16x128xbf16> to vector<28x16x128xbf16>
    %7 = tpu.concatenate %2, %3, %4, %5, %6 in 2 : vector<28x16x128xbf16>, vector<28x16x128xbf16>, vector<28x16x128xbf16>, vector<28x16x128xbf16>, vector<28x16x128xbf16> -> vector<28x16x640xbf16>
    %8 = vector.shape_cast %7 : vector<28x16x640xbf16> to vector<448x640xbf16>
    %c0_2 = arith.constant 0 : index
    %c0_3 = arith.constant 0 : index
    %9 = vector.load %arg2[%c0_2, %c0_3] : memref<640x168xbf16, #tpu.memory_space<vmem>>, vector<640x168xbf16>
    %cst = arith.constant dense<0.000000e+00> : vector<448x168xf32>
    %10 = tpu.matmul %8, %9, %cst {dimension_numbers = #tpu.dot_dimension_numbers<[1], [0], [0], [1], [0, 0, 1, 1], [], []>} : vector<448x640xbf16>, vector<640x168xbf16>, vector<448x168xf32> -> vector<448x168xf32>
    %11 = vector.shape_cast %10 : vector<448x168xf32> to vector<28x16x168xf32>
    %c0_4 = arith.constant 0 : index
    %c0_5 = arith.constant 0 : index
    %12 = vector.load %arg3[%c0_4, %c0_5] : memref<1x168xf32, #tpu.memory_space<vmem>>, vector<1x168xf32>
    %13 = vector.shape_cast %12 : vector<1x168xf32> to vector<1x1x168xf32>
    %14 = vector.broadcast %13 : vector<1x1x168xf32> to vector<28x16x168xf32>
    %15 = arith.addf %11, %14 : vector<28x16x168xf32>
    %cst_6 = arith.constant 0.000000e+00 : f32
    %16 = vector.broadcast %cst_6 : f32 to vector<28x16x168xf32>
    %17 = arith.maximumf %15, %16 : vector<28x16x168xf32>
    %18 = vector.shape_cast %17 : vector<28x16x168xf32> to vector<14x2x16x168xf32>
    %19 = vector.extract_strided_slice %18 {offsets = [0, 0, 0, 0], sizes = [14, 1, 16, 168], strides = [1, 1, 1, 1]} : vector<14x2x16x168xf32> to vector<14x1x16x168xf32>
    %20 = vector.shape_cast %19 : vector<14x1x16x168xf32> to vector<14x16x168xf32>
    %21 = vector.extract_strided_slice %18 {offsets = [0, 1, 0, 0], sizes = [14, 1, 16, 168], strides = [1, 1, 1, 1]} : vector<14x2x16x168xf32> to vector<14x1x16x168xf32>
    %22 = vector.shape_cast %21 : vector<14x1x16x168xf32> to vector<14x16x168xf32>
    %23 = arith.maximumf %20, %22 : vector<14x16x168xf32>
    %24 = vector.extract_strided_slice %23 {offsets = [0, 0, 0], sizes = [14, 16, 162], strides = [1, 1, 1]} : vector<14x16x168xf32> to vector<14x16x162xf32>
    %25 = vector.extract_strided_slice %23 {offsets = [0, 0, 6], sizes = [14, 16, 162], strides = [1, 1, 1]} : vector<14x16x168xf32> to vector<14x16x162xf32>
    %26 = arith.maximumf %24, %25 : vector<14x16x162xf32>
    %27 = arith.truncf %26 : vector<14x16x162xf32> to vector<14x16x162xbf16>
    %28 = vector.extract_strided_slice %27 {offsets = [0, 0, 0], sizes = [10, 16, 162], strides = [1, 1, 1]} : vector<14x16x162xbf16> to vector<10x16x162xbf16>
    %29 = vector.shape_cast %28 : vector<10x16x162xbf16> to vector<160x162xbf16>
    %c0_7 = arith.constant 0 : index
    %c0_8 = arith.constant 0 : index
    %c0_9 = arith.constant 0 : index
    %30 = vector.load %arg4[%c0_7, %c0_8, %c0_9] : memref<5x162x160xbf16, #tpu.memory_space<vmem>>, vector<1x162x160xbf16>
    %31 = vector.shape_cast %30 : vector<1x162x160xbf16> to vector<162x160xbf16>
    %cst_10 = arith.constant dense<0.000000e+00> : vector<160x160xf32>
    %32 = tpu.matmul %29, %31, %cst_10 {dimension_numbers = #tpu.dot_dimension_numbers<[1], [0], [0], [1], [0, 0, 1, 1], [], []>} : vector<160x162xbf16>, vector<162x160xbf16>, vector<160x160xf32> -> vector<160x160xf32>
    %33 = vector.extract_strided_slice %27 {offsets = [1, 0, 0], sizes = [10, 16, 162], strides = [1, 1, 1]} : vector<14x16x162xbf16> to vector<10x16x162xbf16>
    %34 = vector.shape_cast %33 : vector<10x16x162xbf16> to vector<160x162xbf16>
    %c1 = arith.constant 1 : index
    %c0_11 = arith.constant 0 : index
    %c0_12 = arith.constant 0 : index
    %35 = vector.load %arg4[%c1, %c0_11, %c0_12] : memref<5x162x160xbf16, #tpu.memory_space<vmem>>, vector<1x162x160xbf16>
    %36 = vector.shape_cast %35 : vector<1x162x160xbf16> to vector<162x160xbf16>
    %cst_13 = arith.constant dense<0.000000e+00> : vector<160x160xf32>
    %37 = tpu.matmul %34, %36, %cst_13 {dimension_numbers = #tpu.dot_dimension_numbers<[1], [0], [0], [1], [0, 0, 1, 1], [], []>} : vector<160x162xbf16>, vector<162x160xbf16>, vector<160x160xf32> -> vector<160x160xf32>
    %38 = arith.addf %32, %37 : vector<160x160xf32>
    %39 = vector.extract_strided_slice %27 {offsets = [2, 0, 0], sizes = [10, 16, 162], strides = [1, 1, 1]} : vector<14x16x162xbf16> to vector<10x16x162xbf16>
    %40 = vector.shape_cast %39 : vector<10x16x162xbf16> to vector<160x162xbf16>
    %c2 = arith.constant 2 : index
    %c0_14 = arith.constant 0 : index
    %c0_15 = arith.constant 0 : index
    %41 = vector.load %arg4[%c2, %c0_14, %c0_15] : memref<5x162x160xbf16, #tpu.memory_space<vmem>>, vector<1x162x160xbf16>
    %42 = vector.shape_cast %41 : vector<1x162x160xbf16> to vector<162x160xbf16>
    %cst_16 = arith.constant dense<0.000000e+00> : vector<160x160xf32>
    %43 = tpu.matmul %40, %42, %cst_16 {dimension_numbers = #tpu.dot_dimension_numbers<[1], [0], [0], [1], [0, 0, 1, 1], [], []>} : vector<160x162xbf16>, vector<162x160xbf16>, vector<160x160xf32> -> vector<160x160xf32>
    %44 = arith.addf %38, %43 : vector<160x160xf32>
    %45 = vector.extract_strided_slice %27 {offsets = [3, 0, 0], sizes = [10, 16, 162], strides = [1, 1, 1]} : vector<14x16x162xbf16> to vector<10x16x162xbf16>
    %46 = vector.shape_cast %45 : vector<10x16x162xbf16> to vector<160x162xbf16>
    %c3 = arith.constant 3 : index
    %c0_17 = arith.constant 0 : index
    %c0_18 = arith.constant 0 : index
    %47 = vector.load %arg4[%c3, %c0_17, %c0_18] : memref<5x162x160xbf16, #tpu.memory_space<vmem>>, vector<1x162x160xbf16>
    %48 = vector.shape_cast %47 : vector<1x162x160xbf16> to vector<162x160xbf16>
    %cst_19 = arith.constant dense<0.000000e+00> : vector<160x160xf32>
    %49 = tpu.matmul %46, %48, %cst_19 {dimension_numbers = #tpu.dot_dimension_numbers<[1], [0], [0], [1], [0, 0, 1, 1], [], []>} : vector<160x162xbf16>, vector<162x160xbf16>, vector<160x160xf32> -> vector<160x160xf32>
    %50 = arith.addf %44, %49 : vector<160x160xf32>
    %51 = vector.extract_strided_slice %27 {offsets = [4, 0, 0], sizes = [10, 16, 162], strides = [1, 1, 1]} : vector<14x16x162xbf16> to vector<10x16x162xbf16>
    %52 = vector.shape_cast %51 : vector<10x16x162xbf16> to vector<160x162xbf16>
    %c4 = arith.constant 4 : index
    %c0_20 = arith.constant 0 : index
    %c0_21 = arith.constant 0 : index
    %53 = vector.load %arg4[%c4, %c0_20, %c0_21] : memref<5x162x160xbf16, #tpu.memory_space<vmem>>, vector<1x162x160xbf16>
    %54 = vector.shape_cast %53 : vector<1x162x160xbf16> to vector<162x160xbf16>
    %cst_22 = arith.constant dense<0.000000e+00> : vector<160x160xf32>
    %55 = tpu.matmul %52, %54, %cst_22 {dimension_numbers = #tpu.dot_dimension_numbers<[1], [0], [0], [1], [0, 0, 1, 1], [], []>} : vector<160x162xbf16>, vector<162x160xbf16>, vector<160x160xf32> -> vector<160x160xf32>
    %56 = arith.addf %50, %55 : vector<160x160xf32>
    %57 = vector.shape_cast %56 : vector<160x160xf32> to vector<10x16x160xf32>
    %c0_23 = arith.constant 0 : index
    %c0_24 = arith.constant 0 : index
    %58 = vector.load %arg5[%c0_23, %c0_24] : memref<1x160xf32, #tpu.memory_space<vmem>>, vector<1x160xf32>
    %59 = vector.shape_cast %58 : vector<1x160xf32> to vector<1x1x160xf32>
    %60 = vector.broadcast %59 : vector<1x1x160xf32> to vector<10x16x160xf32>
    %61 = arith.addf %57, %60 : vector<10x16x160xf32>
    %cst_25 = arith.constant 0.000000e+00 : f32
    %62 = vector.broadcast %cst_25 : f32 to vector<10x16x160xf32>
    %63 = arith.maximumf %61, %62 : vector<10x16x160xf32>
    %64 = vector.shape_cast %63 : vector<10x16x160xf32> to vector<5x2x16x160xf32>
    %65 = vector.extract_strided_slice %64 {offsets = [0, 0, 0, 0], sizes = [5, 1, 16, 160], strides = [1, 1, 1, 1]} : vector<5x2x16x160xf32> to vector<5x1x16x160xf32>
    %66 = vector.shape_cast %65 : vector<5x1x16x160xf32> to vector<5x16x160xf32>
    %67 = vector.extract_strided_slice %64 {offsets = [0, 1, 0, 0], sizes = [5, 1, 16, 160], strides = [1, 1, 1, 1]} : vector<5x2x16x160xf32> to vector<5x1x16x160xf32>
    %68 = vector.shape_cast %67 : vector<5x1x16x160xf32> to vector<5x16x160xf32>
    %69 = arith.maximumf %66, %68 : vector<5x16x160xf32>
    %70 = vector.extract_strided_slice %69 {offsets = [0, 0, 0], sizes = [5, 16, 144], strides = [1, 1, 1]} : vector<5x16x160xf32> to vector<5x16x144xf32>
    %71 = vector.extract_strided_slice %69 {offsets = [0, 0, 16], sizes = [5, 16, 144], strides = [1, 1, 1]} : vector<5x16x160xf32> to vector<5x16x144xf32>
    %72 = arith.maximumf %70, %71 : vector<5x16x144xf32>
    %c0_26 = arith.constant 0 : index
    %c0_27 = arith.constant 0 : index
    %c0_28 = arith.constant 0 : index
    %73 = vector.load %arg12[%c0_26, %c0_27, %c0_28] : memref<5x16x144xf32, #tpu.memory_space<vmem>>, vector<5x16x144xf32>
    tpu.vector_store %arg12[%c0_26, %c0_27, %c0_28], %72 {strides = array<i32>} : memref<5x16x144xf32, #tpu.memory_space<vmem>>, vector<5x16x144xf32>,
    %74 = arith.truncf %72 : vector<5x16x144xf32> to vector<5x16x144xbf16>
    %75 = vector.extract_strided_slice %74 {offsets = [0, 0, 0], sizes = [1, 16, 144], strides = [1, 1, 1]} : vector<5x16x144xbf16> to vector<1x16x144xbf16>
    %76 = vector.shape_cast %75 : vector<1x16x144xbf16> to vector<16x144xbf16>
    %c0_29 = arith.constant 0 : index
    %c0_30 = arith.constant 0 : index
    %c0_31 = arith.constant 0 : index
    %77 = vector.load %arg6[%c0_29, %c0_30, %c0_31] : memref<5x144x128xbf16, #tpu.memory_space<vmem>>, vector<1x144x128xbf16>
    %78 = vector.shape_cast %77 : vector<1x144x128xbf16> to vector<144x128xbf16>
    %cst_32 = arith.constant dense<0.000000e+00> : vector<16x128xf32>
    %79 = tpu.matmul %76, %78, %cst_32 {dimension_numbers = #tpu.dot_dimension_numbers<[1], [0], [0], [1], [0, 0, 1, 1], [], []>} : vector<16x144xbf16>, vector<144x128xbf16>, vector<16x128xf32> -> vector<16x128xf32>
    %80 = vector.extract_strided_slice %74 {offsets = [1, 0, 0], sizes = [1, 16, 144], strides = [1, 1, 1]} : vector<5x16x144xbf16> to vector<1x16x144xbf16>
    %81 = vector.shape_cast %80 : vector<1x16x144xbf16> to vector<16x144xbf16>
    %c1_33 = arith.constant 1 : index
    %c0_34 = arith.constant 0 : index
    %c0_35 = arith.constant 0 : index
    %82 = vector.load %arg6[%c1_33, %c0_34, %c0_35] : memref<5x144x128xbf16, #tpu.memory_space<vmem>>, vector<1x144x128xbf16>
    %83 = vector.shape_cast %82 : vector<1x144x128xbf16> to vector<144x128xbf16>
    %cst_36 = arith.constant dense<0.000000e+00> : vector<16x128xf32>
    %84 = tpu.matmul %81, %83, %cst_36 {dimension_numbers = #tpu.dot_dimension_numbers<[1], [0], [0], [1], [0, 0, 1, 1], [], []>} : vector<16x144xbf16>, vector<144x128xbf16>, vector<16x128xf32> -> vector<16x128xf32>
    %85 = arith.addf %79, %84 : vector<16x128xf32>
    %86 = vector.extract_strided_slice %74 {offsets = [2, 0, 0], sizes = [1, 16, 144], strides = [1, 1, 1]} : vector<5x16x144xbf16> to vector<1x16x144xbf16>
    %87 = vector.shape_cast %86 : vector<1x16x144xbf16> to vector<16x144xbf16>
    %c2_37 = arith.constant 2 : index
    %c0_38 = arith.constant 0 : index
    %c0_39 = arith.constant 0 : index
    %88 = vector.load %arg6[%c2_37, %c0_38, %c0_39] : memref<5x144x128xbf16, #tpu.memory_space<vmem>>, vector<1x144x128xbf16>
    %89 = vector.shape_cast %88 : vector<1x144x128xbf16> to vector<144x128xbf16>
    %cst_40 = arith.constant dense<0.000000e+00> : vector<16x128xf32>
    %90 = tpu.matmul %87, %89, %cst_40 {dimension_numbers = #tpu.dot_dimension_numbers<[1], [0], [0], [1], [0, 0, 1, 1], [], []>} : vector<16x144xbf16>, vector<144x128xbf16>, vector<16x128xf32> -> vector<16x128xf32>
    %91 = arith.addf %85, %90 : vector<16x128xf32>
    %92 = vector.extract_strided_slice %74 {offsets = [3, 0, 0], sizes = [1, 16, 144], strides = [1, 1, 1]} : vector<5x16x144xbf16> to vector<1x16x144xbf16>
    %93 = vector.shape_cast %92 : vector<1x16x144xbf16> to vector<16x144xbf16>
    %c3_41 = arith.constant 3 : index
    %c0_42 = arith.constant 0 : index
    %c0_43 = arith.constant 0 : index
    %94 = vector.load %arg6[%c3_41, %c0_42, %c0_43] : memref<5x144x128xbf16, #tpu.memory_space<vmem>>, vector<1x144x128xbf16>
    %95 = vector.shape_cast %94 : vector<1x144x128xbf16> to vector<144x128xbf16>
    %cst_44 = arith.constant dense<0.000000e+00> : vector<16x128xf32>
    %96 = tpu.matmul %93, %95, %cst_44 {dimension_numbers = #tpu.dot_dimension_numbers<[1], [0], [0], [1], [0, 0, 1, 1], [], []>} : vector<16x144xbf16>, vector<144x128xbf16>, vector<16x128xf32> -> vector<16x128xf32>
    %97 = arith.addf %91, %96 : vector<16x128xf32>
    %98 = vector.extract_strided_slice %74 {offsets = [4, 0, 0], sizes = [1, 16, 144], strides = [1, 1, 1]} : vector<5x16x144xbf16> to vector<1x16x144xbf16>
    %99 = vector.shape_cast %98 : vector<1x16x144xbf16> to vector<16x144xbf16>
    %c4_45 = arith.constant 4 : index
    %c0_46 = arith.constant 0 : index
    %c0_47 = arith.constant 0 : index
    %100 = vector.load %arg6[%c4_45, %c0_46, %c0_47] : memref<5x144x128xbf16, #tpu.memory_space<vmem>>, vector<1x144x128xbf16>
    %101 = vector.shape_cast %100 : vector<1x144x128xbf16> to vector<144x128xbf16>
    %cst_48 = arith.constant dense<0.000000e+00> : vector<16x128xf32>
    %102 = tpu.matmul %99, %101, %cst_48 {dimension_numbers = #tpu.dot_dimension_numbers<[1], [0], [0], [1], [0, 0, 1, 1], [], []>} : vector<16x144xbf16>, vector<144x128xbf16>, vector<16x128xf32> -> vector<16x128xf32>
    %103 = arith.addf %97, %102 : vector<16x128xf32>
    %c0_49 = arith.constant 0 : index
    %c0_50 = arith.constant 0 : index
    %104 = vector.load %arg7[%c0_49, %c0_50] : memref<1x128xf32, #tpu.memory_space<vmem>>, vector<1x128xf32>
    %105 = vector.broadcast %104 : vector<1x128xf32> to vector<16x128xf32>
    %106 = arith.addf %103, %105 : vector<16x128xf32>
    %cst_51 = arith.constant 0.000000e+00 : f32
    %107 = vector.broadcast %cst_51 : f32 to vector<16x128xf32>
    %108 = arith.maximumf %106, %107 : vector<16x128xf32>
    %109 = arith.truncf %108 : vector<16x128xf32> to vector<16x128xbf16>
    %c0_52 = arith.constant 0 : index
    %c0_53 = arith.constant 0 : index
    %110 = vector.load %arg8[%c0_52, %c0_53] : memref<128x128xbf16, #tpu.memory_space<vmem>>, vector<128x128xbf16>
    %cst_54 = arith.constant dense<0.000000e+00> : vector<16x128xf32>
    %111 = tpu.matmul %109, %110, %cst_54 {dimension_numbers = #tpu.dot_dimension_numbers<[1], [0], [0], [1], [0, 0, 1, 1], [], []>} : vector<16x128xbf16>, vector<128x128xbf16>, vector<16x128xf32> -> vector<16x128xf32>
    %c0_55 = arith.constant 0 : index
    %c0_56 = arith.constant 0 : index
    %112 = vector.load %arg9[%c0_55, %c0_56] : memref<1x128xf32, #tpu.memory_space<vmem>>, vector<1x128xf32>
    %113 = vector.broadcast %112 : vector<1x128xf32> to vector<16x128xf32>
    %114 = arith.addf %111, %113 : vector<16x128xf32>
    %cst_57 = arith.constant 0.000000e+00 : f32
    %115 = vector.broadcast %cst_57 : f32 to vector<16x128xf32>
    %116 = arith.maximumf %114, %115 : vector<16x128xf32>
    %117 = arith.truncf %116 : vector<16x128xf32> to vector<16x128xbf16>
    %c0_58 = arith.constant 0 : index
    %c0_59 = arith.constant 0 : index
    %118 = vector.load %arg10[%c0_58, %c0_59] : memref<128x128xbf16, #tpu.memory_space<vmem>>, vector<128x128xbf16>
    %cst_60 = arith.constant dense<0.000000e+00> : vector<16x128xf32>
    %119 = tpu.matmul %117, %118, %cst_60 {dimension_numbers = #tpu.dot_dimension_numbers<[1], [0], [0], [1], [0, 0, 1, 1], [], []>} : vector<16x128xbf16>, vector<128x128xbf16>, vector<16x128xf32> -> vector<16x128xf32>
    %c0_61 = arith.constant 0 : index
    %c0_62 = arith.constant 0 : index
    %120 = vector.load %arg11[%c0_61, %c0_62] : memref<1x128xf32, #tpu.memory_space<vmem>>, vector<1x128xf32>
    %121 = vector.broadcast %120 : vector<1x128xf32> to vector<16x128xf32>
    %122 = arith.addf %119, %121 : vector<16x128xf32>
    %123 = tpu.concatenate %116, %122 in 1 : vector<16x128xf32>, vector<16x128xf32> -> vector<16x256xf32>
    %c0_63 = arith.constant 0 : index
    %c0_64 = arith.constant 0 : index
    %124 = vector.load %arg13[%c0_63, %c0_64] : memref<16x256xf32, #tpu.memory_space<vmem>>, vector<16x256xf32>
    tpu.vector_store %arg13[%c0_63, %c0_64], %123 {strides = array<i32>} : memref<16x256xf32, #tpu.memory_space<vmem>>, vector<16x256xf32>,
    return
  }
  func.func @transform_0(%arg0: i32) -> (i32, i32, i32) {
    %c0_i32 = arith.constant 0 : i32
    %c0_i32_0 = arith.constant 0 : i32
    %c0_i32_1 = arith.constant 0 : i32
    return %c0_i32, %arg0, %c0_i32_0 : i32, i32, i32
  }
  func.func @transform_1(%arg0: i32) -> (i32, i32) {
    %c0_i32 = arith.constant 0 : i32
    %c0_i32_0 = arith.constant 0 : i32
    %c0_i32_1 = arith.constant 0 : i32
    return %c0_i32, %c0_i32_0 : i32, i32
  }
  func.func @transform_2(%arg0: i32) -> (i32, i32) {
    %c0_i32 = arith.constant 0 : i32
    %c0_i32_0 = arith.constant 0 : i32
    %c0_i32_1 = arith.constant 0 : i32
    return %c0_i32, %c0_i32_0 : i32, i32
  }
  func.func @transform_3(%arg0: i32) -> (i32, i32, i32) {
    %c0_i32 = arith.constant 0 : i32
    %c0_i32_0 = arith.constant 0 : i32
    %c0_i32_1 = arith.constant 0 : i32
    %c0_i32_2 = arith.constant 0 : i32
    return %c0_i32, %c0_i32_0, %c0_i32_1 : i32, i32, i32
  }
  func.func @transform_4(%arg0: i32) -> (i32, i32) {
    %c0_i32 = arith.constant 0 : i32
    %c0_i32_0 = arith.constant 0 : i32
    %c0_i32_1 = arith.constant 0 : i32
    return %c0_i32, %c0_i32_0 : i32, i32
  }
  func.func @transform_5(%arg0: i32) -> (i32, i32, i32) {
    %c0_i32 = arith.constant 0 : i32
    %c0_i32_0 = arith.constant 0 : i32
    %c0_i32_1 = arith.constant 0 : i32
    %c0_i32_2 = arith.constant 0 : i32
    return %c0_i32, %c0_i32_0, %c0_i32_1 : i32, i32, i32
  }
  func.func @transform_6(%arg0: i32) -> (i32, i32) {
    %c0_i32 = arith.constant 0 : i32
    %c0_i32_0 = arith.constant 0 : i32
    %c0_i32_1 = arith.constant 0 : i32
    return %c0_i32, %c0_i32_0 : i32, i32
  }
  func.func @transform_7(%arg0: i32) -> (i32, i32) {
    %c0_i32 = arith.constant 0 : i32
    %c0_i32_0 = arith.constant 0 : i32
    %c0_i32_1 = arith.constant 0 : i32
    return %c0_i32, %c0_i32_0 : i32, i32
  }
  func.func @transform_8(%arg0: i32) -> (i32, i32) {
    %c0_i32 = arith.constant 0 : i32
    %c0_i32_0 = arith.constant 0 : i32
    %c0_i32_1 = arith.constant 0 : i32
    return %c0_i32, %c0_i32_0 : i32, i32
  }
  func.func @transform_9(%arg0: i32) -> (i32, i32) {
    %c0_i32 = arith.constant 0 : i32
    %c0_i32_0 = arith.constant 0 : i32
    %c0_i32_1 = arith.constant 0 : i32
    return %c0_i32, %c0_i32_0 : i32, i32
  }
  func.func @transform_10(%arg0: i32) -> (i32, i32) {
    %c0_i32 = arith.constant 0 : i32
    %c0_i32_0 = arith.constant 0 : i32
    %c0_i32_1 = arith.constant 0 : i32
    return %c0_i32, %c0_i32_0 : i32, i32
  }
  func.func @transform_11(%arg0: i32) -> (i32, i32, i32) {
    %c0_i32 = arith.constant 0 : i32
    %c0_i32_0 = arith.constant 0 : i32
    %c0_i32_1 = arith.constant 0 : i32
    return %c0_i32, %arg0, %c0_i32_0 : i32, i32, i32
  }
  func.func @transform_12(%arg0: i32) -> (i32, i32) {
    %c0_i32 = arith.constant 0 : i32
    %c0_i32_0 = arith.constant 0 : i32
    return %arg0, %c0_i32 : i32, i32
  }
}

</mosaic_0001>

<bundles_post_ra>
// kernel: tile.13
= control target key start
LH: loop header
LB: loop body
LE: loop exit
PB: predicated region body
PF: predicated region fallthrough
CT: control target
= control target key end

     0   :  { %s40_s0 = inlined_call_operand.vmem [shape: f32[6], index: 0, kind: input, shape index: {}]   ;;  %s41_s1 = inlined_call_operand.vmem [shape: f32[28,6], index: 1, kind: output, shape index: {}]  }
   0x1   :  { %v4_v0 = vld [vmem:[%s40_s0] ss:$0 sm:$0xff] }
   0x2   :  { %5 = vst [vmem:[%s41_s1] sm:$0xff] %v4_v0  ;;  %12 = vst [vmem:[%s41_s1 + $0x8] sm:$0xff] %v4_v0 }
   0x3   :  { %13 = vst [vmem:[%s41_s1 + $0x10] sm:$0xff] %v4_v0  ;;  %14 = vst [vmem:[%s41_s1 + $0x18] sm:$0xff] %v4_v0 }

// kernel: tile.14
= control target key start
LH: loop header
LB: loop body
LE: loop exit
PB: predicated region body
PF: predicated region fallthrough
CT: control target
= control target key end

     0   :  { %vm9_vm0 = vcmask 15360   ;;  %s247_s12 = smov 126   ;;  %s248_s13 = smov 114   ;;  %vm3_vm1 = vcmask 48128   ;;  %vm13_vm2 = vcmask 31744   ;;  %vm16_vm3 = vcmask 1048560   ;;  %s377_s0 = inlined_call_operand.vmem [shape: f32[28,6], index: 0, kind: input, shape index: {}]   ;;  %s378_s1 = inlined_call_operand.vmem [shape: f32[1,168], index: 1, kind: output, shape index: {}]  }
   0x1   :  { %v191_v0 = vld [vmem:[%s377_s0 + $0x15] sm:$0x1]   ;;  %v194_v3 = vld [vmem:[%s377_s0 + $0x13] sm:$0x1]   ;;  %v193_v4 = vld [vmem:[%s377_s0 + $0x14] sm:$0x1]  }
   0x2   :  { %v192_v1 = vld [vmem:[%s377_s0 + $0x15] sm:$0x1]   ;;  %26 = vrot.lane.b32.xlu1 %v194_v3, %s248_s13  ;;  %v195_v5 = vld [vmem:[%s377_s0 + $0x12] sm:$0x1]   ;;  %s249_s18 = smov 120   ;;  %s250_s19 = smov 108  }
   0x3   :  { %v10_v2 = vsel %vm9_vm0, %v192_v1, %v191_v0  ;;  %v196_v6 = vld [vmem:[%s377_s0 + $0x11] sm:$0x1]   ;;  %v197_v7 = vld [vmem:[%s377_s0 + $0x10] sm:$0x1]   ;;  %s251_s24 = smov 102   ;;  %s252_s25 = smov 96  }
   0x4   :  { %11 = vrot.lane.b32.xlu0 %v10_v2, %s247_s12  ;;  %v198_v8 = vld [vmem:[%s377_s0 + $0xf] sm:$0x1]   ;;  %v199_v9 = vld [vmem:[%s377_s0 + $0xe] sm:$0x1]   ;;  %s253_s30 = smov 90   ;;  %s254_s2 = smov 84  }
   0x5   :  { %v2_v10 = vld [vmem:[%s377_s0] sm:$0x1]   ;;  %v200_v11 = vld [vmem:[%s377_s0 + $0xd] sm:$0x1]   ;;  %v201_v12 = vld [vmem:[%s377_s0 + $0xc] sm:$0x1]  }
   0x6   :  { %32 = vrot.lane.b32.xlu1 %v195_v5, %s250_s19  ;;  %4 = vst.msk [vmem:[#allocation0] sm:$0x1] %vm3_vm1, %v2_v10   ;;  %s255_s9 = smov 78   ;;  %s256_s10 = smov 72   ;;  %v202_v13 = vld [vmem:[%s377_s0 + $0xb] sm:$0x1]  }
   0x7   :  { %v203_v14 = vld [vmem:[%s377_s0 + $0xa] sm:$0x1]   ;;  %s257_s15 = smov 66   ;;  %s258_s16 = smov 60   ;;  %v204_v15 = vld [vmem:[%s377_s0 + $0x9] sm:$0x1]  }
   0x8   :  { %20 = vrot.lane.b32.xlu0 %v193_v4, %s249_s18  ;;  %v205_v16 = vld [vmem:[%s377_s0 + $0x8] sm:$0x1]   ;;  %s259_s21 = smov 54   ;;  %s260_s22 = smov 48   ;;  %v206_v17 = vld [vmem:[%s377_s0 + $0x7] sm:$0x1]  }
   0x9   :  { %v207_v18 = vld [vmem:[%s377_s0 + $0x6] sm:$0x1]   ;;  %s261_s27 = smov 42   ;;  %s262_s28 = smov 36   ;;  %v208_v19 = vld [vmem:[%s377_s0 + $0x1b] sm:$0x1]  }
   0xa   :  { %44 = vrot.lane.b32.xlu1 %v197_v7, %s252_s25  ;;  %v209_v20 = vld [vmem:[%s377_s0 + $0x5] sm:$0x1]   ;;  %s263_s4 = smov 34   ;;  %s264_s5 = smov 30   ;;  %v210_v21 = vld [vmem:[%s377_s0 + $0x1a] sm:$0x1]  }
   0xb   :  { %v211_v22 = vld [vmem:[%s377_s0 + $0x4] sm:$0x1]   ;;  %s266_s11 = smov 24   ;;  %v212_v23 = vld [vmem:[%s377_s0 + $0x19] sm:$0x1]   ;;  %s268_s17 = smov 18  }
   0xc   :  { %38 = vrot.lane.b32.xlu0 %v196_v6, %s251_s24  ;;  %v213_v24 = vld [vmem:[%s377_s0 + $0x3] sm:$0x1]   ;;  %v214_v25 = vld [vmem:[%s377_s0 + $0x18] sm:$0x1]   ;;  %v215_v26 = vld [vmem:[%s377_s0 + $0x2] sm:$0x1]  }
   0xd   :  { %s270_s23 = smov 12   ;;  %v216_v27 = vld [vmem:[%s377_s0 + $0x17] sm:$0x1]   ;;  %v217_v28 = vld [vmem:[%s377_s0 + $0x1] sm:$0x1]   ;;  %s272_s29 = smov 6  }
   0xe   :  { %56 = vrot.lane.b32.xlu1 %v199_v9, %s254_s2  ;;  %v218_v29 = vld [vmem:[%s377_s0 + $0x16] sm:$0x1]   ;;  %s273_s0 = smov 4   ;;  %vm22_vm4 = vcmask 1032128   ;;  %vm28_vm5 = vcmask 982928   ;;  %vm34_vm6 = vcmask 933728  }
   0xf   :  { %vm40_vm7 = vcmask 884528   ;;  %vm46_vm8 = vcmask 835328   ;;  %vm52_vm9 = vcmask 786128   ;;  %vm58_vm10 = vcmask 736928  }
  0x10   :  { %50 = vrot.lane.b32.xlu0 %v198_v8, %s253_s30  ;;  %vm64_vm11 = vcmask 687728   ;;  %vm70_vm12 = vcmask 638528   ;;  %vm76_vm13 = vcmask 589328   ;;  %vm82_vm14 = vcmask 540128  }
  0x11   :  { %vm88_vm15 = vcmask 490928   ;;  %vm94_vm0 = vcmask 441728   ;;  %vm100_vm1 = vcmask 392528  }
  0x12   :  { %68 = vrot.lane.b32.xlu1 %v201_v12, %s256_s10  ;;  %s265_s10 = smov 28  }
  0x14   :  { %62 = vrot.lane.b32.xlu0 %v200_v11, %s255_s9 }
  0x16   :  { %80 = vrot.lane.b32.xlu1 %v203_v14, %s258_s16  ;;  %s267_s16 = smov 22  }
  0x18   :  { %74 = vrot.lane.b32.xlu0 %v202_v13, %s257_s15 }
  0x1a   :  { %92 = vrot.lane.b32.xlu1 %v205_v16, %s260_s22  ;;  %s269_s22 = smov 16  }
  0x1c   :  { %86 = vrot.lane.b32.xlu0 %v204_v15, %s259_s21 }
  0x1e   :  { %104 = vrot.lane.b32.xlu1 %v207_v18, %s262_s28  ;;  %s271_s28 = smov 10  }
  0x20   :  { %98 = vrot.lane.b32.xlu0 %v206_v17, %s261_s27 }
  0x22   :  { %117 = vrot.lane.b32.xlu1 %v209_v20, %s264_s5 }
  0x24   :  { %110 = vrot.lane.b32.xlu0 %v208_v19, %s263_s4 }
  0x26   :  { %130 = vrot.lane.b32.xlu1 %v211_v22, %s266_s11 }
  0x28   :  { %123 = vrot.lane.b32.xlu0 %v210_v21, %s265_s10 }
  0x2a   :  { %143 = vrot.lane.b32.xlu1 %v213_v24, %s268_s17 }
  0x2c   :  { %136 = vrot.lane.b32.xlu0 %v212_v23, %s267_s16 }
  0x2e   :  { %156 = vrot.lane.b32.xlu1 %v215_v26, %s270_s23 }
  0x30   :  { %149 = vrot.lane.b32.xlu0 %v214_v25, %s269_s22 }
  0x32   :  { %169 = vrot.lane.b32.xlu1 %v217_v28, %s272_s29 }
  0x34   :  { %162 = vrot.lane.b32.xlu0 %v216_v27, %s271_s28 }
  0x38   :  { %175 = vrot.lane.b32.xlu0 %v218_v29, %s273_s0 }
  0x74   :  { %v27_v31 = vpop.permute.xlu1 %26  }
  0x76   :  { %v12_v30 = vpop.permute.xlu0 %11  }
  0x77   :  { %15 = vst.msk [vmem:[#allocation0 + $0x8] sm:$0x1] %vm13_vm2, %v12_v30   ;;  %vm106_vm2 = vcmask 343328  }
  0x78   :  { %17 = vst.msk [vmem:[#allocation0] sm:$0x1] %vm16_vm3, %v12_v30   ;;  %v33_v33 = vpop.permute.xlu1 %32   ;;  %vm112_vm3 = vcmask 326928  }
  0x7a   :  { %v21_v32 = vpop.permute.xlu0 %20  }
  0x7b   :  { %23 = vst.msk [vmem:[#allocation0] sm:$0x1] %vm22_vm4, %v21_v32   ;;  %vm119_vm4 = vcmask 294128  }
  0x7c   :  { %29 = vst.msk [vmem:[#allocation0] sm:$0x1] %vm28_vm5, %v27_v31   ;;  %v45_v35 = vpop.permute.xlu1 %44   ;;  %vm125_vm5 = vcmask 277728  }
  0x7d   :  { %35 = vst.msk [vmem:[#allocation0] sm:$0x1] %vm34_vm6, %v33_v33   ;;  %vm132_vm6 = vcmask 244928  }
  0x7e   :  { %v39_v34 = vpop.permute.xlu0 %38  }
  0x7f   :  { %41 = vst.msk [vmem:[#allocation0] sm:$0x1] %vm40_vm7, %v39_v34   ;;  %vm138_vm7 = vcmask 228528  }
  0x80   :  { %47 = vst.msk [vmem:[#allocation0] sm:$0x1] %vm46_vm8, %v45_v35   ;;  %v57_v37 = vpop.permute.xlu1 %56   ;;  %vm145_vm8 = vcmask 195728  }
  0x82   :  { %v51_v36 = vpop.permute.xlu0 %50  }
  0x83   :  { %53 = vst.msk [vmem:[#allocation0] sm:$0x1] %vm52_vm9, %v51_v36   ;;  %vm151_vm9 = vcmask 179328  }
  0x84   :  { %59 = vst.msk [vmem:[#allocation0] sm:$0x1] %vm58_vm10, %v57_v37   ;;  %v69_v39 = vpop.permute.xlu1 %68   ;;  %vm158_vm10 = vcmask 146528  }
  0x86   :  { %v63_v38 = vpop.permute.xlu0 %62  }
  0x87   :  { %65 = vst.msk [vmem:[#allocation0] sm:$0x1] %vm64_vm11, %v63_v38   ;;  %vm164_vm11 = vcmask 130128  }
  0x88   :  { %71 = vst.msk [vmem:[#allocation0] sm:$0x1] %vm70_vm12, %v69_v39   ;;  %v81_v41 = vpop.permute.xlu1 %80   ;;  %vm171_vm12 = vcmask 97328  }
  0x8a   :  { %v75_v40 = vpop.permute.xlu0 %74  }
  0x8b   :  { %77 = vst.msk [vmem:[#allocation0] sm:$0x1] %vm76_vm13, %v75_v40   ;;  %vm177_vm13 = vcmask 80928  }
  0x8c   :  { %83 = vst.msk [vmem:[#allocation0] sm:$0x1] %vm82_vm14, %v81_v41   ;;  %v93_v43 = vpop.permute.xlu1 %92  }
  0x8e   :  { %v87_v42 = vpop.permute.xlu0 %86  }
  0x8f   :  { %89 = vst.msk [vmem:[#allocation0] sm:$0x1] %vm88_vm15, %v87_v42  }
  0x90   :  { %95 = vst.msk [vmem:[#allocation0] sm:$0x1] %vm94_vm0, %v93_v43   ;;  %v105_v45 = vpop.permute.xlu1 %104  }
  0x92   :  { %v99_v44 = vpop.permute.xlu0 %98  }
  0x93   :  { %101 = vst.msk [vmem:[#allocation0] sm:$0x1] %vm100_vm1, %v99_v44  }
  0x94   :  { %107 = vst.msk [vmem:[#allocation0] sm:$0x1] %vm106_vm2, %v105_v45   ;;  %v118_v47 = vpop.permute.xlu1 %117  }
  0x95   :  { %120 = vst.msk [vmem:[#allocation0] sm:$0x1] %vm119_vm4, %v118_v47  }
  0x96   :  { %v111_v46 = vpop.permute.xlu0 %110  }
  0x97   :  { %114 = vst.msk [vmem:[#allocation0 + $0x8] sm:$0x1] %vm112_vm3, %v111_v46  }
  0x98   :  { %v131_v49 = vpop.permute.xlu1 %130  }
  0x99   :  { %133 = vst.msk [vmem:[#allocation0] sm:$0x1] %vm132_vm6, %v131_v49  }
  0x9a   :  { %v124_v48 = vpop.permute.xlu0 %123  }
  0x9b   :  { %127 = vst.msk [vmem:[#allocation0 + $0x8] sm:$0x1] %vm125_vm5, %v124_v48  }
  0x9c   :  { %v144_v51 = vpop.permute.xlu1 %143  }
  0x9d   :  { %146 = vst.msk [vmem:[#allocation0] sm:$0x1] %vm145_vm8, %v144_v51  }
  0x9e   :  { %v137_v50 = vpop.permute.xlu0 %136  }
  0x9f   :  { %140 = vst.msk [vmem:[#allocation0 + $0x8] sm:$0x1] %vm138_vm7, %v137_v50  }
  0xa0   :  { %v157_v53 = vpop.permute.xlu1 %156  }
  0xa1   :  { %159 = vst.msk [vmem:[#allocation0] sm:$0x1] %vm158_vm10, %v157_v53  }
  0xa2   :  { %v150_v52 = vpop.permute.xlu0 %149  }
  0xa3   :  { %153 = vst.msk [vmem:[#allocation0 + $0x8] sm:$0x1] %vm151_vm9, %v150_v52  }
  0xa4   :  { %v170_v55 = vpop.permute.xlu1 %169  }
  0xa5   :  { %172 = vst.msk [vmem:[#allocation0] sm:$0x1] %vm171_vm12, %v170_v55  }
  0xa6   :  { %v163_v54 = vpop.permute.xlu0 %162  }
  0xa7   :  { %166 = vst.msk [vmem:[#allocation0 + $0x8] sm:$0x1] %vm164_vm11, %v163_v54  }
  0xaa   :  { %v176_v56 = vpop.permute.xlu0 %175  }
  0xab   :  { %179 = vst.msk [vmem:[#allocation0 + $0x8] sm:$0x1] %vm177_vm13, %v176_v56  }
  0xac   :  { %v183_v57 = vld [vmem:[#allocation0] sm:$0x1] }
  0xad   :  { %185 = vst [vmem:[%s378_s1] sm:$0x1] %v183_v57 }
  0xb2   :  { %v187_v58 = vld [vmem:[#allocation0 + $0x8] sm:$0x1] }
  0xb3   :  { %219 = vst [vmem:[%s378_s1 + $0x1] sm:$0x1] %v187_v58 }

// kernel: tile.18
= control target key start
LH: loop header
LB: loop body
LE: loop exit
PB: predicated region body
PF: predicated region fallthrough
CT: control target
= control target key end

     0   :  { %s28_s0 = inlined_call_operand.vmem [shape: f32[16], index: 0, kind: input, shape index: {}]   ;;  %s29_s1 = inlined_call_operand.vmem [shape: f32[10,16], index: 1, kind: output, shape index: {}]  }
   0x1   :  { %v4_v0 = vld [vmem:[%s28_s0] ss:$0 sm:$0xff] }
   0x2   :  { %5 = vst [vmem:[%s29_s1] sm:$0xff] %v4_v0  ;;  %8 = vst [vmem:[%s29_s1 + $0x8] sm:$0xff] %v4_v0 }

// kernel: tile.19
= control target key start
LH: loop header
LB: loop body
LE: loop exit
PB: predicated region body
PF: predicated region fallthrough
CT: control target
= control target key end

     0   :  { %s75_s10 = smov 112   ;;  %s76_s11 = smov 80   ;;  %vm4_vm0 = vcmask 130048   ;;  %vm10_vm1 = vcmask 1048448   ;;  %vm16_vm2 = vcmask 917248   ;;  %vm22_vm3 = vcmask 786048   ;;  %s122_s0 = inlined_call_operand.vmem [shape: f32[10,16], index: 0, kind: input, shape index: {}]   ;;  %s123_s1 = inlined_call_operand.vmem [shape: f32[1,160], index: 1, kind: output, shape index: {}]  }
   0x1   :  { %v60_v0 = vld [vmem:[%s122_s0 + $0x7] sm:$0x1]   ;;  %v62_v1 = vld [vmem:[%s122_s0 + $0x5] sm:$0x1]   ;;  %v61_v2 = vld [vmem:[%s122_s0 + $0x6] sm:$0x1]  }
   0x2   :  { %8 = vrot.lane.b32.xlu0 %v60_v0, %s75_s10  ;;  %20 = vrot.lane.b32.xlu1 %v62_v1, %s76_s11  ;;  %v63_v3 = vld [vmem:[%s122_s0 + $0x4] sm:$0x1]   ;;  %s2_s16 = smov 3  ;;  %s77_s17 = smov 96   ;;  %v64_v5 = vld [vmem:[%s122_s0 + $0x3] sm:$0x1]  }
   0x3   :  { %s78_s18 = smov 64   ;;  %v3_v4 = vld [vmem:[%s122_s0] ss:$8 sm:%s2_s16]   ;;  %v65_v6 = vld [vmem:[%s122_s0 + $0x2] sm:$0x1]   ;;  %s43_s25 = smov 3 }
   0x4   :  { %5 = vst.msk [vmem:[#allocation0] ss:$8 sm:$0x3] %vm4_vm0, %v3_v4   ;;  %s79_s26 = smov 48   ;;  %s80_s27 = smov 32   ;;  %vm28_vm4 = vcmask 654848  }
   0x5   :  { %v66_v7 = vld [vmem:[%s122_s0 + $0x1] ss:$8 sm:%s43_s25]   ;;  %s81_s0 = smov 16   ;;  %vm34_vm5 = vcmask 523648   ;;  %vm40_vm6 = vcmask 392448   ;;  %vm47_vm7 = vcmask 261248  }
   0x6   :  { %14 = vrot.lane.b32.xlu0 %v61_v2, %s77_s17  ;;  %26 = vrot.lane.b32.xlu1 %v63_v3, %s78_s18 }
   0xa   :  { %32 = vrot.lane.b32.xlu0 %v64_v5, %s79_s26  ;;  %38 = vrot.lane.b32.xlu1 %v65_v6, %s80_s27 }
   0xe   :  { %45 = vrot.lane.b32.xlu0 %v66_v7, %s81_s0 }
  0x74   :  { %v9_v8 = vpop.permute.xlu0 %8   ;;  %v21_v9 = vpop.permute.xlu1 %20  }
  0x75   :  { %11 = vst.msk [vmem:[#allocation0] sm:$0x1] %vm10_vm1, %v9_v8  }
  0x78   :  { %v15_v10 = vpop.permute.xlu0 %14   ;;  %v27_v11 = vpop.permute.xlu1 %26  }
  0x79   :  { %17 = vst.msk [vmem:[#allocation0] sm:$0x1] %vm16_vm2, %v15_v10  }
  0x7a   :  { %23 = vst.msk [vmem:[#allocation0] sm:$0x1] %vm22_vm3, %v21_v9  }
  0x7b   :  { %29 = vst.msk [vmem:[#allocation0] sm:$0x1] %vm28_vm4, %v27_v11  }
  0x7c   :  { %v33_v12 = vpop.permute.xlu0 %32   ;;  %v39_v13 = vpop.permute.xlu1 %38  }
  0x7d   :  { %35 = vst.msk [vmem:[#allocation0] sm:$0x1] %vm34_vm5, %v33_v12  }
  0x7e   :  { %41 = vst.msk [vmem:[#allocation0] sm:$0x1] %vm40_vm6, %v39_v13  }
  0x80   :  { %v46_v14 = vpop.permute.xlu0 %45  }
  0x81   :  { %48 = vst.msk [vmem:[#allocation0] ss:$8 sm:$0x3] %vm47_vm7, %v46_v14  }
  0x88   :  { %v52_v15 = vld [vmem:[#allocation0] sm:$0x1]  ;;  %v56_v16 = vld [vmem:[#allocation0 + $0x8] sm:$0x1] }
  0x89   :  { %54 = vst [vmem:[%s123_s1] sm:$0x1] %v52_v15  ;;  %67 = vst [vmem:[%s123_s1 + $0x1] sm:$0x1] %v56_v16 }

// kernel: cnn_cifar10_forward.2
= control target key start
LH: loop header
LB: loop body
LE: loop exit
PB: predicated region body
PF: predicated region fallthrough
CT: control target
= control target key end

     0   :  { %s9184_s0 = inlined_call_operand.vmem [shape: bf16[640,168], index: 0, kind: input, shape index: {}]   ;;  %s9185_s1 = inlined_call_operand.vmem [shape: f32[1,168], index: 1, kind: input, shape index: {}]   ;;  %s9186_s2 = inlined_call_operand.vmem [shape: bf16[5,162,160], index: 2, kind: input, shape index: {}]   ;;  %s9187_s3 = inlined_call_operand.vmem [shape: f32[1,160], index: 3, kind: input, shape index: {}]   ;;  %s9188_s4 = inlined_call_operand.vmem [shape: bf16[5,144,128], index: 4, kind: input, shape index: {}]   ;;  %s9189_s5 = inlined_call_operand.vmem [shape: f32[1,128], index: 5, kind: input, shape index: {}]   ;;  %s9190_s6 = inlined_call_operand.vmem [shape: bf16[128,128], index: 6, kind: input, shape index: {}]   ;;  %s9191_s7 = inlined_call_operand.vmem [shape: f32[1,128], index: 7, kind: input, shape index: {}]   ;;  %s9192_s8 = inlined_call_operand.vmem [shape: bf16[128,128], index: 8, kind: input, shape index: {}]   ;;  %s9193_s9 = inlined_call_operand.vmem [shape: f32[1,128], index: 9, kind: input, shape index: {}]   ;;  %s9194_s10 = inlined_call_operand.vmem [shape: f32[32,2,96], index: 10, kind: input, shape index: {}]   ;;  %s9195_s11 = inlined_call_operand.<no memory space> [shape: f32[], index: 11, kind: input, shape index: {}]   ;;  %s9196_s12 = inlined_call_operand.vmem [shape: f32[5,16,144], index: 12, kind: output, shape index: {0}]   ;;  %s9197_s13 = inlined_call_operand.vmem [shape: f32[16,256], index: 13, kind: output, shape index: {1}]  }
   0x1   :  { %v6872_v0 = vstv %s9195_s11 }
   0x2   :  { %v6453_v1 = vld [vmem:[%s9184_s0 + $0x4] ss:$8 sps:$4 sm:$0xff]   ;;  %v6455_v2 = vld [vmem:[%s9184_s0] ss:$8 sps:$4 sm:$0xff]   ;;  %v6456_v3 = vld [vmem:[%s9184_s0 + $0x14] ss:$8 sps:$4 sm:$0xff]   ;;  %v43_v9 = vlaneseq }
   0x3   :  { %1193 = vmatprep.subr.bf16.mxu0 %v6453_v1  ;;  %v6458_v4 = vld [vmem:[%s9184_s0 + $0x10] ss:$8 sps:$4 sm:$0xff]   ;;  %v6459_v5 = vld [vmem:[%s9184_s0 + $0x24] ss:$8 sps:$4 sm:$0xff]   ;;  %v6461_v6 = vld [vmem:[%s9184_s0 + $0x20] ss:$8 sps:$4 sm:$0xff]  }
   0x4   :  { %1194 = vmatpush1.bf16.msra.mxu0 %v6455_v2  ;;  %v6462_v7 = vld [vmem:[%s9184_s0 + $0x34] ss:$8 sps:$4 sm:$0xff]   ;;  %v6464_v8 = vld [vmem:[%s9184_s0 + $0x30] ss:$8 sps:$4 sm:$0xff]   ;;  %v6465_v10 = vld [vmem:[%s9184_s0 + $0x44] ss:$8 sps:$4 sm:$0xff]  }
   0x5   :  { %1195 = vmatprep.subr.bf16.mxu0 %v6456_v3  ;;  %v6467_v11 = vld [vmem:[%s9184_s0 + $0x40] ss:$8 sps:$4 sm:$0xff]   ;;  %v6904_v12 = vshrl.u32 %v43_v9, 7  ;;  %v6468_v13 = vld [vmem:[%s9184_s0 + $0x54] ss:$8 sps:$4 sm:$0xff]   ;;  %v6909_v14 = vand.u32 127, %v43_v9 }
   0x6   :  { %v6470_v15 = vld [vmem:[%s9184_s0 + $0x50] ss:$8 sps:$4 sm:$0xff]   ;;  %v6471_v16 = vld [vmem:[%s9184_s0 + $0x64] ss:$8 sps:$4 sm:$0xff]   ;;  %v5349_v17 = vld [vmem:[%s9194_s10 + $0x2] sm:$0x3] }
   0x7   :  { %9217 = vst [vmem:[#allocation8_spill] sm:$0xff] %v6904_v12  ;;  %vm46_vm0 = vcmp.lt.s32.totalorder %v6904_v12, 2  ;;  %vm51_vm1 = vcmp.lt.s32.totalorder %v6909_v14, 96  ;;  %v6473_v19 = vld [vmem:[%s9184_s0 + $0x60] ss:$8 sps:$4 sm:$0xff]   ;;  %vm2940_vm2 = vcmask 1040384  }
   0x8   :  { %1196 = vmatpush1.bf16.msra.mxu0 %v6458_v4  ;;  %v64_v18 = vsel %vm46_vm0, %v5349_v17, %v6872_v0  ;;  %v6474_v21 = vld [vmem:[%s9184_s0 + $0x74] ss:$8 sps:$4 sm:$0xff]   ;;  %v6476_v23 = vld [vmem:[%s9184_s0 + $0x70] ss:$8 sps:$4 sm:$0xff]   ;;  %v6477_v24 = vld [vmem:[%s9184_s0 + $0x84] ss:$8 sps:$4 sm:$0xff]  }
   0x9   :  { %1197 = vmatprep.subr.bf16.mxu0 %v6459_v5  ;;  %v69_v20 = vsel %vm51_vm1, %v64_v18, %v6872_v0  ;;  %v6479_v25 = vld [vmem:[%s9184_s0 + $0x80] ss:$8 sps:$4 sm:$0xff]   ;;  %v6480_v26 = vld [vmem:[%s9184_s0 + $0x94] ss:$8 sps:$4 sm:$0xff]   ;;  %v6482_v27 = vld [vmem:[%s9184_s0 + $0x90] ss:$8 sps:$4 sm:$0xff]  }
   0xa   :  { %v6935_v22 = vpack.c.bf16 %v6872_v0, %v69_v20  ;;  %v6483_v28 = vld [vmem:[%s9184_s0 + $0xa4] ss:$8 sps:$4 sm:$0xff]   ;;  %v6485_v29 = vld [vmem:[%s9184_s0 + $0xa0] ss:$8 sps:$4 sm:$0xff]   ;;  %v6486_v30 = vld [vmem:[%s9184_s0 + $0xb4] ss:$8 sps:$4 sm:$0xff]  }
   0xb   :  { %v6488_v31 = vld [vmem:[%s9184_s0 + $0xb0] ss:$8 sps:$4 sm:$0xff]   ;;  %v6489_v32 = vld [vmem:[%s9184_s0 + $0xc4] ss:$8 sps:$4 sm:$0xff]   ;;  %v6491_v33 = vld [vmem:[%s9184_s0 + $0xc0] ss:$8 sps:$4 sm:$0xff]  }
   0xc   :  { %1198 = vmatpush1.bf16.msra.mxu0 %v6461_v6  ;;  %1225 = vmatprep.mubr.bf16.mxu0 %v6935_v22  ;;  %v6492_v34 = vld [vmem:[%s9184_s0 + $0xd4] ss:$8 sps:$4 sm:$0xff]   ;;  %v6494_v35 = vld [vmem:[%s9184_s0 + $0xd0] ss:$8 sps:$4 sm:$0xff]   ;;  %v6495_v36 = vld [vmem:[%s9184_s0 + $0xe4] ss:$8 sps:$4 sm:$0xff]  }
   0xd   :  { %1199 = vmatprep.subr.bf16.mxu0 %v6462_v7  ;;  %v42_v37 = vld [vmem:[%s9194_s10] sm:$0x3]  ;;  %v5350_v38 = vld [vmem:[%s9194_s10 + $0x4] sm:$0x3]  ;;  %v6498_v40 = vld [vmem:[%s9184_s0 + $0xf4] ss:$8 sps:$4 sm:$0xff]  }
   0xe   :  { %v6497_v39 = vld [vmem:[%s9184_s0 + $0xe0] ss:$8 sps:$4 sm:$0xff]   ;;  %v47_v41 = vsel %vm46_vm0, %v42_v37, %v6872_v0  ;;  %v82_v42 = vsel %vm46_vm0, %v5350_v38, %v6872_v0  ;;  %v6500_v43 = vld [vmem:[%s9184_s0 + $0xf0] ss:$8 sps:$4 sm:$0xff]   ;;  %v6503_v44 = vld [vmem:[%s9184_s0 + $0x104] ss:$8 sps:$4 sm:$0xff]  }
   0xf   :  { %v52_v45 = vsel %vm51_vm1, %v47_v41, %v6872_v0  ;;  %v87_v46 = vsel %vm51_vm1, %v82_v42, %v6872_v0  ;;  %v5351_v47 = vld [vmem:[%s9194_s10 + $0x6] sm:$0x3]  ;;  %v6501_v48 = vld [vmem:[%s9184_s0 + $0x100] ss:$8 sps:$4 sm:$0xff]   ;;  %v6506_v50 = vld [vmem:[%s9184_s0 + $0x114] ss:$8 sps:$4 sm:$0xff]  }
  0x10   :  { %1200 = vmatpush1.bf16.msra.mxu0 %v6464_v8  ;;  %v681_v49 = vpack.c.bf16 %v6872_v0, %v52_v45  ;;  %v7021_v51 = vpack.c.bf16 %v6872_v0, %v87_v46  ;;  %v6504_v52 = vld [vmem:[%s9184_s0 + $0x110] ss:$8 sps:$4 sm:$0xff]   ;;  %v100_v53 = vsel %vm46_vm0, %v5351_v47, %v6872_v0  ;;  %v6509_v54 = vld [vmem:[%s9184_s0 + $0x124] ss:$8 sps:$4 sm:$0xff]   ;;  %v5352_v56 = vld [vmem:[%s9194_s10 + $0x8] sm:$0x3] }
  0x11   :  { %1201 = vmatprep.subr.bf16.mxu0 %v6465_v10  ;;  %v105_v55 = vsel %vm51_vm1, %v100_v53, %v6872_v0  ;;  %v6507_v57 = vld [vmem:[%s9184_s0 + $0x120] ss:$8 sps:$4 sm:$0xff]   ;;  %v6512_v58 = vld [vmem:[%s9184_s0 + $0x134] ss:$8 sps:$4 sm:$0xff]   ;;  %v118_v60 = vsel %vm46_vm0, %v5352_v56, %v6872_v0  ;;  %v6510_v61 = vld [vmem:[%s9184_s0 + $0x130] ss:$8 sps:$4 sm:$0xff]  }
  0x12   :  { %v7046_v59 = vpack.c.bf16 %v6872_v0, %v105_v55  ;;  %v6515_v62 = vld [vmem:[%s9184_s0 + $0x144] ss:$8 sps:$4 sm:$0xff]   ;;  %v123_v63 = vsel %vm51_vm1, %v118_v60, %v6872_v0  ;;  %v5353_v1 = vld [vmem:[%s9194_s10 + $0xa] sm:$0x3]  ;;  %v6518_v3 = vld [vmem:[%s9184_s0 + $0x154] ss:$8 sps:$4 sm:$0xff]  }
  0x13   :  { %v6513_v2 = vld [vmem:[%s9184_s0 + $0x140] ss:$8 sps:$4 sm:$0xff]   ;;  %v7072_v4 = vpack.c.bf16 %v6872_v0, %v123_v63  ;;  %v136_v5 = vsel %vm46_vm0, %v5353_v1, %v6872_v0  ;;  %v6516_v6 = vld [vmem:[%s9184_s0 + $0x150] ss:$8 sps:$4 sm:$0xff]   ;;  %v6521_v7 = vld [vmem:[%s9184_s0 + $0x164] ss:$8 sps:$4 sm:$0xff]  }
  0x14   :  { %1202 = vmatpush1.bf16.msra.mxu0 %v6467_v11  ;;  %v141_v8 = vsel %vm51_vm1, %v136_v5, %v6872_v0  ;;  %v5354_v9 = vld [vmem:[%s9194_s10 + $0xc] sm:$0x3]  ;;  %v6519_v10 = vld [vmem:[%s9184_s0 + $0x160] ss:$8 sps:$4 sm:$0xff]   ;;  %v6524_v11 = vld [vmem:[%s9184_s0 + $0x174] ss:$8 sps:$4 sm:$0xff]  }
  0x15   :  { %1203 = vmatprep.subr.bf16.mxu0 %v6468_v13  ;;  %v7098_v13 = vpack.c.bf16 %v6872_v0, %v141_v8  ;;  %v6527_v17 = vld [vmem:[%s9184_s0 + $0x184] ss:$8 sps:$4 sm:$0xff]   ;;  %v6525_v20 = vld [vmem:[%s9184_s0 + $0x180] ss:$8 sps:$4 sm:$0xff]   ;;  %v5358_v42 = vld [vmem:[%s9194_s10 + $0x14] sm:$0x3] }
  0x16   :  { %v5359_v46 = vld [vmem:[%s9194_s10 + $0x16] sm:$0x3]  ;;  %v5360_v53 = vld [vmem:[%s9194_s10 + $0x18] sm:$0x3]  ;;  %v5362_v1 = vld [vmem:[%s9194_s10 + $0x1c] sm:$0x3] }
  0x17   :  { %v262_v55 = vsel %vm46_vm0, %v5360_v53, %v6872_v0  ;;  %v5371_v53 = vld [vmem:[%s9194_s10 + $0x2e] sm:$0x3]  ;;  %vm2592_vm3 = vcmask 998400   ;;  %vm2909_vm4 = vcmask 277504   ;;  %s6796_s17 = smov 112   ;;  %vm4426_vm5 = vcmask 916480  }
  0x18   :  { %1204 = vmatpush1.bf16.msra.mxu0 %v6470_v15  ;;  %v154_v15 = vsel %vm46_vm0, %v5354_v9, %v6872_v0  ;;  %v267_v56 = vsel %vm51_vm1, %v262_v55, %v6872_v0  ;;  %v7284_v9 = vld [vmem:[%s9184_s0 + $0x200] ss:$8 sps:$4 sm:$0xff]   ;;  %vm4478_vm6 = vcmask 130048   ;;  %vm6798_vm7 = vmmov 0  }
  0x19   :  { %1205 = vmatprep.subr.bf16.mxu0 %v6471_v16  ;;  %v6522_v16 = vld [vmem:[%s9184_s0 + $0x170] ss:$8 sps:$4 sm:$0xff]   ;;  %v159_v18 = vsel %vm51_vm1, %v154_v15, %v6872_v0  ;;  %v5364_v15 = vld [vmem:[%s9194_s10 + $0x20] sm:$0x3] }
  0x1c   :  { %1206 = vmatpush1.bf16.msra.mxu0 %v6473_v19  ;;  %v5355_v19 = vld [vmem:[%s9194_s10 + $0xe] sm:$0x3] }
  0x1d   :  { %1207 = vmatprep.subr.bf16.mxu0 %v6474_v21  ;;  %v6530_v21 = vld [vmem:[%s9184_s0 + $0x194] ss:$8 sps:$4 sm:$0xff]  }
  0x20   :  { %1208 = vmatpush1.bf16.msra.mxu0 %v6476_v23  ;;  %v172_v23 = vsel %vm46_vm0, %v5355_v19, %v6872_v0  ;;  %v5365_v19 = vld [vmem:[%s9194_s10 + $0x22] sm:$0x3] }
  0x21   :  { %1209 = vmatprep.subr.bf16.mxu0 %v6477_v24  ;;  %v6528_v24 = vld [vmem:[%s9184_s0 + $0x190] ss:$8 sps:$4 sm:$0xff]  }
  0x24   :  { %1210 = vmatpush1.bf16.msra.mxu0 %v6479_v25  ;;  %v6533_v25 = vld [vmem:[%s9184_s0 + $0x1a4] ss:$8 sps:$4 sm:$0xff]  }
  0x25   :  { %1211 = vmatprep.subr.bf16.mxu0 %v6480_v26  ;;  %v177_v26 = vsel %vm51_vm1, %v172_v23, %v6872_v0 }
  0x28   :  { %1212 = vmatpush1.bf16.msra.mxu0 %v6482_v27  ;;  %v5356_v27 = vld [vmem:[%s9194_s10 + $0x10] sm:$0x3] }
  0x29   :  { %1213 = vmatprep.subr.bf16.mxu0 %v6483_v28  ;;  %v6531_v28 = vld [vmem:[%s9184_s0 + $0x1a0] ss:$8 sps:$4 sm:$0xff]  }
  0x2c   :  { %1214 = vmatpush1.bf16.msra.mxu0 %v6485_v29  ;;  %v6536_v29 = vld [vmem:[%s9184_s0 + $0x1b4] ss:$8 sps:$4 sm:$0xff]  }
  0x2d   :  { %1215 = vmatprep.subr.bf16.mxu0 %v6486_v30  ;;  %v7150_v30 = vpack.c.bf16 %v6872_v0, %v177_v26 }
  0x30   :  { %1216 = vmatpush1.bf16.msra.mxu0 %v6488_v31  ;;  %v190_v31 = vsel %vm46_vm0, %v5356_v27, %v6872_v0  ;;  %v7335_v27 = vld [vmem:[%s9184_s0 + $0x210] ss:$8 sps:$4 sm:$0xff]  }
  0x31   :  { %1217 = vmatprep.subr.bf16.mxu0 %v6489_v32  ;;  %v6534_v32 = vld [vmem:[%s9184_s0 + $0x1b0] ss:$8 sps:$4 sm:$0xff]  }
  0x34   :  { %1218 = vmatpush1.bf16.msra.mxu0 %v6491_v33  ;;  %v6539_v33 = vld [vmem:[%s9184_s0 + $0x1c4] ss:$8 sps:$4 sm:$0xff]  }
  0x35   :  { %1219 = vmatprep.subr.bf16.mxu0 %v6492_v34  ;;  %v195_v34 = vsel %vm51_vm1, %v190_v31, %v6872_v0  ;;  %v5367_v31 = vld [vmem:[%s9194_s10 + $0x26] sm:$0x3] }
  0x36   :  { %v7173_v37 = vpack.c.bf16 %v6872_v0, %v195_v34 }
  0x38   :  { %1220 = vmatpush1.bf16.msra.mxu0 %v6494_v35  ;;  %v5357_v35 = vld [vmem:[%s9194_s10 + $0x12] sm:$0x3] }
  0x39   :  { %1221 = vmatprep.subr.bf16.mxu0 %v6495_v36  ;;  %v6537_v36 = vld [vmem:[%s9184_s0 + $0x1c0] ss:$8 sps:$4 sm:$0xff]   ;;  %v208_v38 = vsel %vm46_vm0, %v5357_v35, %v6872_v0 }
  0x3a   :  { %v213_v41 = vsel %vm51_vm1, %v208_v38, %v6872_v0  ;;  %v5368_v35 = vld [vmem:[%s9194_s10 + $0x28] sm:$0x3] }
  0x3b   :  { %v406_v38 = vsel %vm46_vm0, %v5368_v35, %v6872_v0  ;;  %v6561_v35 = vld [vmem:[%s9184_s0 + $0x240] ss:$8 sps:$4 sm:$0xff]  }
  0x3c   :  { %1222 = vmatpush1.bf16.msra.mxu0 %v6497_v39  ;;  %v6540_v39 = vld [vmem:[%s9184_s0 + $0x1d0] ss:$8 sps:$4 sm:$0xff]  }
  0x3d   :  { %1223 = vmatprep.subr.bf16.mxu0 %v6498_v40  ;;  %v6542_v40 = vld [vmem:[%s9184_s0 + $0x1d4] ss:$8 sps:$4 sm:$0xff]  }
  0x40   :  { %1224 = vmatpush1.bf16.msra.mxu0 %v6500_v43  ;;  %v7193_v43 = vpack.c.bf16 %v6872_v0, %v213_v41 }
  0x41   :  { %1506 = vmatprep.subr.bf16.mxu0 %v6503_v44  ;;  %v226_v44 = vsel %vm46_vm0, %v5358_v42, %v6872_v0 }
  0x42   :  { %v231_v45 = vsel %vm51_vm1, %v226_v44, %v6872_v0 }
  0x43   :  { %1226 = vmatmul.mubr.bf16.vlgmr.msra.gmra.mrb[0].mxu0 %v681_v49  ;;  %v7207_v47 = vpack.c.bf16 %v6872_v0, %v231_v45  ;;  %v6543_v49 = vld [vmem:[%s9184_s0 + $0x1e0] ss:$8 sps:$4 sm:$0xff]   ;;  %v5370_v45 = vld [vmem:[%s9194_s10 + $0x2c] sm:$0x3] }
  0x44   :  { %1507 = vmatpush1.bf16.msra.mxu0 %v6501_v48  ;;  %1235 = vmatprep.mubr.bf16.mxu0 %v7021_v51  ;;  %v244_v48 = vsel %vm46_vm0, %v5359_v46, %v6872_v0 }
  0x45   :  { %1508 = vmatprep.subr.bf16.mxu0 %v6506_v50  ;;  %v6545_v50 = vld [vmem:[%s9184_s0 + $0x1e4] ss:$8 sps:$4 sm:$0xff]  }
  0x48   :  { %1509 = vmatpush1.bf16.msra.mxu0 %v6504_v52  ;;  %v249_v52 = vsel %vm51_vm1, %v244_v48, %v6872_v0  ;;  %v442_v48 = vsel %vm46_vm0, %v5370_v45, %v6872_v0 }
  0x49   :  { %1510 = vmatprep.subr.bf16.mxu0 %v6509_v54  ;;  %v7227_v54 = vpack.c.bf16 %v6872_v0, %v249_v52  ;;  %v447_v52 = vsel %vm51_vm1, %v442_v48, %v6872_v0 }
  0x4a   :  { %v7417_v55 = vpack.c.bf16 %v6872_v0, %v447_v52 }
  0x4b   :  { %1236 = vmatmul.mubr.bf16.gmra.mrb[4].mxu0 %v6935_v22  ;;  %v7124_v22 = vpack.c.bf16 %v6872_v0, %v159_v18 }
  0x4c   :  { %1245 = vmatprep.mubr.bf16.mxu0 %v7046_v59  ;;  %1511 = vmatpush1.bf16.msra.mxu0 %v6507_v57  ;;  %v5361_v57 = vld [vmem:[%s9194_s10 + $0x1a] sm:$0x3] }
  0x4d   :  { %1512 = vmatprep.subr.bf16.mxu0 %v6512_v58  ;;  %v7241_v58 = vpack.c.bf16 %v6872_v0, %v267_v56  ;;  %v280_v60 = vsel %vm46_vm0, %v5361_v57, %v6872_v0  ;;  %v460_v56 = vsel %vm46_vm0, %v5371_v53, %v6872_v0 }
  0x4e   :  { %v285_v63 = vsel %vm51_vm1, %v280_v60, %v6872_v0  ;;  %v465_v57 = vsel %vm51_vm1, %v460_v56, %v6872_v0  ;;  %v5372_v60 = vld [vmem:[%s9194_s10 + $0x30] sm:$0x3]  ;;  %v5379_v56 = vld [vmem:[%s9194_s10 + $0x3e] sm:$0x3] }
  0x50   :  { %1513 = vmatpush1.bf16.msra.mxu0 %v6510_v61  ;;  %v6546_v61 = vld [vmem:[%s9184_s0 + $0x1f0] ss:$8 sps:$4 sm:$0xff]  }
  0x51   :  { %1514 = vmatprep.subr.bf16.mxu0 %v6515_v62  ;;  %v6548_v62 = vld [vmem:[%s9184_s0 + $0x1f4] ss:$8 sps:$4 sm:$0xff]  }
  0x53   :  { %1246 = vmatmul.mubr.bf16.gmra.mrb[8].mxu0 %v7021_v51 }
  0x54   :  { %1255 = vmatprep.mubr.bf16.mxu0 %v7072_v4  ;;  %1515 = vmatpush1.bf16.msra.mxu0 %v6513_v2  ;;  %v7261_v2 = vpack.c.bf16 %v6872_v0, %v285_v63 }
  0x55   :  { %1516 = vmatprep.subr.bf16.mxu0 %v6518_v3  ;;  %v298_v3 = vsel %vm46_vm0, %v5362_v1, %v6872_v0  ;;  %v5373_v1 = vld [vmem:[%s9194_s10 + $0x32] sm:$0x3] }
  0x56   :  { %v303_v5 = vsel %vm51_vm1, %v298_v3, %v6872_v0 }
  0x58   :  { %1517 = vmatpush1.bf16.msra.mxu0 %v6516_v6  ;;  %v5363_v6 = vld [vmem:[%s9194_s10 + $0x1e] sm:$0x3] }
  0x59   :  { %1518 = vmatprep.subr.bf16.mxu0 %v6521_v7  ;;  %v7275_v7 = vpack.c.bf16 %v6872_v0, %v303_v5  ;;  %v316_v8 = vsel %vm46_vm0, %v5363_v6, %v6872_v0  ;;  %v496_v5 = vsel %vm46_vm0, %v5373_v1, %v6872_v0  ;;  %v6558_v6 = vld [vmem:[%s9184_s0 + $0x230] ss:$8 sps:$4 sm:$0xff]  }
  0x5b   :  { %1256 = vmatmul.mubr.bf16.gmra.mrb[12].mxu0 %v7046_v59 }
  0x5c   :  { %1265 = vmatprep.mubr.bf16.mxu0 %v7098_v13  ;;  %1519 = vmatpush1.bf16.msra.mxu0 %v6519_v10  ;;  %v6551_v10 = vld [vmem:[%s9184_s0 + $0x204] ss:$8 sps:$4 sm:$0xff]  }
  0x5d   :  { %1520 = vmatprep.subr.bf16.mxu0 %v6524_v11  ;;  %v321_v11 = vsel %vm51_vm1, %v316_v8, %v6872_v0  ;;  %5908 = vmatprep.subr.bf16.mxu1 %v6551_v10  ;;  %v6560_v8 = vld [vmem:[%s9184_s0 + $0x234] ss:$8 sps:$4 sm:$0xff]  }
  0x5e   :  { %5916 = vmatpush1.bf16.msra.mxu1 %v7284_v9 }
  0x60   :  { %1521 = vmatpush1.bf16.msra.mxu0 %v6522_v16  ;;  %v7298_v16 = vpack.c.bf16 %v6872_v0, %v321_v11  ;;  %v5374_v11 = vld [vmem:[%s9194_s10 + $0x34] sm:$0x3] }
  0x61   :  { %1522 = vmatprep.subr.bf16.mxu0 %v6527_v17  ;;  %v334_v17 = vsel %vm46_vm0, %v5364_v15, %v6872_v0 }
  0x62   :  { %v339_v18 = vsel %vm51_vm1, %v334_v17, %v6872_v0  ;;  %v514_v17 = vsel %vm46_vm0, %v5374_v11, %v6872_v0 }
  0x63   :  { %1266 = vmatmul.mubr.bf16.gmra.mrb[16].mxu0 %v7072_v4 }
  0x64   :  { %1275 = vmatprep.mubr.bf16.mxu0 %v7124_v22  ;;  %1523 = vmatpush1.bf16.msra.mxu0 %v6525_v20  ;;  %v7312_v20 = vpack.c.bf16 %v6872_v0, %v339_v18  ;;  %v519_v18 = vsel %vm51_vm1, %v514_v17, %v6872_v0 }
  0x65   :  { %1524 = vmatprep.subr.bf16.mxu0 %v6530_v21  ;;  %v352_v21 = vsel %vm46_vm0, %v5365_v19, %v6872_v0  ;;  %v5375_v19 = vld [vmem:[%s9194_s10 + $0x36] sm:$0x3] }
  0x66   :  { %v357_v23 = vsel %vm51_vm1, %v352_v21, %v6872_v0  ;;  %v7479_v21 = vpack.c.bf16 %v6872_v0, %v519_v18 }
  0x68   :  { %1525 = vmatpush1.bf16.msra.mxu0 %v6528_v24  ;;  %v5366_v24 = vld [vmem:[%s9194_s10 + $0x24] sm:$0x3] }
  0x69   :  { %1526 = vmatprep.subr.bf16.mxu0 %v6533_v25  ;;  %v7326_v25 = vpack.c.bf16 %v6872_v0, %v357_v23  ;;  %v370_v26 = vsel %vm46_vm0, %v5366_v24, %v6872_v0  ;;  %v532_v23 = vsel %vm46_vm0, %v5375_v19, %v6872_v0  ;;  %v9199_v19 = vsub.s32 0, %v6904_v12 }
  0x6a   :  { %v537_v24 = vsel %vm51_vm1, %v532_v23, %v6872_v0 }
  0x6b   :  { %1276 = vmatmul.mubr.bf16.gmra.mrb[20].mxu0 %v7098_v13 }
  0x6c   :  { %1285 = vmatprep.mubr.bf16.mxu0 %v7150_v30  ;;  %1527 = vmatpush1.bf16.msra.mxu0 %v6531_v28  ;;  %v7340_v28 = vld [vmem:[%s9184_s0 + $0x214] ss:$8 sps:$4 sm:$0xff]  }
  0x6d   :  { %1528 = vmatprep.subr.bf16.mxu0 %v6536_v29  ;;  %v375_v29 = vsel %vm51_vm1, %v370_v26, %v6872_v0  ;;  %5909 = vmatprep.subr.bf16.mxu1 %v7340_v28  ;;  %v5376_v26 = vld [vmem:[%s9194_s10 + $0x38] sm:$0x3] }
  0x6e   :  { %5917 = vmatpush1.bf16.msra.mxu1 %v7335_v27 }
  0x70   :  { %1529 = vmatpush1.bf16.msra.mxu0 %v6534_v32  ;;  %v7352_v32 = vpack.c.bf16 %v6872_v0, %v375_v29  ;;  %v7493_v29 = vpack.c.bf16 %v6872_v0, %v537_v24 }
  0x71   :  { %1530 = vmatprep.subr.bf16.mxu0 %v6539_v33  ;;  %v388_v33 = vsel %vm46_vm0, %v5367_v31, %v6872_v0  ;;  %v550_v31 = vsel %vm46_vm0, %v5376_v26, %v6872_v0  ;;  %v2132_v26 = vld [vmem:[%s9185_s1] sm:$0x3]  ;;  %s6795_s1 = smov 122  }
  0x72   :  { %v393_v34 = vsel %vm51_vm1, %v388_v33, %v6872_v0  ;;  %v555_v33 = vsel %vm51_vm1, %v550_v31, %v6872_v0 }
  0x73   :  { %1286 = vmatmul.mubr.bf16.gmra.mrb[24].mxu0 %v7124_v22 }
  0x74   :  { %1295 = vmatprep.mubr.bf16.mxu0 %v7173_v37  ;;  %1531 = vmatpush1.bf16.msra.mxu0 %v6537_v36  ;;  %v7366_v36 = vpack.c.bf16 %v6872_v0, %v393_v34  ;;  %v7504_v34 = vpack.c.bf16 %v6872_v0, %v555_v33  ;;  %v7712_v33 = vrot.slane %v2132_v26, %v9199_v19 }
  0x75   :  { %1532 = vmatprep.subr.bf16.mxu0 %v6542_v40  ;;  %v5369_v40 = vld [vmem:[%s9194_s10 + $0x2a] sm:$0x3] }
  0x76   :  { %v424_v42 = vsel %vm46_vm0, %v5369_v40, %v6872_v0  ;;  %v6566_v40 = vld [vmem:[%s9184_s0 + $0x254] ss:$8 sps:$4 sm:$0xff]  }
  0x77   :  { %v429_v44 = vsel %vm51_vm1, %v424_v42, %v6872_v0  ;;  %v5377_v42 = vld [vmem:[%s9194_s10 + $0x3a] sm:$0x3] }
  0x78   :  { %1533 = vmatpush1.bf16.msra.mxu0 %v6540_v39  ;;  %v411_v39 = vsel %vm51_vm1, %v406_v38, %v6872_v0  ;;  %v7394_v46 = vpack.c.bf16 %v6872_v0, %v429_v44  ;;  %v6563_v38 = vld [vmem:[%s9184_s0 + $0x244] ss:$8 sps:$4 sm:$0xff]   ;;  %v568_v44 = vsel %vm46_vm0, %v5377_v42, %v6872_v0 }
  0x79   :  { %1534 = vmatprep.subr.bf16.mxu0 %v6545_v50  ;;  %v7380_v41 = vpack.c.bf16 %v6872_v0, %v411_v39  ;;  %v6557_v50 = vld [vmem:[%s9184_s0 + $0x224] ss:$8 sps:$4 sm:$0xff]   ;;  %v6564_v39 = vld [vmem:[%s9184_s0 + $0x250] ss:$8 sps:$4 sm:$0xff]   ;;  %v573_v45 = vsel %vm51_vm1, %v568_v44, %v6872_v0 }
  0x7a   :  { %5910 = vmatprep.subr.bf16.mxu1 %v6557_v50  ;;  %v710_v48 = vpack.c.bf16 %v6872_v0, %v573_v45 }
  0x7b   :  { %1296 = vmatmul.mubr.bf16.gmra.mrb[28].mxu0 %v7150_v30 }
  0x7c   :  { %1305 = vmatprep.mubr.bf16.mxu0 %v7193_v43  ;;  %1535 = vmatpush1.bf16.msra.mxu0 %v6543_v49  ;;  %v7403_v49 = vld [vmem:[%s9184_s0 + $0x220] ss:$8 sps:$4 sm:$0xff]  }
  0x7d   :  { %1536 = vmatprep.subr.bf16.mxu0 %v6548_v62  ;;  %5918 = vmatpush1.bf16.msra.mxu1 %v7403_v49  ;;  %v478_v62 = vsel %vm46_vm0, %v5372_v60, %v6872_v0 }
  0x7e   :  { %v483_v63 = vsel %vm51_vm1, %v478_v62, %v6872_v0  ;;  %5911 = vmatprep.subr.bf16.mxu1 %v6560_v8 }
  0x7f   :  { %v7445_v3 = vpack.c.bf16 %v6872_v0, %v483_v63 }
  0x80   :  { %1537 = vmatpush1.bf16.msra.mxu0 %v6546_v61  ;;  %v7431_v61 = vpack.c.bf16 %v6872_v0, %v465_v57  ;;  %v604_v57 = vsel %vm46_vm0, %v5379_v56, %v6872_v0 }
  0x81   :  { %1819 = vmatprep.subr.bf16.mxu0 %v6551_v10  ;;  %v501_v10 = vsel %vm51_vm1, %v496_v5, %v6872_v0  ;;  %5919 = vmatpush1.bf16.msra.mxu1 %v6558_v6  ;;  %v609_v60 = vsel %vm51_vm1, %v604_v57, %v6872_v0 }
  0x82   :  { %v7465_v15 = vpack.c.bf16 %v6872_v0, %v501_v10  ;;  %5912 = vmatprep.subr.bf16.mxu1 %v6563_v38  ;;  %v712_v62 = vpack.c.bf16 %v6872_v0, %v609_v60 }
  0x83   :  { %1306 = vmatmul.mubr.bf16.gmra.mrb[32].mxu0 %v7173_v37 }
  0x84   :  { %1315 = vmatprep.mubr.bf16.mxu0 %v7207_v47 }
  0x85   :  { %5920 = vmatpush1.bf16.msra.mxu1 %v6561_v35 }
  0x86   :  { %5913 = vmatprep.subr.bf16.mxu1 %v6566_v40 }
  0x89   :  { %5921 = vmatpush1.bf16.msra.mxu1 %v6564_v39 }
  0x8b   :  { %1316 = vmatmul.mubr.bf16.gmra.mrb[36].mxu0 %v7193_v43 }
  0x8c   :  { %1325 = vmatprep.mubr.bf16.mxu0 %v7227_v54 }
  0x93   :  { %1326 = vmatmul.mubr.bf16.gmra.mrb[40].mxu0 %v7207_v47 }
  0x94   :  { %1335 = vmatprep.mubr.bf16.mxu0 %v7241_v58 }
  0x9b   :  { %1336 = vmatmul.mubr.bf16.gmra.mrb[44].mxu0 %v7227_v54 }
  0x9c   :  { %1345 = vmatprep.mubr.bf16.mxu0 %v7261_v2 }
  0xa3   :  { %1346 = vmatmul.mubr.bf16.gmra.mrb[48].mxu0 %v7241_v58 }
  0xa4   :  { %1355 = vmatprep.mubr.bf16.mxu0 %v7275_v7 }
  0xab   :  { %1356 = vmatmul.mubr.bf16.gmra.mrb[52].mxu0 %v7261_v2 }
  0xac   :  { %1365 = vmatprep.mubr.bf16.mxu0 %v7298_v16 }
  0xb3   :  { %1366 = vmatmul.mubr.bf16.gmra.mrb[56].mxu0 %v7275_v7 }
  0xb4   :  { %1375 = vmatprep.mubr.bf16.mxu0 %v7312_v20 }
  0xbb   :  { %1376 = vmatmul.mubr.bf16.gmra.mrb[60].mxu0 %v7298_v16 }
  0xbc   :  { %1385 = vmatprep.mubr.bf16.mxu0 %v7326_v25 }
  0xc3   :  { %1386 = vmatmul.mubr.bf16.gmra.mrb[64].mxu0 %v7312_v20 }
  0xc4   :  { %1395 = vmatprep.mubr.bf16.mxu0 %v7352_v32 }
  0xcb   :  { %1396 = vmatmul.mubr.bf16.gmra.mrb[68].mxu0 %v7326_v25 }
  0xcc   :  { %1405 = vmatprep.mubr.bf16.mxu0 %v7366_v36 }
  0xd3   :  { %1406 = vmatmul.mubr.bf16.gmra.mrb[72].mxu0 %v7352_v32 }
  0xd4   :  { %1415 = vmatprep.mubr.bf16.mxu0 %v7380_v41 }
  0xdb   :  { %1416 = vmatmul.mubr.bf16.gmra.mrb[76].mxu0 %v7366_v36 }
  0xdc   :  { %1425 = vmatprep.mubr.bf16.mxu0 %v7394_v46 }
  0xe3   :  { %1426 = vmatmul.mubr.bf16.gmra.mrb[80].mxu0 %v7380_v41 }
  0xe4   :  { %1435 = vmatprep.mubr.bf16.mxu0 %v7417_v55 }
  0xeb   :  { %1436 = vmatmul.mubr.bf16.gmra.mrb[84].mxu0 %v7394_v46 }
  0xec   :  { %1445 = vmatprep.mubr.bf16.mxu0 %v7431_v61 }
  0xf3   :  { %1446 = vmatmul.mubr.bf16.gmra.mrb[88].mxu0 %v7417_v55 }
  0xf4   :  { %1455 = vmatprep.mubr.bf16.mxu0 %v7445_v3 }
  0xfb   :  { %1456 = vmatmul.mubr.bf16.gmra.mrb[92].mxu0 %v7431_v61 }
  0xfc   :  { %1465 = vmatprep.mubr.bf16.mxu0 %v7465_v15 }
 0x103   :  { %1466 = vmatmul.mubr.bf16.gmra.mrb[96].mxu0 %v7445_v3 }
 0x104   :  { %1475 = vmatprep.mubr.bf16.mxu0 %v7479_v21 }
 0x10b   :  { %1476 = vmatmul.mubr.bf16.gmra.mrb[100].mxu0 %v7465_v15 }
 0x10c   :  { %1485 = vmatprep.mubr.bf16.mxu0 %v7493_v29 }
 0x113   :  { %1486 = vmatmul.mubr.bf16.gmra.mrb[104].mxu0 %v7479_v21 }
 0x114   :  { %1495 = vmatprep.mubr.bf16.mxu0 %v7504_v34 }
 0x11b   :  { %1496 = vmatmul.mubr.bf16.gmra.mrb[108].mxu0 %v7493_v29 }
 0x11c   :  { %1538 = vmatprep.mubr.bf16.mxu0 %v7046_v59 }
 0x123   :  { %1539 = vmatmul.mubr.bf16.vlgmr.msra.gmra.mrb[0].mxu0 %v7021_v51  ;;  %v6567_v51 = vld [vmem:[%s9184_s0 + $0x260] ss:$8 sps:$4 sm:$0xff]  }
 0x124   :  { %1820 = vmatpush1.bf16.msra.mxu0 %v7284_v9  ;;  %1548 = vmatprep.mubr.bf16.mxu0 %v7072_v4  ;;  %v6570_v9 = vld [vmem:[%s9184_s0 + $0x274] ss:$8 sps:$4 sm:$0xff]  }
 0x125   :  { %1821 = vmatprep.subr.bf16.mxu0 %v7340_v28  ;;  %v9200_v28 = vmov 0  }
 0x126   :  { %2081 = vmatprep.mubr.bf16.mxu1 %v9200_v28 }
 0x128   :  { %1822 = vmatpush1.bf16.msra.mxu0 %v7335_v27  ;;  %v6572_v27 = vld [vmem:[%s9184_s0 + $0x270] ss:$8 sps:$4 sm:$0xff]  }
 0x129   :  { %1823 = vmatprep.subr.bf16.mxu0 %v6557_v50 }
 0x12b   :  { %1549 = vmatmul.mubr.bf16.gmra.mrb[4].mxu0 %v7046_v59  ;;  %v6569_v59 = vld [vmem:[%s9184_s0 + $0x264] ss:$8 sps:$4 sm:$0xff]  }
 0x12c   :  { %1558 = vmatprep.mubr.bf16.mxu0 %v7098_v13  ;;  %1824 = vmatpush1.bf16.msra.mxu0 %v7403_v49  ;;  %v5378_v49 = vld [vmem:[%s9194_s10 + $0x3c] sm:$0x3] }
 0x12d   :  { %1825 = vmatprep.subr.bf16.mxu0 %v6560_v8  ;;  %5914 = vmatprep.subr.bf16.mxu1 %v6569_v59  ;;  %v586_v50 = vsel %vm46_vm0, %v5378_v49, %v6872_v0 }
 0x12e   :  { %5922 = vmatpush1.bf16.msra.mxu1 %v6567_v51  ;;  %v591_v52 = vsel %vm51_vm1, %v586_v50, %v6872_v0 }
 0x12f   :  { %5915 = vmatprep.subr.bf16.mxu1 %v6570_v9  ;;  %v711_v53 = vpack.c.bf16 %v6872_v0, %v591_v52 }
 0x130   :  { %1826 = vmatpush1.bf16.msra.mxu0 %v6558_v6 }
 0x131   :  { %1827 = vmatprep.subr.bf16.mxu0 %v6563_v38 }
 0x132   :  { %5923 = vmatpush1.bf16.msra.mxu1 %v6572_v27 }
 0x133   :  { %1559 = vmatmul.mubr.bf16.gmra.mrb[8].mxu0 %v7072_v4 }
 0x134   :  { %1568 = vmatprep.mubr.bf16.mxu0 %v7124_v22  ;;  %1828 = vmatpush1.bf16.msra.mxu0 %v6561_v35 }
 0x135   :  { %1829 = vmatprep.subr.bf16.mxu0 %v6566_v40  ;;  %2082 = vmatmul.mubr.bf16.vlgmr.msra.gmra.mrb[0].mxu1 %v7493_v29 }
 0x136   :  { %2091 = vmatprep.mubr.bf16.mxu1 %v9200_v28 }
 0x138   :  { %1830 = vmatpush1.bf16.msra.mxu0 %v6564_v39 }
 0x139   :  { %1831 = vmatprep.subr.bf16.mxu0 %v6569_v59 }
 0x13b   :  { %1569 = vmatmul.mubr.bf16.gmra.mrb[12].mxu0 %v7098_v13 }
 0x13c   :  { %1578 = vmatprep.mubr.bf16.mxu0 %v7150_v30  ;;  %1832 = vmatpush1.bf16.msra.mxu0 %v6567_v51 }
 0x13d   :  { %1833 = vmatprep.subr.bf16.mxu0 %v6570_v9  ;;  %2092 = vmatmul.mubr.bf16.gmra.mrb[4].mxu1 %v7504_v34 }
 0x13e   :  { %2101 = vmatprep.mubr.bf16.mxu1 %v9200_v28 }
 0x140   :  { %1834 = vmatpush1.bf16.msra.mxu0 %v6572_v27 }
 0x143   :  { %1579 = vmatmul.mubr.bf16.gmra.mrb[16].mxu0 %v7124_v22 }
 0x144   :  { %1588 = vmatprep.mubr.bf16.mxu0 %v7173_v37 }
 0x145   :  { %2102 = vmatmul.mubr.bf16.gmra.mrb[8].mxu1 %v710_v48 }
 0x146   :  { %2111 = vmatprep.mubr.bf16.mxu1 %v9200_v28 }
 0x14b   :  { %1589 = vmatmul.mubr.bf16.gmra.mrb[20].mxu0 %v7150_v30 }
 0x14c   :  { %1598 = vmatprep.mubr.bf16.mxu0 %v7193_v43 }
 0x14d   :  { %2112 = vmatmul.mubr.bf16.gmra.mrb[12].mxu1 %v711_v53 }
 0x14e   :  { %2121 = vmatprep.mubr.bf16.mxu1 %v9200_v28 }
 0x153   :  { %1599 = vmatmul.mubr.bf16.gmra.mrb[24].mxu0 %v7173_v37 }
 0x154   :  { %1608 = vmatprep.mubr.bf16.mxu0 %v7207_v47 }
 0x155   :  { %2122 = vmatmul.mubr.bf16.gmra.mrb[16].mxu1 %v712_v62 }
 0x15b   :  { %1609 = vmatmul.mubr.bf16.gmra.mrb[28].mxu0 %v7193_v43 }
 0x15c   :  { %1618 = vmatprep.mubr.bf16.mxu0 %v7227_v54 }
 0x163   :  { %1619 = vmatmul.mubr.bf16.gmra.mrb[32].mxu0 %v7207_v47 }
 0x164   :  { %1628 = vmatprep.mubr.bf16.mxu0 %v7241_v58 }
 0x16b   :  { %1629 = vmatmul.mubr.bf16.gmra.mrb[36].mxu0 %v7227_v54 }
 0x16c   :  { %1638 = vmatprep.mubr.bf16.mxu0 %v7261_v2 }
 0x173   :  { %1639 = vmatmul.mubr.bf16.gmra.mrb[40].mxu0 %v7241_v58 }
 0x174   :  { %1648 = vmatprep.mubr.bf16.mxu0 %v7275_v7 }
 0x17b   :  { %1649 = vmatmul.mubr.bf16.gmra.mrb[44].mxu0 %v7261_v2 }
 0x17c   :  { %1658 = vmatprep.mubr.bf16.mxu0 %v7298_v16 }
 0x183   :  { %1659 = vmatmul.mubr.bf16.gmra.mrb[48].mxu0 %v7275_v7 }
 0x184   :  { %1668 = vmatprep.mubr.bf16.mxu0 %v7312_v20 }
 0x18b   :  { %1669 = vmatmul.mubr.bf16.gmra.mrb[52].mxu0 %v7298_v16 }
 0x18c   :  { %1678 = vmatprep.mubr.bf16.mxu0 %v7326_v25 }
 0x193   :  { %1679 = vmatmul.mubr.bf16.gmra.mrb[56].mxu0 %v7312_v20 }
 0x194   :  { %1688 = vmatprep.mubr.bf16.mxu0 %v7352_v32 }
 0x19b   :  { %1689 = vmatmul.mubr.bf16.gmra.mrb[60].mxu0 %v7326_v25 }
 0x19c   :  { %1698 = vmatprep.mubr.bf16.mxu0 %v7366_v36 }
 0x1a3   :  { %1699 = vmatmul.mubr.bf16.gmra.mrb[64].mxu0 %v7352_v32 }
 0x1a4   :  { %1708 = vmatprep.mubr.bf16.mxu0 %v7380_v41 }
 0x1ab   :  { %1709 = vmatmul.mubr.bf16.gmra.mrb[68].mxu0 %v7366_v36 }
 0x1ac   :  { %1718 = vmatprep.mubr.bf16.mxu0 %v7394_v46 }
 0x1b3   :  { %1719 = vmatmul.mubr.bf16.gmra.mrb[72].mxu0 %v7380_v41 }
 0x1b4   :  { %1728 = vmatprep.mubr.bf16.mxu0 %v7417_v55 }
 0x1bb   :  { %1729 = vmatmul.mubr.bf16.gmra.mrb[76].mxu0 %v7394_v46 }
 0x1bc   :  { %1738 = vmatprep.mubr.bf16.mxu0 %v7431_v61 }
 0x1c3   :  { %1739 = vmatmul.mubr.bf16.gmra.mrb[80].mxu0 %v7417_v55 }
 0x1c4   :  { %1748 = vmatprep.mubr.bf16.mxu0 %v7445_v3 }
 0x1cb   :  { %1749 = vmatmul.mubr.bf16.gmra.mrb[84].mxu0 %v7431_v61 }
 0x1cc   :  { %1758 = vmatprep.mubr.bf16.mxu0 %v7465_v15 }
 0x1d3   :  { %1759 = vmatmul.mubr.bf16.gmra.mrb[88].mxu0 %v7445_v3 }
 0x1d4   :  { %1768 = vmatprep.mubr.bf16.mxu0 %v7479_v21 }
 0x1db   :  { %1769 = vmatmul.mubr.bf16.gmra.mrb[92].mxu0 %v7465_v15 }
 0x1dc   :  { %1778 = vmatprep.mubr.bf16.mxu0 %v7493_v29 }
 0x1e3   :  { %1779 = vmatmul.mubr.bf16.gmra.mrb[96].mxu0 %v7479_v21 }
 0x1e4   :  { %1788 = vmatprep.mubr.bf16.mxu0 %v7504_v34 }
 0x1eb   :  { %1789 = vmatmul.mubr.bf16.gmra.mrb[100].mxu0 %v7493_v29  ;;  %v9198_v29 = vsub.s32 1, %v6904_v12 }
 0x1ec   :  { %1798 = vmatprep.mubr.bf16.mxu0 %v710_v48 }
 0x1f3   :  { %1799 = vmatmul.mubr.bf16.gmra.mrb[104].mxu0 %v7504_v34 }
 0x1f4   :  { %1808 = vmatprep.mubr.bf16.mxu0 %v711_v53 }
 0x1fb   :  { %1809 = vmatmul.mubr.bf16.gmra.mrb[108].mxu0 %v710_v48 }
 0x1fc   :  { %1851 = vmatprep.mubr.bf16.mxu0 %v9200_v28 }
 0x203   :  { %1852 = vmatmul.mubr.bf16.vlgmr.msra.gmra.mrb[0].mxu0 %v7072_v4 }
 0x204   :  { %1861 = vmatprep.mubr.bf16.mxu0 %v9200_v28 }
 0x208   :  { %v2083_v0 = vpop.f32.mrb[0].mxu1 }
 0x209   :  { %v2085_v14 = vpop.f32.mrb[1].mxu1 }
 0x20a   :  { %v2087_v4 = vpop.f32.mrb[2].mxu1 }
 0x20b   :  { %1862 = vmatmul.mubr.bf16.gmra.mrb[4].mxu0 %v7098_v13  ;;  %v2089_v13 = vpop.f32.mrb[3].mxu1 }
 0x20c   :  { %1871 = vmatprep.mubr.bf16.mxu0 %v9200_v28 }
 0x213   :  { %1872 = vmatmul.mubr.bf16.gmra.mrb[8].mxu0 %v7124_v22  ;;  %v2093_v22 = vpop.f32.mrb[4].mxu1 }
 0x214   :  { %1881 = vmatprep.mubr.bf16.mxu0 %v9200_v28 }
 0x21b   :  { %1882 = vmatmul.mubr.bf16.gmra.mrb[12].mxu0 %v7150_v30  ;;  %v2095_v30 = vpop.f32.mrb[5].mxu1 }
 0x21c   :  { %1891 = vmatprep.mubr.bf16.mxu0 %v9200_v28  ;;  %v2097_v63 = vpop.f32.mrb[6].mxu1 }
 0x21d   :  { %v2099_v1 = vpop.f32.mrb[7].mxu1 }
 0x223   :  { %1892 = vmatmul.mubr.bf16.gmra.mrb[16].mxu0 %v7173_v37  ;;  %v7644_v37 = vpop.f32.mrb[8].mxu1 }
 0x224   :  { %1901 = vmatprep.mubr.bf16.mxu0 %v9200_v28 }
 0x22b   :  { %1902 = vmatmul.mubr.bf16.gmra.mrb[20].mxu0 %v7193_v43  ;;  %v7646_v43 = vpop.f32.mrb[9].mxu1 }
 0x22c   :  { %1911 = vmatprep.mubr.bf16.mxu0 %v9200_v28  ;;  %v7648_v5 = vpop.f32.mrb[10].mxu1 }
 0x22d   :  { %v7650_v6 = vpop.f32.mrb[11].mxu1 }
 0x233   :  { %1912 = vmatmul.mubr.bf16.gmra.mrb[24].mxu0 %v7207_v47  ;;  %v7654_v47 = vpop.f32.mrb[12].mxu1 }
 0x234   :  { %1921 = vmatprep.mubr.bf16.mxu0 %v9200_v28  ;;  %v7656_v8 = vpop.f32.mrb[13].mxu1 }
 0x235   :  { %v7658_v10 = vpop.f32.mrb[14].mxu1 }
 0x23b   :  { %1922 = vmatmul.mubr.bf16.gmra.mrb[28].mxu0 %v7227_v54  ;;  %v7660_v54 = vpop.f32.mrb[15].mxu1 }
 0x23c   :  { %1931 = vmatprep.mubr.bf16.mxu0 %v9200_v28  ;;  %v7664_v11 = vpop.f32.mrb[16].mxu1 }
 0x23d   :  { %v7666_v17 = vpop.f32.mrb[17].mxu1 }
 0x23e   :  { %v7668_v18 = vpop.f32.mrb[18].mxu1 }
 0x243   :  { %1932 = vmatmul.mubr.bf16.gmra.mrb[32].mxu0 %v7241_v58  ;;  %v7670_v58 = vpop.f32.mrb[19].mxu1 }
 0x244   :  { %1941 = vmatprep.mubr.bf16.mxu0 %v9200_v28 }
 0x24b   :  { %1942 = vmatmul.mubr.bf16.gmra.mrb[36].mxu0 %v7261_v2 }
 0x24c   :  { %1951 = vmatprep.mubr.bf16.mxu0 %v9200_v28 }
 0x253   :  { %1952 = vmatmul.mubr.bf16.gmra.mrb[40].mxu0 %v7275_v7 }
 0x254   :  { %1961 = vmatprep.mubr.bf16.mxu0 %v9200_v28 }
 0x25b   :  { %1962 = vmatmul.mubr.bf16.gmra.mrb[44].mxu0 %v7298_v16 }
 0x25c   :  { %1971 = vmatprep.mubr.bf16.mxu0 %v9200_v28 }
 0x263   :  { %1972 = vmatmul.mubr.bf16.gmra.mrb[48].mxu0 %v7312_v20 }
 0x264   :  { %1981 = vmatprep.mubr.bf16.mxu0 %v9200_v28 }
 0x26b   :  { %1982 = vmatmul.mubr.bf16.gmra.mrb[52].mxu0 %v7326_v25 }
 0x26c   :  { %1991 = vmatprep.mubr.bf16.mxu0 %v9200_v28 }
 0x273   :  { %1992 = vmatmul.mubr.bf16.gmra.mrb[56].mxu0 %v7352_v32 }
 0x274   :  { %2001 = vmatprep.mubr.bf16.mxu0 %v9200_v28 }
 0x27b   :  { %2002 = vmatmul.mubr.bf16.gmra.mrb[60].mxu0 %v7366_v36 }
 0x27c   :  { %2011 = vmatprep.mubr.bf16.mxu0 %v9200_v28 }
 0x283   :  { %2012 = vmatmul.mubr.bf16.gmra.mrb[64].mxu0 %v7380_v41 }
 0x284   :  { %2021 = vmatprep.mubr.bf16.mxu0 %v9200_v28 }
 0x28b   :  { %2022 = vmatmul.mubr.bf16.gmra.mrb[68].mxu0 %v7394_v46 }
 0x28c   :  { %2031 = vmatprep.mubr.bf16.mxu0 %v9200_v28 }
 0x293   :  { %2032 = vmatmul.mubr.bf16.gmra.mrb[72].mxu0 %v7417_v55 }
 0x294   :  { %2041 = vmatprep.mubr.bf16.mxu0 %v9200_v28 }
 0x29b   :  { %2042 = vmatmul.mubr.bf16.gmra.mrb[76].mxu0 %v7431_v61 }
 0x29c   :  { %2051 = vmatprep.mubr.bf16.mxu0 %v9200_v28 }
 0x2a3   :  { %2052 = vmatmul.mubr.bf16.gmra.mrb[80].mxu0 %v7445_v3 }
 0x2a4   :  { %2061 = vmatprep.mubr.bf16.mxu0 %v9200_v28 }
 0x2ab   :  { %2062 = vmatmul.mubr.bf16.gmra.mrb[84].mxu0 %v7465_v15 }
 0x2ac   :  { %2071 = vmatprep.mubr.bf16.mxu0 %v9200_v28 }
 0x2ae   :  { %v1770_v2 = vpop.f32.mrb[92].mxu0 }
 0x2af   :  { %v7696_v7 = vadd.f32 %v2083_v0, %v1770_v2  ;;  %v1772_v16 = vpop.f32.mrb[93].mxu0  ;;  %v6575_v2 = vld [vmem:[%s9186_s2 + $0xac] ss:$8 sps:$4 sm:$0xff]  }
 0x2b0   :  { %v7698_v20 = vadd.f32 %v2085_v14, %v1772_v16  ;;  %v1774_v25 = vpop.f32.mrb[94].mxu0  ;;  %2947 = vmatprep.subr.bf16.mxu1 %v6575_v2 }
 0x2b1   :  { %v7700_v32 = vadd.f32 %v2087_v4, %v1774_v25  ;;  %v1776_v36 = vpop.f32.mrb[95].mxu0 }
 0x2b2   :  { %v7702_v41 = vadd.f32 %v2089_v13, %v1776_v36  ;;  %v6573_v36 = vld [vmem:[%s9186_s2 + $0xa8] ss:$8 sps:$4 sm:$0xff]  }
 0x2b3   :  { %2072 = vmatmul.mubr.bf16.gmra.mrb[88].mxu0 %v7479_v21  ;;  %v7716_v21 = vrot.slane %v2132_v26, %v9198_v29  ;;  %2948 = vmatpush1.bf16.msra.mxu1 %v6573_v36 }
 0x2b6   :  { %v1780_v46 = vpop.f32.mrb[96].mxu0 }
 0x2b7   :  { %v5928_v55 = vadd.f32 %v2093_v22, %v1780_v46  ;;  %v1782_v61 = vpop.f32.mrb[97].mxu0 }
 0x2b8   :  { %v5929_v3 = vadd.f32 %v2095_v30, %v1782_v61  ;;  %v1784_v15 = vpop.f32.mrb[98].mxu0 }
 0x2b9   :  { %v5930_v23 = vadd.f32 %v2097_v63, %v1784_v15  ;;  %v1786_v24 = vpop.f32.mrb[99].mxu0  ;;  %v2240_v35 = vadd.f32 %v5928_v55, %v7712_v33 }
 0x2ba   :  { %v5931_v31 = vadd.f32 %v2099_v1, %v1786_v24  ;;  %v2241_v40 = vadd.f32 %v5929_v3, %v7716_v21  ;;  %v6581_v24 = vld [vmem:[%s9186_s2 + $0xcc] ss:$8 sps:$4 sm:$0xff]  }
 0x2bb   :  { %v2242_v9 = vadd.f32 %v5930_v23, %v7712_v33  ;;  %v2352_v50 = vmax.f32 %v2240_v35, 0.0 }
 0x2bc   :  { %v2243_v45 = vadd.f32 %v5931_v31, %v7716_v21  ;;  %v2353_v56 = vmax.f32 %v2241_v40, 0.0 }
 0x2bd   :  { %v2354_v62 = vmax.f32 %v2242_v9, 0.0 }
 0x2be   :  { %v1790_v34 = vpop.f32.mrb[100].mxu0  ;;  %v2355_v4 = vmax.f32 %v2243_v45, 0.0 }
 0x2bf   :  { %v5932_v38 = vadd.f32 %v7644_v37, %v1790_v34  ;;  %v1792_v39 = vpop.f32.mrb[101].mxu0 }
 0x2c0   :  { %v5933_v51 = vadd.f32 %v7646_v43, %v1792_v39  ;;  %v1794_v59 = vpop.f32.mrb[102].mxu0 }
 0x2c1   :  { %v2244_v27 = vadd.f32 %v5932_v38, %v7712_v33  ;;  %v5934_v42 = vadd.f32 %v7648_v5, %v1794_v59  ;;  %v1796_v44 = vpop.f32.mrb[103].mxu0 }
 0x2c2   :  { %v2245_v48 = vadd.f32 %v5933_v51, %v7716_v21  ;;  %v5935_v49 = vadd.f32 %v7650_v6, %v1796_v44 }
 0x2c3   :  { %v2356_v52 = vmax.f32 %v2244_v27, 0.0  ;;  %v2246_v53 = vadd.f32 %v5934_v42, %v7712_v33  ;;  %v6584_v42 = vld [vmem:[%s9186_s2 + $0xdc] ss:$8 sps:$4 sm:$0xff]  }
 0x2c4   :  { %v2357_v57 = vmax.f32 %v2245_v48, 0.0  ;;  %v2247_v60 = vadd.f32 %v5935_v49, %v7716_v21 }
 0x2c5   :  { %v7730_v0 = vmax.f32 %v2352_v50, %v2356_v52  ;;  %v2358_v14 = vmax.f32 %v2246_v53, 0.0 }
 0x2c6   :  { %v7732_v13 = vmax.f32 %v2353_v56, %v2357_v57  ;;  %v2359_v22 = vmax.f32 %v2247_v60, 0.0  ;;  %v1800_v30 = vpop.f32.mrb[104].mxu0 }
 0x2c7   :  { %v7734_v63 = vmax.f32 %v2354_v62, %v2358_v14  ;;  %v5936_v1 = vadd.f32 %v7654_v47, %v1800_v30  ;;  %v1802_v37 = vpop.f32.mrb[105].mxu0  ;;  %v6578_v47 = vld [vmem:[%s9186_s2 + $0xbc] ss:$8 sps:$4 sm:$0xff]   ;;  %v6587_v14 = vld [vmem:[%s9186_s2 + $0xec] ss:$8 sps:$4 sm:$0xff]  }
 0x2c8   :  { %v7737_v43 = vmax.f32 %v2355_v4, %v2359_v22  ;;  %v5937_v5 = vadd.f32 %v7656_v8, %v1802_v37  ;;  %v1804_v6 = vpop.f32.mrb[106].mxu0  ;;  %v6576_v8 = vld [vmem:[%s9186_s2 + $0xb8] ss:$8 sps:$4 sm:$0xff]   ;;  %2949 = vmatprep.subr.bf16.mxu1 %v6578_v47  ;;  %v6585_v22 = vld [vmem:[%s9186_s2 + $0xe8] ss:$8 sps:$4 sm:$0xff]  }
 0x2c9   :  { %v5938_v16 = vadd.f32 %v7658_v10, %v1804_v6  ;;  %v1806_v25 = vpop.f32.mrb[107].mxu0  ;;  %v2248_v10 = vadd.f32 %v5936_v1, %v7712_v33  ;;  %2950 = vmatpush1.bf16.msra.mxu1 %v6576_v8  ;;  %v6590_v30 = vld [vmem:[%s9186_s2 + $0xfc] ss:$8 sps:$4 sm:$0xff]   ;;  %v6588_v37 = vld [vmem:[%s9186_s2 + $0xf8] ss:$8 sps:$4 sm:$0xff]  }
 0x2ca   :  { %v5939_v46 = vadd.f32 %v7660_v54, %v1806_v25  ;;  %v2249_v54 = vadd.f32 %v5937_v5, %v7716_v21  ;;  %2951 = vmatprep.subr.bf16.mxu1 %v6581_v24  ;;  %v6593_v8 = vld [vmem:[%s9186_s2 + $0x10c] ss:$8 sps:$4 sm:$0xff]  }
 0x2cb   :  { %v2250_v26 = vadd.f32 %v5938_v16, %v7712_v33  ;;  %v2360_v40 = vmax.f32 %v2248_v10, 0.0 }
 0x2cc   :  { %v2251_v38 = vadd.f32 %v5939_v46, %v7716_v21  ;;  %v2361_v9 = vmax.f32 %v2249_v54, 0.0  ;;  %v6591_v54 = vld [vmem:[%s9186_s2 + $0x108] ss:$8 sps:$4 sm:$0xff]  }
 0x2cd   :  { %v2362_v44 = vmax.f32 %v2250_v26, 0.0 }
 0x2ce   :  { %v1810_v55 = vpop.f32.mrb[108].mxu0  ;;  %v2363_v49 = vmax.f32 %v2251_v38, 0.0 }
 0x2cf   :  { %v5940_v61 = vadd.f32 %v7664_v11, %v1810_v55  ;;  %v1812_v3 = vpop.f32.mrb[109].mxu0  ;;  %v6579_v11 = vld [vmem:[%s9186_s2 + $0xc8] ss:$8 sps:$4 sm:$0xff]  }
 0x2d0   :  { %v5941_v15 = vadd.f32 %v7666_v17, %v1812_v3  ;;  %v1814_v23 = vpop.f32.mrb[110].mxu0  ;;  %2952 = vmatpush1.bf16.msra.mxu1 %v6579_v11 }
 0x2d1   :  { %v2252_v31 = vadd.f32 %v5940_v61, %v7712_v33  ;;  %v5942_v34 = vadd.f32 %v7668_v18, %v1814_v23  ;;  %v1816_v35 = vpop.f32.mrb[111].mxu0  ;;  %2953 = vmatprep.subr.bf16.mxu1 %v6584_v42 }
 0x2d2   :  { %v2253_v17 = vadd.f32 %v5941_v15, %v7716_v21  ;;  %v5943_v39 = vadd.f32 %v7670_v58, %v1816_v35  ;;  %v6582_v58 = vld [vmem:[%s9186_s2 + $0xd8] ss:$8 sps:$4 sm:$0xff]  }
 0x2d3   :  { %v2364_v51 = vmax.f32 %v2252_v31, 0.0  ;;  %v2254_v59 = vadd.f32 %v5942_v34, %v7712_v33 }
 0x2d4   :  { %v2365_v27 = vmax.f32 %v2253_v17, 0.0  ;;  %v2255_v18 = vadd.f32 %v5943_v39, %v7716_v21  ;;  %2954 = vmatpush1.bf16.msra.mxu1 %v6582_v58  ;;  %v6596_v17 = vld [vmem:[%s9186_s2 + $0x11c] ss:$8 sps:$4 sm:$0xff]  }
 0x2d5   :  { %v7775_v45 = vmax.f32 %v2360_v40, %v2364_v51  ;;  %v2366_v48 = vmax.f32 %v2254_v59, 0.0  ;;  %2955 = vmatprep.subr.bf16.mxu1 %v6587_v14  ;;  %v6594_v40 = vld [vmem:[%s9186_s2 + $0x118] ss:$8 sps:$4 sm:$0xff]  }
 0x2d6   :  { %v7780_v50 = vmax.f32 %v2361_v9, %v2365_v27  ;;  %v2367_v52 = vmax.f32 %v2255_v18, 0.0  ;;  %v1853_v53 = vpop.f32.mrb[0].mxu0  ;;  %v6599_v18 = vld [vmem:[%s9186_s2 + $0x12c] ss:$8 sps:$4 sm:$0xff]  }
 0x2d7   :  { %v7782_v56 = vmax.f32 %v2362_v44, %v2366_v48  ;;  %v1855_v57 = vpop.f32.mrb[1].mxu0  ;;  %v2144_v1 = vadd.f32 %v7712_v33, %v1853_v53  ;;  %v6597_v44 = vld [vmem:[%s9186_s2 + $0x128] ss:$8 sps:$4 sm:$0xff]   ;;  %v6602_v48 = vld [vmem:[%s9186_s2 + $0x13c] ss:$8 sps:$4 sm:$0xff]  }
 0x2d8   :  { %v7784_v60 = vmax.f32 %v2363_v49, %v2367_v52  ;;  %v1857_v62 = vpop.f32.mrb[2].mxu0  ;;  %2956 = vmatpush1.bf16.msra.mxu1 %v6585_v22  ;;  %v2145_v5 = vadd.f32 %v7716_v21, %v1855_v57  ;;  %v6600_v49 = vld [vmem:[%s9186_s2 + $0x138] ss:$8 sps:$4 sm:$0xff]  }
 0x2d9   :  { %v1859_v4 = vpop.f32.mrb[3].mxu0  ;;  %2957 = vmatprep.subr.bf16.mxu1 %v6590_v30  ;;  %v2146_v2 = vadd.f32 %v7712_v33, %v1857_v62  ;;  %v2256_v55 = vmax.f32 %v2144_v1, 0.0 }
 0x2da   :  { %v2147_v36 = vadd.f32 %v7716_v21, %v1859_v4  ;;  %v2257_v15 = vmax.f32 %v2145_v5, 0.0  ;;  %v5480_v4 = vld [vmem:[%s9186_s2 + $0x148] sm:$0x11] }
 0x2db   :  { %v2258_v26 = vmax.f32 %v2146_v2, 0.0  ;;  %v5501_v5 = vcombine.low %v5480_v4, %v5480_v4 }
 0x2dc   :  { %2958 = vmatpush1.bf16.msra.mxu1 %v6588_v37  ;;  %v2259_v35 = vmax.f32 %v2147_v36, 0.0  ;;  %v5502_v37 = vcombine.high %v5480_v4, %v5480_v4 }
 0x2dd   :  { %2959 = vmatprep.subr.bf16.mxu1 %v6593_v8  ;;  %v2942_v8 = vsel %vm2940_vm2, %v5501_v5, 0 }
 0x2de   :  { %v1863_v6 = vpop.f32.mrb[4].mxu0 }
 0x2df   :  { %v2148_v16 = vadd.f32 %v7712_v33, %v1863_v6  ;;  %v1865_v25 = vpop.f32.mrb[5].mxu0 }
 0x2e0   :  { %v2149_v46 = vadd.f32 %v7716_v21, %v1865_v25  ;;  %v1867_v47 = vpop.f32.mrb[6].mxu0  ;;  %2960 = vmatpush1.bf16.msra.mxu1 %v6591_v54 }
 0x2e1   :  { %v2260_v10 = vmax.f32 %v2148_v16, 0.0  ;;  %v2150_v61 = vadd.f32 %v7712_v33, %v1867_v47  ;;  %v1869_v3 = vpop.f32.mrb[7].mxu0  ;;  %2961 = vmatprep.subr.bf16.mxu1 %v6596_v17 }
 0x2e2   :  { %v2261_v23 = vmax.f32 %v2149_v46, 0.0  ;;  %v2151_v24 = vadd.f32 %v7716_v21, %v1869_v3 }
 0x2e3   :  { %v7812_v31 = vmax.f32 %v2256_v55, %v2260_v10  ;;  %v2262_v34 = vmax.f32 %v2150_v61, 0.0 }
 0x2e4   :  { %v7814_v11 = vmax.f32 %v2257_v15, %v2261_v23  ;;  %v2263_v38 = vmax.f32 %v2151_v24, 0.0  ;;  %2962 = vmatpush1.bf16.msra.mxu1 %v6594_v40 }
 0x2e5   :  { %v7819_v39 = vmax.f32 %v2258_v26, %v2262_v34  ;;  %2963 = vmatprep.subr.bf16.mxu1 %v6599_v18 }
 0x2e6   :  { %v7824_v51 = vmax.f32 %v2259_v35, %v2263_v38  ;;  %v1873_v59 = vpop.f32.mrb[8].mxu0 }
 0x2e7   :  { %v1875_v9 = vpop.f32.mrb[9].mxu0  ;;  %v2152_v58 = vadd.f32 %v7712_v33, %v1873_v59 }
 0x2e8   :  { %v1877_v27 = vpop.f32.mrb[10].mxu0  ;;  %2964 = vmatpush1.bf16.msra.mxu1 %v6597_v44  ;;  %v2153_v52 = vadd.f32 %v7716_v21, %v1875_v9 }
 0x2e9   :  { %v1879_v42 = vpop.f32.mrb[11].mxu0  ;;  %2965 = vmatprep.subr.bf16.mxu1 %v6602_v48  ;;  %v2154_v57 = vadd.f32 %v7712_v33, %v1877_v27  ;;  %v2264_v6 = vmax.f32 %v2152_v58, 0.0 }
 0x2ea   :  { %v2155_v22 = vadd.f32 %v7716_v21, %v1879_v42  ;;  %v2265_v36 = vmax.f32 %v2153_v52, 0.0 }
 0x2eb   :  { %v2266_v55 = vmax.f32 %v2154_v57, 0.0 }
 0x2ec   :  { %2966 = vmatpush1.bf16.msra.mxu1 %v6600_v49  ;;  %v2267_v3 = vmax.f32 %v2155_v22, 0.0 }
 0x2ed   :  { %5503 = vmatprep.subr.msk.bf16.mxu1 %vm2940_vm2, %v5502_v37 }
 0x2ee   :  { %v1883_v53 = vpop.f32.mrb[12].mxu0 }
 0x2ef   :  { %v2156_v62 = vadd.f32 %v7712_v33, %v1883_v53  ;;  %v1885_v14 = vpop.f32.mrb[13].mxu0 }
 0x2f0   :  { %v2157_v30 = vadd.f32 %v7716_v21, %v1885_v14  ;;  %v1887_v1 = vpop.f32.mrb[14].mxu0  ;;  %2968 = vmatpush1.bf16.msra.mxu1 %v2942_v8 }
 0x2f1   :  { %v2268_v2 = vmax.f32 %v2156_v62, 0.0  ;;  %v2158_v16 = vadd.f32 %v7712_v33, %v1887_v1  ;;  %v1889_v25 = vpop.f32.mrb[15].mxu0 }
 0x2f2   :  { %v2269_v46 = vmax.f32 %v2157_v30, 0.0  ;;  %v2159_v47 = vadd.f32 %v7716_v21, %v1889_v25 }
 0x2f3   :  { %v7851_v10 = vmax.f32 %v2264_v6, %v2268_v2  ;;  %v2270_v61 = vmax.f32 %v2158_v16, 0.0 }
 0x2f4   :  { %v7853_v54 = vmax.f32 %v2265_v36, %v2269_v46  ;;  %v2271_v15 = vmax.f32 %v2159_v47, 0.0 }
 0x2f5   :  { %v7855_v23 = vmax.f32 %v2266_v55, %v2270_v61 }
 0x2f6   :  { %v7857_v24 = vmax.f32 %v2267_v3, %v2271_v15  ;;  %v1893_v26 = vpop.f32.mrb[16].mxu0  ;;  %v6313_v34 = vpack.i.bf16 %v7853_v54, %v7851_v10 }
 0x2f7   :  { %v1895_v35 = vpop.f32.mrb[17].mxu0  ;;  %v2160_v59 = vadd.f32 %v7712_v33, %v1893_v26 }
 0x2f8   :  { %6314 = vrot.lane.b32.xlu0 %v6313_v34, %s6795_s1  ;;  %v1897_v38 = vpop.f32.mrb[18].mxu0  ;;  %v6318_v40 = vpack.i.bf16 %v7857_v24, %v7855_v23  ;;  %v2161_v9 = vadd.f32 %v7716_v21, %v1895_v35 }
 0x2f9   :  { %v1899_v17 = vpop.f32.mrb[19].mxu0  ;;  %v2162_v18 = vadd.f32 %v7712_v33, %v1897_v38  ;;  %v2272_v52 = vmax.f32 %v2160_v59, 0.0 }
 0x2fa   :  { %v2163_v48 = vadd.f32 %v7716_v21, %v1899_v17  ;;  %v2273_v14 = vmax.f32 %v2161_v9, 0.0 }
 0x2fb   :  { %v2274_v30 = vmax.f32 %v2162_v18, 0.0 }
 0x2fc   :  { %6319 = vrot.lane.b32.xlu0 %v6318_v40, %s6795_s1  ;;  %v2275_v5 = vmax.f32 %v2163_v48, 0.0 }
 0x2fe   :  { %v1903_v27 = vpop.f32.mrb[20].mxu0 }
 0x2ff   :  { %v2164_v42 = vadd.f32 %v7712_v33, %v1903_v27  ;;  %v1905_v44 = vpop.f32.mrb[21].mxu0 }
 0x300   :  { %v2165_v58 = vadd.f32 %v7716_v21, %v1905_v44  ;;  %v1907_v49 = vpop.f32.mrb[22].mxu0 }
 0x301   :  { %v2276_v53 = vmax.f32 %v2164_v42, 0.0  ;;  %v2166_v57 = vadd.f32 %v7712_v33, %v1907_v49  ;;  %v1909_v62 = vpop.f32.mrb[23].mxu0 }
 0x302   :  { %v2277_v4 = vmax.f32 %v2165_v58, 0.0  ;;  %v2167_v22 = vadd.f32 %v7716_v21, %v1909_v62 }
 0x303   :  { %v7873_v1 = vmax.f32 %v2272_v52, %v2276_v53  ;;  %v2278_v37 = vmax.f32 %v2166_v57, 0.0 }
 0x304   :  { %v7875_v6 = vmax.f32 %v2273_v14, %v2277_v4  ;;  %v2279_v2 = vmax.f32 %v2167_v22, 0.0 }
 0x305   :  { %v7877_v16 = vmax.f32 %v2274_v30, %v2278_v37 }
 0x306   :  { %v7879_v25 = vmax.f32 %v2275_v5, %v2279_v2  ;;  %v1913_v36 = vpop.f32.mrb[24].mxu0  ;;  %v6323_v46 = vpack.i.bf16 %v7875_v6, %v7873_v1 }
 0x307   :  { %v1915_v47 = vpop.f32.mrb[25].mxu0  ;;  %v2168_v3 = vadd.f32 %v7712_v33, %v1913_v36 }
 0x308   :  { %6324 = vrot.lane.b32.xlu1 %v6323_v46, %s6795_s1  ;;  %v1917_v8 = vpop.f32.mrb[26].mxu0  ;;  %v6328_v61 = vpack.i.bf16 %v7879_v25, %v7877_v16  ;;  %v2169_v15 = vadd.f32 %v7716_v21, %v1915_v47 }
 0x309   :  { %v1919_v55 = vpop.f32.mrb[27].mxu0  ;;  %v2170_v34 = vadd.f32 %v7712_v33, %v1917_v8  ;;  %v2280_v9 = vmax.f32 %v2168_v3, 0.0 }
 0x30a   :  { %v2171_v17 = vadd.f32 %v7716_v21, %v1919_v55  ;;  %v2281_v44 = vmax.f32 %v2169_v15, 0.0 }
 0x30b   :  { %v2282_v49 = vmax.f32 %v2170_v34, 0.0 }
 0x30c   :  { %6329 = vrot.lane.b32.xlu1 %v6328_v61, %s6795_s1  ;;  %v2283_v57 = vmax.f32 %v2171_v17, 0.0 }
 0x30e   :  { %v1923_v26 = vpop.f32.mrb[28].mxu0 }
 0x30f   :  { %v2172_v35 = vadd.f32 %v7712_v33, %v1923_v26  ;;  %v1925_v38 = vpop.f32.mrb[29].mxu0 }
 0x310   :  { %v2173_v40 = vadd.f32 %v7716_v21, %v1925_v38  ;;  %v1927_v59 = vpop.f32.mrb[30].mxu0 }
 0x311   :  { %v2284_v27 = vmax.f32 %v2172_v35, 0.0  ;;  %v2174_v18 = vadd.f32 %v7712_v33, %v1927_v59  ;;  %v1929_v42 = vpop.f32.mrb[31].mxu0 }
 0x312   :  { %v2285_v48 = vmax.f32 %v2173_v40, 0.0  ;;  %v2175_v58 = vadd.f32 %v7716_v21, %v1929_v42 }
 0x313   :  { %v7895_v52 = vmax.f32 %v2280_v9, %v2284_v27  ;;  %v2286_v53 = vmax.f32 %v2174_v18, 0.0 }
 0x314   :  { %v7897_v62 = vmax.f32 %v2281_v44, %v2285_v48  ;;  %v2287_v14 = vmax.f32 %v2175_v58, 0.0 }
 0x315   :  { %v7899_v4 = vmax.f32 %v2282_v49, %v2286_v53 }
 0x316   :  { %v7901_v22 = vmax.f32 %v2283_v57, %v2287_v14  ;;  %v1933_v30 = vpop.f32.mrb[32].mxu0  ;;  %v6333_v37 = vpack.i.bf16 %v7897_v62, %v7895_v52 }
 0x317   :  { %v1935_v5 = vpop.f32.mrb[33].mxu0  ;;  %v2176_v47 = vadd.f32 %v7712_v33, %v1933_v30 }
 0x318   :  { %6334 = vrot.lane.b32.xlu0 %v6333_v37, %s6795_s1  ;;  %v1937_v2 = vpop.f32.mrb[34].mxu0  ;;  %v6338_v36 = vpack.i.bf16 %v7901_v22, %v7899_v4  ;;  %v2177_v8 = vadd.f32 %v7716_v21, %v1935_v5 }
 0x319   :  { %v1939_v46 = vpop.f32.mrb[35].mxu0  ;;  %v2178_v61 = vadd.f32 %v7712_v33, %v1937_v2  ;;  %v2288_v38 = vmax.f32 %v2176_v47, 0.0 }
 0x31a   :  { %6339 = vrot.lane.b32.xlu1 %v6338_v36, %s6795_s1  ;;  %v2179_v26 = vadd.f32 %v7716_v21, %v1939_v46  ;;  %v2289_v9 = vmax.f32 %v2177_v8, 0.0 }
 0x31b   :  { %v2290_v42 = vmax.f32 %v2178_v61, 0.0 }
 0x31c   :  { %v2291_v58 = vmax.f32 %v2179_v26, 0.0 }
 0x31e   :  { %v1943_v55 = vpop.f32.mrb[36].mxu0 }
 0x31f   :  { %v2180_v3 = vadd.f32 %v7712_v33, %v1943_v55  ;;  %v1945_v15 = vpop.f32.mrb[37].mxu0 }
 0x320   :  { %v2181_v34 = vadd.f32 %v7716_v21, %v1945_v15  ;;  %v1947_v35 = vpop.f32.mrb[38].mxu0 }
 0x321   :  { %v2292_v17 = vmax.f32 %v2180_v3, 0.0  ;;  %v2182_v40 = vadd.f32 %v7712_v33, %v1947_v35  ;;  %v1949_v59 = vpop.f32.mrb[39].mxu0 }
 0x322   :  { %v2293_v27 = vmax.f32 %v2181_v34, 0.0  ;;  %v2183_v18 = vadd.f32 %v7716_v21, %v1949_v59 }
 0x323   :  { %v7917_v44 = vmax.f32 %v2288_v38, %v2292_v17  ;;  %v2294_v48 = vmax.f32 %v2182_v40, 0.0 }
 0x324   :  { %v7919_v49 = vmax.f32 %v2289_v9, %v2293_v27  ;;  %v2295_v53 = vmax.f32 %v2183_v18, 0.0 }
 0x325   :  { %v7921_v57 = vmax.f32 %v2290_v42, %v2294_v48 }
 0x326   :  { %v7923_v14 = vmax.f32 %v2291_v58, %v2295_v53  ;;  %v1953_v30 = vpop.f32.mrb[40].mxu0  ;;  %v6343_v37 = vpack.i.bf16 %v7919_v49, %v7917_v44 }
 0x327   :  { %v1955_v5 = vpop.f32.mrb[41].mxu0  ;;  %v2184_v47 = vadd.f32 %v7712_v33, %v1953_v30 }
 0x328   :  { %6344 = vrot.lane.b32.xlu0 %v6343_v37, %s6795_s1  ;;  %v1957_v2 = vpop.f32.mrb[42].mxu0  ;;  %v6348_v36 = vpack.i.bf16 %v7923_v14, %v7921_v57  ;;  %v2185_v8 = vadd.f32 %v7716_v21, %v1955_v5 }
 0x329   :  { %v1959_v46 = vpop.f32.mrb[43].mxu0  ;;  %v2186_v61 = vadd.f32 %v7712_v33, %v1957_v2  ;;  %v2296_v38 = vmax.f32 %v2184_v47, 0.0 }
 0x32a   :  { %6349 = vrot.lane.b32.xlu1 %v6348_v36, %s6795_s1  ;;  %v2187_v26 = vadd.f32 %v7716_v21, %v1959_v46  ;;  %v2297_v9 = vmax.f32 %v2185_v8, 0.0 }
 0x32b   :  { %v2298_v42 = vmax.f32 %v2186_v61, 0.0 }
 0x32c   :  { %v2299_v53 = vmax.f32 %v2187_v26, 0.0 }
 0x32e   :  { %v1963_v55 = vpop.f32.mrb[44].mxu0 }
 0x32f   :  { %v2188_v3 = vadd.f32 %v7712_v33, %v1963_v55  ;;  %v1965_v15 = vpop.f32.mrb[45].mxu0 }
 0x330   :  { %v2189_v34 = vadd.f32 %v7716_v21, %v1965_v15  ;;  %v1967_v35 = vpop.f32.mrb[46].mxu0 }
 0x331   :  { %v2300_v17 = vmax.f32 %v2188_v3, 0.0  ;;  %v2190_v40 = vadd.f32 %v7712_v33, %v1967_v35  ;;  %v1969_v59 = vpop.f32.mrb[47].mxu0 }
 0x332   :  { %v2301_v27 = vmax.f32 %v2189_v34, 0.0  ;;  %v2191_v18 = vadd.f32 %v7716_v21, %v1969_v59  ;;  %v6607_v34 = vld [vmem:[%s9186_s2 + $0x4] ss:$8 sps:$4 sm:$0xff]  }
 0x333   :  { %v7939_v48 = vmax.f32 %v2296_v38, %v2300_v17  ;;  %v2302_v58 = vmax.f32 %v2190_v40, 0.0  ;;  %3194 = vmatprep.subr.bf16.mxu1 %v6607_v34 }
 0x334   :  { %v7941_v30 = vmax.f32 %v2297_v9, %v2301_v27  ;;  %v2303_v37 = vmax.f32 %v2191_v18, 0.0 }
 0x335   :  { %v7943_v5 = vmax.f32 %v2298_v42, %v2302_v58 }
 0x336   :  { %v7945_v2 = vmax.f32 %v2299_v53, %v2303_v37  ;;  %v1973_v36 = vpop.f32.mrb[48].mxu0  ;;  %v6353_v46 = vpack.i.bf16 %v7941_v30, %v7939_v48 }
 0x337   :  { %v1975_v47 = vpop.f32.mrb[49].mxu0  ;;  %v2192_v3 = vadd.f32 %v7712_v33, %v1973_v36 }
 0x338   :  { %6354 = vrot.lane.b32.xlu0 %v6353_v46, %s6795_s1  ;;  %v1977_v8 = vpop.f32.mrb[50].mxu0  ;;  %v6358_v55 = vpack.i.bf16 %v7945_v2, %v7943_v5  ;;  %v2193_v15 = vadd.f32 %v7716_v21, %v1975_v47 }
 0x339   :  { %v1979_v61 = vpop.f32.mrb[51].mxu0  ;;  %v2194_v35 = vadd.f32 %v7712_v33, %v1977_v8  ;;  %v2304_v27 = vmax.f32 %v2192_v3, 0.0 }
 0x33a   :  { %6359 = vrot.lane.b32.xlu1 %v6358_v55, %s6795_s1  ;;  %v2195_v40 = vadd.f32 %v7716_v21, %v1979_v61  ;;  %v2305_v53 = vmax.f32 %v2193_v15, 0.0 }
 0x33b   :  { %v2306_v46 = vmax.f32 %v2194_v35, 0.0 }
 0x33c   :  { %v2307_v55 = vmax.f32 %v2195_v40, 0.0 }
 0x33e   :  { %v1983_v26 = vpop.f32.mrb[52].mxu0 }
 0x33f   :  { %v2196_v38 = vadd.f32 %v7712_v33, %v1983_v26  ;;  %v1985_v17 = vpop.f32.mrb[53].mxu0 }
 0x340   :  { %v2197_v59 = vadd.f32 %v7716_v21, %v1985_v17  ;;  %v1987_v9 = vpop.f32.mrb[54].mxu0 }
 0x341   :  { %v2308_v18 = vmax.f32 %v2196_v38, 0.0  ;;  %v2198_v42 = vadd.f32 %v7712_v33, %v1987_v9  ;;  %v1989_v58 = vpop.f32.mrb[55].mxu0 }
 0x342   :  { %v2309_v37 = vmax.f32 %v2197_v59, 0.0  ;;  %v2199_v36 = vadd.f32 %v7716_v21, %v1989_v58 }
 0x343   :  { %v7964_v47 = vmax.f32 %v2304_v27, %v2308_v18  ;;  %v2310_v8 = vmax.f32 %v2198_v42, 0.0 }
 0x344   :  { %v7966_v26 = vmax.f32 %v2305_v53, %v2309_v37  ;;  %v2311_v61 = vmax.f32 %v2199_v36, 0.0 }
 0x345   :  { %v7968_v17 = vmax.f32 %v2306_v46, %v2310_v8 }
 0x346   :  { %v7970_v34 = vmax.f32 %v2307_v55, %v2311_v61  ;;  %v1993_v3 = vpop.f32.mrb[56].mxu0  ;;  %v6363_v38 = vpack.i.bf16 %v7966_v26, %v7964_v47 }
 0x347   :  { %9218 = vst [vmem:[#allocation9_spill] sm:$0xff] %v7968_v17  ;;  %v1995_v15 = vpop.f32.mrb[57].mxu0  ;;  %v2200_v40 = vadd.f32 %v7712_v33, %v1993_v3 }
 0x348   :  { %6364 = vrot.lane.b32.xlu0 %v6363_v38, %s6795_s1  ;;  %v1997_v59 = vpop.f32.mrb[58].mxu0  ;;  %v6368_v35 = vpack.i.bf16 %v7970_v34, %v7968_v17  ;;  %v2201_v27 = vadd.f32 %v7716_v21, %v1995_v15 }
 0x349   :  { %v1999_v9 = vpop.f32.mrb[59].mxu0  ;;  %v2202_v42 = vadd.f32 %v7712_v33, %v1997_v59  ;;  %v2312_v8 = vmax.f32 %v2200_v40, 0.0 }
 0x34a   :  { %6369 = vrot.lane.b32.xlu1 %v6368_v35, %s6795_s1  ;;  %v2203_v37 = vadd.f32 %v7716_v21, %v1999_v9  ;;  %v2313_v35 = vmax.f32 %v2201_v27, 0.0 }
 0x34b   :  { %v2314_v29 = vmax.f32 %v2202_v42, 0.0 }
 0x34e   :  { %v2003_v18 = vpop.f32.mrb[60].mxu0 }
 0x34f   :  { %v2204_v58 = vadd.f32 %v7712_v33, %v2003_v18  ;;  %v2005_v53 = vpop.f32.mrb[61].mxu0  ;;  %v2315_v18 = vmax.f32 %v2203_v37, 0.0 }
 0x350   :  { %v2205_v36 = vadd.f32 %v7716_v21, %v2005_v53  ;;  %v2007_v46 = vpop.f32.mrb[62].mxu0 }
 0x351   :  { %v2316_v55 = vmax.f32 %v2204_v58, 0.0  ;;  %v2206_v61 = vadd.f32 %v7712_v33, %v2007_v46  ;;  %v2009_v38 = vpop.f32.mrb[63].mxu0 }
 0x352   :  { %v2317_v3 = vmax.f32 %v2205_v36, 0.0  ;;  %v2207_v15 = vadd.f32 %v7716_v21, %v2009_v38 }
 0x353   :  { %v7986_v19 = vmax.f32 %v2312_v8, %v2316_v55  ;;  %v2318_v59 = vmax.f32 %v2206_v61, 0.0 }
 0x354   :  { %v7988_v28 = vmax.f32 %v2313_v35, %v2317_v3  ;;  %v2319_v9 = vmax.f32 %v2207_v15, 0.0 }
 0x355   :  { %9219 = vst [vmem:[#allocation10_spill] sm:$0xff] %v7986_v19  ;;  %v7990_v12 = vmax.f32 %v2314_v29, %v2318_v59 }
 0x356   :  { %9220 = vst [vmem:[#allocation11_spill] sm:$0xff] %v7988_v28  ;;  %v7992_v53 = vmax.f32 %v2315_v18, %v2319_v9  ;;  %v2013_v40 = vpop.f32.mrb[64].mxu0  ;;  %v6373_v58 = vpack.i.bf16 %v7988_v28, %v7986_v19 }
 0x357   :  { %9221 = vst [vmem:[#allocation12_spill] sm:$0xff] %v7990_v12  ;;  %v2015_v27 = vpop.f32.mrb[65].mxu0  ;;  %v2208_v37 = vadd.f32 %v7712_v33, %v2013_v40 }
 0x358   :  { %9222 = vst [vmem:[#allocation13_spill] sm:$0xff] %v7992_v53  ;;  %6374 = vrot.lane.b32.xlu0 %v6373_v58, %s6795_s1  ;;  %v2017_v36 = vpop.f32.mrb[66].mxu0  ;;  %v6378_v42 = vpack.i.bf16 %v7992_v53, %v7990_v12  ;;  %v2209_v29 = vadd.f32 %v7716_v21, %v2015_v27 }
 0x359   :  { %v2019_v46 = vpop.f32.mrb[67].mxu0  ;;  %v2210_v55 = vadd.f32 %v7712_v33, %v2017_v36  ;;  %v2320_v59 = vmax.f32 %v2208_v37, 0.0 }
 0x35a   :  { %6379 = vrot.lane.b32.xlu1 %v6378_v42, %s6795_s1  ;;  %v2211_v35 = vadd.f32 %v7716_v21, %v2019_v46  ;;  %v2321_v42 = vmax.f32 %v2209_v29, 0.0 }
 0x35b   :  { %v2322_v12 = vmax.f32 %v2210_v55, 0.0 }
 0x35e   :  { %v2023_v8 = vpop.f32.mrb[68].mxu0 }
 0x35f   :  { %v2212_v61 = vadd.f32 %v7712_v33, %v2023_v8  ;;  %v2025_v38 = vpop.f32.mrb[69].mxu0  ;;  %v2323_v8 = vmax.f32 %v2211_v35, 0.0 }
 0x360   :  { %v2213_v3 = vadd.f32 %v7716_v21, %v2025_v38  ;;  %v2027_v15 = vpop.f32.mrb[70].mxu0 }
 0x361   :  { %v2324_v18 = vmax.f32 %v2212_v61, 0.0  ;;  %v2214_v9 = vadd.f32 %v7712_v33, %v2027_v15  ;;  %v2029_v58 = vpop.f32.mrb[71].mxu0 }
 0x362   :  { %v2325_v40 = vmax.f32 %v2213_v3, 0.0  ;;  %v2215_v27 = vadd.f32 %v7716_v21, %v2029_v58 }
 0x363   :  { %v8008_v19 = vmax.f32 %v2320_v59, %v2324_v18  ;;  %v2326_v36 = vmax.f32 %v2214_v9, 0.0 }
 0x364   :  { %v8010_v53 = vmax.f32 %v2321_v42, %v2325_v40  ;;  %v2327_v46 = vmax.f32 %v2215_v27, 0.0 }
 0x365   :  { %9223 = vst [vmem:[#allocation14_spill] sm:$0xff] %v8008_v19  ;;  %v8012_v28 = vmax.f32 %v2322_v12, %v2326_v36 }
 0x366   :  { %9224 = vst [vmem:[#allocation15_spill] sm:$0xff] %v8010_v53  ;;  %v8014_v38 = vmax.f32 %v2323_v8, %v2327_v46  ;;  %v2033_v37 = vpop.f32.mrb[72].mxu0  ;;  %v6383_v61 = vpack.i.bf16 %v8010_v53, %v8008_v19 }
 0x367   :  { %9225 = vst [vmem:[#allocation16_spill] sm:$0xff] %v8012_v28  ;;  %v2035_v29 = vpop.f32.mrb[73].mxu0  ;;  %v2216_v35 = vadd.f32 %v7712_v33, %v2033_v37 }
 0x368   :  { %9226 = vst [vmem:[#allocation17_spill] sm:$0xff] %v8014_v38  ;;  %6384 = vrot.lane.b32.xlu0 %v6383_v61, %s6795_s1  ;;  %v2037_v3 = vpop.f32.mrb[74].mxu0  ;;  %v6388_v55 = vpack.i.bf16 %v8014_v38, %v8012_v28  ;;  %v2217_v9 = vadd.f32 %v7716_v21, %v2035_v29 }
 0x369   :  { %v2039_v15 = vpop.f32.mrb[75].mxu0  ;;  %v2328_v58 = vmax.f32 %v2216_v35, 0.0  ;;  %v2218_v42 = vadd.f32 %v7712_v33, %v2037_v3 }
 0x36a   :  { %v6315_v59 = vpop.permute.xlu0 %6314  ;;  %6389 = vrot.lane.b32.xlu1 %v6388_v55, %s6795_s1  ;;  %v2329_v28 = vmax.f32 %v2217_v9, 0.0  ;;  %v2219_v55 = vadd.f32 %v7716_v21, %v2039_v15 }
 0x36b   :  { %v6317_v12 = vunpack.i.h.bf16 %v6315_v59  ;;  %v6316_v18 = vunpack.i.l.bf16 %v6315_v59  ;;  %v2330_v17 = vmax.f32 %v2218_v42, 0.0  ;;  %v6608_v42 = vld [vmem:[%s9186_s2 + $0x10] ss:$8 sps:$4 sm:$0xff]  }
 0x36d   :  { %v2595_v36 = vsel %vm2592_vm3, %v6316_v18, %v6317_v12  ;;  %v2682_v59 = vmax.f32 %v7853_v54, %v6317_v12 }
 0x36e   :  { %v6320_v40 = vpop.permute.xlu0 %6319  ;;  %v2043_v27 = vpop.f32.mrb[76].mxu0 }
 0x36f   :  { %v6322_v8 = vunpack.i.h.bf16 %v6320_v40  ;;  %v6321_v46 = vunpack.i.l.bf16 %v6320_v40  ;;  %v2220_v37 = vadd.f32 %v7712_v33, %v2043_v27  ;;  %v2045_v61 = vpop.f32.mrb[77].mxu0  ;;  %v2681_v40 = vmax.f32 %v7851_v10, %v2595_v36 }
 0x370   :  { %v2221_v29 = vadd.f32 %v7716_v21, %v2045_v61  ;;  %v2047_v35 = vpop.f32.mrb[78].mxu0 }
 0x371   :  { %v2684_v3 = vmax.f32 %v7857_v24, %v6322_v8  ;;  %v2596_v19 = vsel %vm2592_vm3, %v6321_v46, %v6322_v8  ;;  %v2332_v38 = vmax.f32 %v2220_v37, 0.0  ;;  %v2222_v18 = vadd.f32 %v7712_v33, %v2047_v35  ;;  %v2049_v53 = vpop.f32.mrb[79].mxu0  ;;  %v6605_v24 = vld [vmem:[%s9186_s2] ss:$8 sps:$4 sm:$0xff]  }
 0x372   :  { %v2683_v27 = vmax.f32 %v7855_v23, %v2596_v19  ;;  %v2333_v9 = vmax.f32 %v2221_v29, 0.0  ;;  %v2223_v15 = vadd.f32 %v7716_v21, %v2049_v53  ;;  %v2331_v8 = vmax.f32 %v2219_v55, 0.0  ;;  %v6610_v19 = vld [vmem:[%s9186_s2 + $0x14] ss:$8 sps:$4 sm:$0xff]   ;;  %v6613_v55 = vld [vmem:[%s9186_s2 + $0x24] ss:$8 sps:$4 sm:$0xff]  }
 0x373   :  { %v8036_v54 = vpack.c.bf16 %v2684_v3, %v2682_v59  ;;  %v8038_v12 = vmax.f32 %v2328_v58, %v2332_v38  ;;  %v2334_v61 = vmax.f32 %v2222_v18, 0.0 }
 0x374   :  { %v8043_v46 = vpack.c.bf16 %v2683_v27, %v2681_v40  ;;  %v8045_v37 = vmax.f32 %v2329_v28, %v2333_v9  ;;  %v2335_v10 = vmax.f32 %v2223_v15, 0.0  ;;  %v6611_v40 = vld [vmem:[%s9186_s2 + $0x20] ss:$8 sps:$4 sm:$0xff]   ;;  %v6616_v9 = vld [vmem:[%s9186_s2 + $0x34] ss:$8 sps:$4 sm:$0xff]  }
 0x375   :  { %9227 = vst [vmem:[#allocation18_spill] sm:$0xff] %v8036_v54  ;;  %9228 = vst [vmem:[#allocation19_spill] sm:$0xff] %v8038_v12  ;;  %v8050_v23 = vmax.f32 %v2330_v17, %v2334_v61  ;;  %5504 = vmatprep.mubr.msk.bf16.mxu1 %vm2909_vm4, %v8036_v54 }
 0x376   :  { %9229 = vst [vmem:[#allocation20_spill] sm:$0xff] %v8043_v46  ;;  %v8054_v53 = vmax.f32 %v2331_v8, %v2335_v10  ;;  %v2053_v38 = vpop.f32.mrb[80].mxu0  ;;  %2980 = vmatmul.mubr.bf16.vlgmr.msra.gmra.mrb[20].mxu1 %v8043_v46  ;;  %v6393_v58 = vpack.i.bf16 %v8045_v37, %v8038_v12 }
 0x377   :  { %9230 = vst [vmem:[#allocation21_spill] sm:$0xff] %v8050_v23  ;;  %v2055_v28 = vpop.f32.mrb[81].mxu0  ;;  %3195 = vmatpush1.bf16.msra.mxu1 %v6605_v24  ;;  %v2224_v29 = vadd.f32 %v7712_v33, %v2053_v38 }
 0x378   :  { %6394 = vrot.lane.b32.xlu0 %v6393_v58, %s6795_s1  ;;  %v2057_v17 = vpop.f32.mrb[82].mxu0  ;;  %v6398_v36 = vpack.i.bf16 %v8054_v53, %v8050_v23  ;;  %3196 = vmatprep.subr.bf16.mxu1 %v6610_v19  ;;  %v2225_v27 = vadd.f32 %v7716_v21, %v2055_v28  ;;  %v6614_v28 = vld [vmem:[%s9186_s2 + $0x30] ss:$8 sps:$4 sm:$0xff]  }
 0x379   :  { %v2059_v59 = vpop.f32.mrb[83].mxu0  ;;  %v2336_v15 = vmax.f32 %v2224_v29, 0.0  ;;  %v2226_v61 = vadd.f32 %v7712_v33, %v2057_v17 }
 0x37a   :  { %v6325_v35 = vpop.permute.xlu1 %6324  ;;  %6399 = vrot.lane.b32.xlu1 %v6398_v36, %s6795_s1  ;;  %v2337_v36 = vmax.f32 %v2225_v27, 0.0 }
 0x37b   :  { %v6327_v3 = vunpack.i.h.bf16 %v6325_v35  ;;  %v6326_v18 = vunpack.i.l.bf16 %v6325_v35  ;;  %3197 = vmatpush1.bf16.msra.mxu1 %v6608_v42 }
 0x37c   :  { %3198 = vmatprep.subr.bf16.mxu1 %v6613_v55  ;;  %v2227_v55 = vadd.f32 %v7716_v21, %v2059_v59 }
 0x37d   :  { %v2597_v10 = vsel %vm2592_vm3, %v6326_v18, %v6327_v3  ;;  %v2686_v29 = vmax.f32 %v7875_v6, %v6327_v3  ;;  %v6619_v18 = vld [vmem:[%s9186_s2 + $0x44] ss:$8 sps:$4 sm:$0xff]  }
 0x37e   :  { %v6330_v24 = vpop.permute.xlu1 %6329  ;;  %v2063_v8 = vpop.f32.mrb[84].mxu0  ;;  %v2685_v6 = vmax.f32 %v7873_v1, %v2597_v10  ;;  %v6622_v1 = vld [vmem:[%s9186_s2 + $0x54] ss:$8 sps:$4 sm:$0xff]  }
 0x37f   :  { %v6332_v19 = vunpack.i.h.bf16 %v6330_v24  ;;  %v6331_v38 = vunpack.i.l.bf16 %v6330_v24  ;;  %v2228_v58 = vadd.f32 %v7712_v33, %v2063_v8  ;;  %v2065_v42 = vpop.f32.mrb[85].mxu0  ;;  %3199 = vmatpush1.bf16.msra.mxu1 %v6611_v40 }
 0x380   :  { %v2229_v17 = vadd.f32 %v7716_v21, %v2065_v42  ;;  %v2067_v35 = vpop.f32.mrb[86].mxu0  ;;  %3200 = vmatprep.subr.bf16.mxu1 %v6616_v9  ;;  %v2338_v9 = vmax.f32 %v2226_v61, 0.0 }
 0x381   :  { %v2688_v24 = vmax.f32 %v7879_v25, %v6332_v19  ;;  %v2598_v40 = vsel %vm2592_vm3, %v6331_v38, %v6332_v19  ;;  %v2340_v8 = vmax.f32 %v2228_v58, 0.0  ;;  %v2230_v46 = vadd.f32 %v7712_v33, %v2067_v35  ;;  %v2069_v27 = vpop.f32.mrb[87].mxu0  ;;  %v6617_v25 = vld [vmem:[%s9186_s2 + $0x40] ss:$8 sps:$4 sm:$0xff]   ;;  %v6625_v35 = vld [vmem:[%s9186_s2 + $0x64] ss:$8 sps:$4 sm:$0xff]  }
 0x382   :  { %v2341_v54 = vmax.f32 %v2229_v17, 0.0  ;;  %v2231_v59 = vadd.f32 %v7716_v21, %v2069_v27  ;;  %v2687_v3 = vmax.f32 %v7877_v16, %v2598_v40  ;;  %v2339_v19 = vmax.f32 %v2227_v55, 0.0 }
 0x383   :  { %v8095_v42 = vpack.c.bf16 %v2688_v24, %v2686_v29  ;;  %v8097_v23 = vmax.f32 %v2336_v15, %v2340_v8  ;;  %v2342_v12 = vmax.f32 %v2230_v46, 0.0  ;;  %3201 = vmatpush1.bf16.msra.mxu1 %v6614_v28  ;;  %v2236_v16 = vadd.f32 %v7696_v7, %v7712_v33 }
 0x384   :  { %v8102_v38 = vmax.f32 %v2337_v36, %v2341_v54  ;;  %v2343_v58 = vmax.f32 %v2231_v59, 0.0  ;;  %v8104_v17 = vpack.c.bf16 %v2687_v3, %v2685_v6  ;;  %3202 = vmatprep.subr.bf16.mxu1 %v6619_v18  ;;  %v2237_v46 = vadd.f32 %v7698_v20, %v7716_v21  ;;  %v6620_v20 = vld [vmem:[%s9186_s2 + $0x50] ss:$8 sps:$4 sm:$0xff]  }
 0x385   :  { %v8113_v15 = vmax.f32 %v2338_v9, %v2342_v12  ;;  %5505 = vmatprep.mubr.msk.bf16.mxu1 %vm2909_vm4, %v8095_v42  ;;  %v2238_v54 = vadd.f32 %v7700_v32, %v7712_v33  ;;  %v2239_v12 = vadd.f32 %v7702_v41, %v7716_v21  ;;  %v2348_v18 = vmax.f32 %v2236_v16, 0.0 }
 0x386   :  { %v8119_v61 = vmax.f32 %v2339_v19, %v2343_v58  ;;  %v2073_v10 = vpop.f32.mrb[88].mxu0  ;;  %2990 = vmatmul.mubr.bf16.gmra.mrb[24].mxu1 %v8104_v17  ;;  %v6403_v28 = vpack.i.bf16 %v8102_v38, %v8097_v23  ;;  %v2349_v24 = vmax.f32 %v2237_v46, 0.0  ;;  %v6413_v9 = vpack.i.bf16 %v7814_v11, %v7812_v31 }
 0x387   :  { %v2232_v7 = vadd.f32 %v7712_v33, %v2073_v10  ;;  %v2075_v36 = vpop.f32.mrb[89].mxu0  ;;  %3203 = vmatpush1.bf16.msra.mxu1 %v6617_v25  ;;  %v2350_v41 = vmax.f32 %v2238_v54, 0.0  ;;  %v2351_v16 = vmax.f32 %v2239_v12, 0.0  ;;  %v6418_v10 = vpack.i.bf16 %v7824_v51, %v7819_v39 }
 0x388   :  { %v2233_v32 = vadd.f32 %v7716_v21, %v2075_v36  ;;  %6404 = vrot.lane.b32.xlu0 %v6403_v28, %s6795_s1  ;;  %v2077_v55 = vpop.f32.mrb[90].mxu0  ;;  %v6408_v29 = vpack.i.bf16 %v8119_v61, %v8113_v15  ;;  %3204 = vmatprep.subr.bf16.mxu1 %v6622_v1  ;;  %v6628_v28 = vld [vmem:[%s9186_s2 + $0x74] ss:$8 sps:$4 sm:$0xff]  }
 0x389   :  { %v2344_v40 = vmax.f32 %v2232_v7, 0.0  ;;  %v2234_v8 = vadd.f32 %v7712_v33, %v2077_v55  ;;  %v2079_v27 = vpop.f32.mrb[91].mxu0  ;;  %v6623_v33 = vld [vmem:[%s9186_s2 + $0x60] ss:$8 sps:$4 sm:$0xff]  }
 0x38a   :  { %v2345_v59 = vmax.f32 %v2233_v32, 0.0  ;;  %v2235_v6 = vadd.f32 %v7716_v21, %v2079_v27  ;;  %v6335_v3 = vpop.permute.xlu0 %6334  ;;  %6409 = vrot.lane.b32.xlu1 %v6408_v29, %s6795_s1 }
 0x38b   :  { %v8142_v25 = vmax.f32 %v2344_v40, %v2348_v18  ;;  %v2346_v19 = vmax.f32 %v2234_v8, 0.0  ;;  %v6337_v58 = vunpack.i.h.bf16 %v6335_v3  ;;  %v6336_v1 = vunpack.i.l.bf16 %v6335_v3  ;;  %3205 = vmatpush1.bf16.msra.mxu1 %v6620_v20  ;;  %v6626_v18 = vld [vmem:[%s9186_s2 + $0x70] ss:$8 sps:$4 sm:$0xff]   ;;  %v6631_v8 = vld [vmem:[%s9186_s2 + $0x84] ss:$8 sps:$4 sm:$0xff]  }
 0x38c   :  { %v8147_v46 = vmax.f32 %v2345_v59, %v2349_v24  ;;  %v2347_v21 = vmax.f32 %v2235_v6, 0.0  ;;  %v6340_v54 = vpop.permute.xlu1 %6339  ;;  %6414 = vrot.lane.b32.xlu0 %v6413_v9, %s6795_s1  ;;  %3206 = vmatprep.subr.bf16.mxu1 %v6625_v35  ;;  %v6629_v6 = vld [vmem:[%s9186_s2 + $0x80] ss:$8 sps:$4 sm:$0xff]   ;;  %v6443_v9 = vpack.i.bf16 %v7780_v50, %v7775_v45 }
 0x38d   :  { %v8155_v7 = vmax.f32 %v2346_v19, %v2350_v41  ;;  %v6342_v36 = vunpack.i.h.bf16 %v6340_v54  ;;  %v2599_v12 = vsel %vm2592_vm3, %v6336_v1, %v6337_v58  ;;  %v6341_v32 = vunpack.i.l.bf16 %v6340_v54  ;;  %v2781_v3 = vld [vmem:[%s9186_s2 + $0xa0] sm:$0x11]  ;;  %v6632_v19 = vld [vmem:[%s9186_s2 + $0x90] ss:$8 sps:$4 sm:$0xff]  }
 0x38e   :  { %v8157_v20 = vmax.f32 %v2347_v21, %v2351_v16  ;;  %6419 = vrot.lane.b32.xlu1 %v6418_v10, %s6795_s1  ;;  %v6423_v55 = vpack.i.bf16 %v8147_v46, %v8142_v25  ;;  %v2690_v29 = vmax.f32 %v7897_v62, %v6337_v58  ;;  %v2689_v62 = vmax.f32 %v7895_v52, %v2599_v12 }
 0x38f   :  { %v2692_v35 = vmax.f32 %v7901_v22, %v6342_v36  ;;  %3207 = vmatpush1.bf16.msra.mxu1 %v6623_v33  ;;  %v2600_v24 = vsel %vm2592_vm3, %v6341_v32, %v6342_v36  ;;  %v6433_v41 = vpack.i.bf16 %v7732_v13, %v7730_v0  ;;  %v6438_v52 = vpack.i.bf16 %v7737_v43, %v7734_v63  ;;  %v6639_v36 = vld [vmem:[%s9186_s2 + $0x154] ss:$8 sps:$4 sm:$0xff]  }
 0x390   :  { %6424 = vrot.lane.b32.xlu0 %v6423_v55, %s6795_s1  ;;  %v6428_v40 = vpack.i.bf16 %v8157_v20, %v8155_v7  ;;  %3208 = vmatprep.subr.bf16.mxu1 %v6628_v28  ;;  %v2691_v27 = vmax.f32 %v7899_v4, %v2600_v24  ;;  %v6634_v4 = vld [vmem:[%s9186_s2 + $0x94] ss:$8 sps:$4 sm:$0xff]   ;;  %v6448_v58 = vpack.i.bf16 %v7784_v60, %v7782_v56 }
 0x391   :  { %v8176_v22 = vpack.c.bf16 %v2692_v35, %v2690_v29  ;;  %v5535_v1 = vcombine.high %v2781_v3, %v2781_v3  ;;  %v5534_v33 = vcombine.low %v2781_v3, %v2781_v3 }
 0x392   :  { %6429 = vrot.lane.b32.xlu1 %v6428_v40, %s6795_s1  ;;  %v8184_v59 = vpack.c.bf16 %v2691_v27, %v2689_v62 }
 0x393   :  { %5506 = vmatprep.mubr.msk.bf16.mxu1 %vm2909_vm4, %v8176_v22  ;;  %3209 = vmatpush1.bf16.msra.mxu1 %v6626_v18  ;;  %v3189_v28 = vsel %vm2940_vm2, %v5534_v33, 0 }
 0x394   :  { %6434 = vrot.lane.b32.xlu0 %v6433_v41, %s6795_s1  ;;  %3210 = vmatprep.subr.bf16.mxu1 %v6631_v8 }
 0x395   :  { %3000 = vmatmul.mubr.bf16.gmra.mrb[28].mxu1 %v8184_v59 }
 0x396   :  { %6439 = vrot.lane.b32.xlu1 %v6438_v52, %s6795_s1 }
 0x397   :  { %3211 = vmatpush1.bf16.msra.mxu1 %v6629_v6 }
 0x398   :  { %6444 = vrot.lane.b32.xlu0 %v6443_v9, %s6795_s1  ;;  %3212 = vmatprep.subr.bf16.mxu1 %v6634_v4 }
 0x39a   :  { %v6345_v16 = vpop.permute.xlu0 %6344  ;;  %6449 = vrot.lane.b32.xlu1 %v6448_v58, %s6795_s1 }
 0x39b   :  { %v6347_v21 = vunpack.i.h.bf16 %v6345_v16  ;;  %v6346_v54 = vunpack.i.l.bf16 %v6345_v16  ;;  %3213 = vmatpush1.bf16.msra.mxu1 %v6632_v19 }
 0x39c   :  { %v6350_v10 = vpop.permute.xlu1 %6349  ;;  %5536 = vmatprep.subr.msk.bf16.mxu1 %vm2940_vm2, %v5535_v1 }
 0x39d   :  { %v2601_v12 = vsel %vm2592_vm3, %v6346_v54, %v6347_v21  ;;  %v6352_v32 = vunpack.i.h.bf16 %v6350_v10  ;;  %v6351_v55 = vunpack.i.l.bf16 %v6350_v10  ;;  %v2694_v29 = vmax.f32 %v7919_v49, %v6347_v21 }
 0x39e   :  { %v2693_v24 = vmax.f32 %v7917_v44, %v2601_v12  ;;  %v9231_v12 = vld [vmem:[#allocation9_spill] sm:$0xff] }
 0x39f   :  { %v2696_v35 = vmax.f32 %v7923_v14, %v6352_v32  ;;  %v2602_v18 = vsel %vm2592_vm3, %v6351_v55, %v6352_v32  ;;  %3215 = vmatpush1.bf16.msra.mxu1 %v3189_v28 }
 0x3a0   :  { %v2695_v40 = vmax.f32 %v7921_v57, %v2602_v18  ;;  %3463 = vmatprep.subr.bf16.mxu1 %v6639_v36 }
 0x3a1   :  { %v8220_v8 = vpack.c.bf16 %v2696_v35, %v2694_v29 }
 0x3a2   :  { %v8222_v62 = vpack.c.bf16 %v2695_v40, %v2693_v24 }
 0x3a3   :  { %5507 = vmatprep.mubr.msk.bf16.mxu1 %vm2909_vm4, %v8220_v8 }
 0x3a4   :  { %3010 = vmatmul.mubr.bf16.gmra.mrb[32].mxu1 %v8222_v62 }
 0x3aa   :  { %v6355_v49 = vpop.permute.xlu0 %6354 }
 0x3ab   :  { %v6357_v27 = vunpack.i.h.bf16 %v6355_v49  ;;  %v6356_v14 = vunpack.i.l.bf16 %v6355_v49 }
 0x3ac   :  { %v6360_v41 = vpop.permute.xlu1 %6359 }
 0x3ad   :  { %v2603_v6 = vsel %vm2592_vm3, %v6356_v14, %v6357_v27  ;;  %v6362_v52 = vunpack.i.h.bf16 %v6360_v41  ;;  %v6361_v44 = vunpack.i.l.bf16 %v6360_v41  ;;  %v2698_v57 = vmax.f32 %v7941_v30, %v6357_v27  ;;  %v9233_v14 = vld [vmem:[#allocation13_spill] sm:$0xff] }
 0x3ae   :  { %v2697_v9 = vmax.f32 %v7939_v48, %v2603_v6 }
 0x3af   :  { %v2700_v4 = vmax.f32 %v7945_v2, %v6362_v52  ;;  %v2604_v3 = vsel %vm2592_vm3, %v6361_v44, %v6362_v52  ;;  %v9234_v52 = vld [vmem:[#allocation10_spill] sm:$0xff] }
 0x3b0   :  { %v2699_v19 = vmax.f32 %v7943_v5, %v2604_v3 }
 0x3b1   :  { %v8233_v58 = vpack.c.bf16 %v2700_v4, %v2698_v57  ;;  %v9235_v57 = vld [vmem:[#allocation12_spill] sm:$0xff] }
 0x3b2   :  { %v8235_v1 = vpack.c.bf16 %v2699_v19, %v2697_v9 }
 0x3b3   :  { %5508 = vmatprep.mubr.msk.bf16.mxu1 %vm2909_vm4, %v8233_v58 }
 0x3b4   :  { %3020 = vmatmul.mubr.bf16.gmra.mrb[36].mxu1 %v8235_v1 }
 0x3ba   :  { %v6365_v33 = vpop.permute.xlu0 %6364 }
 0x3bb   :  { %v6367_v16 = vunpack.i.h.bf16 %v6365_v33  ;;  %v6366_v30 = vunpack.i.l.bf16 %v6365_v33 }
 0x3bc   :  { %v6370_v21 = vpop.permute.xlu1 %6369 }
 0x3bd   :  { %v2605_v2 = vsel %vm2592_vm3, %v6366_v30, %v6367_v16  ;;  %v6372_v54 = vunpack.i.h.bf16 %v6370_v21  ;;  %v6371_v10 = vunpack.i.l.bf16 %v6370_v21  ;;  %v2702_v48 = vmax.f32 %v7966_v26, %v6367_v16 }
 0x3be   :  { %v2701_v36 = vmax.f32 %v7964_v47, %v2605_v2  ;;  %v9232_v47 = vld [vmem:[#allocation11_spill] sm:$0xff] }
 0x3bf   :  { %v2704_v5 = vmax.f32 %v7970_v34, %v6372_v54  ;;  %v2606_v28 = vsel %vm2592_vm3, %v6371_v10, %v6372_v54  ;;  %v9236_v10 = vld [vmem:[#allocation15_spill] sm:$0xff] }
 0x3c0   :  { %v2703_v32 = vmax.f32 %v9231_v12, %v2606_v28  ;;  %v9238_v12 = vld [vmem:[#allocation14_spill] sm:$0xff] }
 0x3c1   :  { %v8246_v55 = vpack.c.bf16 %v2704_v5, %v2702_v48  ;;  %v9237_v5 = vld [vmem:[#allocation17_spill] sm:$0xff] }
 0x3c2   :  { %v8248_v29 = vpack.c.bf16 %v2703_v32, %v2701_v36 }
 0x3c3   :  { %5509 = vmatprep.mubr.msk.bf16.mxu1 %vm2909_vm4, %v8246_v55 }
 0x3c4   :  { %3030 = vmatmul.mubr.bf16.gmra.mrb[40].mxu1 %v8248_v29 }
 0x3ca   :  { %v6375_v35 = vpop.permute.xlu0 %6374 }
 0x3cb   :  { %v6377_v18 = vunpack.i.h.bf16 %v6375_v35  ;;  %v6376_v26 = vunpack.i.l.bf16 %v6375_v35  ;;  %v9239_v35 = vld [vmem:[#allocation16_spill] sm:$0xff] }
 0x3cc   :  { %v6380_v24 = vpop.permute.xlu1 %6379 }
 0x3cd   :  { %v2607_v34 = vsel %vm2592_vm3, %v6376_v26, %v6377_v18  ;;  %v6382_v40 = vunpack.i.h.bf16 %v6380_v24  ;;  %v6381_v49 = vunpack.i.l.bf16 %v6380_v24  ;;  %v2706_v27 = vmax.f32 %v9232_v47, %v6377_v18 }
 0x3ce   :  { %v2705_v44 = vmax.f32 %v9234_v52, %v2607_v34 }
 0x3cf   :  { %v2708_v41 = vmax.f32 %v9233_v14, %v6382_v40  ;;  %v2608_v6 = vsel %vm2592_vm3, %v6381_v49, %v6382_v40 }
 0x3d0   :  { %v2707_v4 = vmax.f32 %v9235_v57, %v2608_v6  ;;  %v9240_v57 = vld [vmem:[#allocation19_spill] sm:$0xff] }
 0x3d1   :  { %v8259_v3 = vpack.c.bf16 %v2708_v41, %v2706_v27 }
 0x3d2   :  { %v8261_v9 = vpack.c.bf16 %v2707_v4, %v2705_v44 }
 0x3d3   :  { %5510 = vmatprep.mubr.msk.bf16.mxu1 %vm2909_vm4, %v8259_v3 }
 0x3d4   :  { %3040 = vmatmul.mubr.bf16.gmra.mrb[44].mxu1 %v8261_v9 }
 0x3da   :  { %v6385_v19 = vpop.permute.xlu0 %6384 }
 0x3db   :  { %v6387_v33 = vunpack.i.h.bf16 %v6385_v19  ;;  %v6386_v16 = vunpack.i.l.bf16 %v6385_v19  ;;  %v9241_v19 = vld [vmem:[#allocation21_spill] sm:$0xff] }
 0x3dc   :  { %v6390_v30 = vpop.permute.xlu1 %6389 }
 0x3dd   :  { %v2609_v21 = vsel %vm2592_vm3, %v6386_v16, %v6387_v33  ;;  %v6392_v2 = vunpack.i.h.bf16 %v6390_v30  ;;  %v6391_v54 = vunpack.i.l.bf16 %v6390_v30  ;;  %v2710_v48 = vmax.f32 %v9236_v10, %v6387_v33 }
 0x3de   :  { %v2709_v32 = vmax.f32 %v9238_v12, %v2609_v21 }
 0x3df   :  { %v2712_v28 = vmax.f32 %v9237_v5, %v6392_v2  ;;  %v2610_v36 = vsel %vm2592_vm3, %v6391_v54, %v6392_v2 }
 0x3e0   :  { %v2711_v18 = vmax.f32 %v9239_v35, %v2610_v36 }
 0x3e1   :  { %v8272_v26 = vpack.c.bf16 %v2712_v28, %v2710_v48 }
 0x3e2   :  { %v8274_v24 = vpack.c.bf16 %v2711_v18, %v2709_v32 }
 0x3e3   :  { %5511 = vmatprep.mubr.msk.bf16.mxu1 %vm2909_vm4, %v8272_v26 }
 0x3e4   :  { %3050 = vmatmul.mubr.bf16.gmra.mrb[48].mxu1 %v8274_v24 }
 0x3ea   :  { %v6395_v34 = vpop.permute.xlu0 %6394 }
 0x3eb   :  { %v6397_v40 = vunpack.i.h.bf16 %v6395_v34  ;;  %v6396_v49 = vunpack.i.l.bf16 %v6395_v34 }
 0x3ec   :  { %v6400_v47 = vpop.permute.xlu1 %6399 }
 0x3ed   :  { %v2611_v27 = vsel %vm2592_vm3, %v6396_v49, %v6397_v40  ;;  %v6402_v14 = vunpack.i.h.bf16 %v6400_v47  ;;  %v6401_v41 = vunpack.i.l.bf16 %v6400_v47  ;;  %v2714_v6 = vmax.f32 %v8045_v37, %v6397_v40 }
 0x3ee   :  { %v2713_v4 = vmax.f32 %v9240_v57, %v2611_v27  ;;  %v9242_v57 = vld [vmem:[#allocation18_spill] sm:$0xff] }
 0x3ef   :  { %v2716_v52 = vmax.f32 %v8054_v53, %v6402_v14  ;;  %v2612_v44 = vsel %vm2592_vm3, %v6401_v41, %v6402_v14 }
 0x3f0   :  { %v2715_v33 = vmax.f32 %v9241_v19, %v2612_v44  ;;  %v6642_v44 = vld [vmem:[%s9186_s2 + $0x164] ss:$8 sps:$4 sm:$0xff]  }
 0x3f1   :  { %v8285_v16 = vpack.c.bf16 %v2716_v52, %v2714_v6  ;;  %v6648_v19 = vld [vmem:[%s9186_s2 + $0x184] ss:$8 sps:$4 sm:$0xff]  }
 0x3f2   :  { %v8287_v30 = vpack.c.bf16 %v2715_v33, %v2713_v4  ;;  %v6643_v4 = vld [vmem:[%s9186_s2 + $0x170] ss:$8 sps:$4 sm:$0xff]   ;;  %v9243_v33 = vld [vmem:[#allocation20_spill] sm:$0xff] }
 0x3f3   :  { %5512 = vmatprep.mubr.msk.bf16.mxu1 %vm2909_vm4, %v8285_v16 }
 0x3f4   :  { %3060 = vmatmul.mubr.bf16.gmra.mrb[52].mxu1 %v8287_v30 }
 0x3fa   :  { %v6405_v21 = vpop.permute.xlu0 %6404 }
 0x3fb   :  { %v6407_v2 = vunpack.i.h.bf16 %v6405_v21  ;;  %v6406_v37 = vunpack.i.l.bf16 %v6405_v21  ;;  %v6646_v21 = vld [vmem:[%s9186_s2 + $0x180] ss:$8 sps:$4 sm:$0xff]  }
 0x3fc   :  { %v6410_v54 = vpop.permute.xlu1 %6409 }
 0x3fd   :  { %v2613_v53 = vsel %vm2592_vm3, %v6406_v37, %v6407_v2  ;;  %v6412_v10 = vunpack.i.h.bf16 %v6410_v54  ;;  %v6411_v48 = vunpack.i.l.bf16 %v6410_v54  ;;  %v2718_v28 = vmax.f32 %v8102_v38, %v6407_v2  ;;  %v6651_v2 = vld [vmem:[%s9186_s2 + $0x194] ss:$8 sps:$4 sm:$0xff]   ;;  %v6649_v37 = vld [vmem:[%s9186_s2 + $0x190] ss:$8 sps:$4 sm:$0xff]   ;;  %v6654_v54 = vld [vmem:[%s9186_s2 + $0x1a4] ss:$8 sps:$4 sm:$0xff]  }
 0x3fe   :  { %v6415_v5 = vpop.permute.xlu0 %6414  ;;  %v2717_v35 = vmax.f32 %v8097_v23, %v2613_v53  ;;  %v6652_v53 = vld [vmem:[%s9186_s2 + $0x1a0] ss:$8 sps:$4 sm:$0xff]  }
 0x3ff   :  { %v2720_v36 = vmax.f32 %v8119_v61, %v6412_v10  ;;  %v2614_v12 = vsel %vm2592_vm3, %v6411_v48, %v6412_v10  ;;  %v6417_v32 = vunpack.i.h.bf16 %v6415_v5  ;;  %v6416_v49 = vunpack.i.l.bf16 %v6415_v5  ;;  %v6657_v10 = vld [vmem:[%s9186_s2 + $0x1b4] ss:$8 sps:$4 sm:$0xff]   ;;  %v6655_v48 = vld [vmem:[%s9186_s2 + $0x1b0] ss:$8 sps:$4 sm:$0xff]   ;;  %v6660_v5 = vld [vmem:[%s9186_s2 + $0x1c4] ss:$8 sps:$4 sm:$0xff]  }
 0x400   :  { %v2719_v18 = vmax.f32 %v8113_v15, %v2614_v12  ;;  %v6420_v34 = vpop.permute.xlu1 %6419  ;;  %v6661_v12 = vld [vmem:[%s9186_s2 + $0x1d0] ss:$8 sps:$4 sm:$0xff]  }
 0x401   :  { %v8298_v40 = vpack.c.bf16 %v2720_v36, %v2718_v28  ;;  %v6422_v47 = vunpack.i.h.bf16 %v6420_v34  ;;  %v6421_v27 = vunpack.i.l.bf16 %v6420_v34  ;;  %v2678_v41 = vmax.f32 %v7814_v11, %v6417_v32  ;;  %v6637_v11 = vld [vmem:[%s9186_s2 + $0x150] ss:$8 sps:$4 sm:$0xff]   ;;  %v6658_v28 = vld [vmem:[%s9186_s2 + $0x1c0] ss:$8 sps:$4 sm:$0xff]   ;;  %v6663_v36 = vld [vmem:[%s9186_s2 + $0x1d4] ss:$8 sps:$4 sm:$0xff]  }
 0x402   :  { %v8300_v14 = vpack.c.bf16 %v2719_v18, %v2717_v35  ;;  %v2593_v23 = vsel %vm2592_vm3, %v6416_v49, %v6417_v32  ;;  %v6666_v32 = vld [vmem:[%s9186_s2 + $0x1e4] ss:$8 sps:$4 sm:$0xff]   ;;  %v5567_v35 = vld [vmem:[%s9186_s2 + $0x1f0] sm:$0x11]  ;;  %v6664_v18 = vld [vmem:[%s9186_s2 + $0x1e0] ss:$8 sps:$4 sm:$0xff]  }
 0x403   :  { %v2680_v38 = vmax.f32 %v7824_v51, %v6422_v47  ;;  %5513 = vmatprep.mubr.msk.bf16.mxu1 %vm2909_vm4, %v8298_v40  ;;  %v2594_v61 = vsel %vm2592_vm3, %v6421_v27, %v6422_v47  ;;  %v2677_v52 = vmax.f32 %v7812_v31, %v2593_v23  ;;  %v6645_v31 = vld [vmem:[%s9186_s2 + $0x174] ss:$8 sps:$4 sm:$0xff]   ;;  %v5589_v34 = vcombine.high %v5567_v35, %v5567_v35  ;;  %v6675_v23 = vld [vmem:[%s9186_s2 + $0x218] ss:$8 sps:$4 sm:$0xff]  }
 0x404   :  { %3070 = vmatmul.mubr.bf16.gmra.mrb[56].mxu1 %v8300_v14  ;;  %v2679_v6 = vmax.f32 %v7819_v39, %v2594_v61  ;;  %v6640_v39 = vld [vmem:[%s9186_s2 + $0x160] ss:$8 sps:$4 sm:$0xff]   ;;  %v5588_v49 = vcombine.low %v5567_v35, %v5567_v35  ;;  %v6671_v27 = vld [vmem:[%s9186_s2 + $0x1fc] ss:$8 sps:$4 sm:$0xff]  }
 0x405   :  { %v2734_v15 = vpack.c.bf16 %v2680_v38, %v2678_v41  ;;  %v6669_v41 = vld [vmem:[%s9186_s2 + $0x1f8] ss:$8 sps:$4 sm:$0xff]   ;;  %v6674_v38 = vld [vmem:[%s9186_s2 + $0x20c] ss:$8 sps:$4 sm:$0xff]   ;;  %v6672_v61 = vld [vmem:[%s9186_s2 + $0x208] ss:$8 sps:$4 sm:$0xff]  }
 0x406   :  { %v2733_v51 = vpack.c.bf16 %v2679_v6, %v2677_v52  ;;  %v3458_v47 = vsel %vm2940_vm2, %v5588_v49, 0  ;;  %v6683_v6 = vld [vmem:[%s9186_s2 + $0x23c] ss:$8 sps:$4 sm:$0xff]   ;;  %v6681_v52 = vld [vmem:[%s9186_s2 + $0x238] ss:$8 sps:$4 sm:$0xff]  }
 0x407   :  { %5537 = vmatprep.mubr.msk.bf16.mxu1 %vm2909_vm4, %v2734_v15  ;;  %v6678_v15 = vld [vmem:[%s9186_s2 + $0x228] ss:$8 sps:$4 sm:$0xff]  }
 0x40c   :  { %3227 = vmatmul.mubr.bf16.vlgmr.msra.gmra.mrb[20].mxu1 %v2733_v51  ;;  %v6684_v51 = vld [vmem:[%s9186_s2 + $0x248] ss:$8 sps:$4 sm:$0xff]  }
 0x40d   :  { %5538 = vmatprep.mubr.msk.bf16.mxu1 %vm2909_vm4, %v9242_v57  ;;  %3464 = vmatpush1.bf16.msra.mxu1 %v6637_v11  ;;  %v6686_v11 = vld [vmem:[%s9186_s2 + $0x24c] ss:$8 sps:$4 sm:$0xff]   ;;  %v6687_v57 = vld [vmem:[%s9186_s2 + $0x258] ss:$8 sps:$4 sm:$0xff]  }
 0x40e   :  { %3465 = vmatprep.subr.bf16.mxu1 %v6642_v44  ;;  %v6689_v44 = vld [vmem:[%s9186_s2 + $0x25c] ss:$8 sps:$4 sm:$0xff]  }
 0x411   :  { %3466 = vmatpush1.bf16.msra.mxu1 %v6640_v39  ;;  %v6692_v39 = vld [vmem:[%s9186_s2 + $0x26c] ss:$8 sps:$4 sm:$0xff]  }
 0x412   :  { %3467 = vmatprep.subr.bf16.mxu1 %v6645_v31  ;;  %v6690_v31 = vld [vmem:[%s9186_s2 + $0x268] ss:$8 sps:$4 sm:$0xff]  }
 0x414   :  { %3237 = vmatmul.mubr.bf16.gmra.mrb[24].mxu1 %v9243_v33  ;;  %v6698_v33 = vld [vmem:[%s9186_s2 + $0x28c] ss:$8 sps:$4 sm:$0xff]  }
 0x415   :  { %5539 = vmatprep.mubr.msk.bf16.mxu1 %vm2909_vm4, %v8095_v42  ;;  %3468 = vmatpush1.bf16.msra.mxu1 %v6643_v4  ;;  %v6695_v4 = vld [vmem:[%s9186_s2 + $0x27c] ss:$8 sps:$4 sm:$0xff]  }
 0x416   :  { %3469 = vmatprep.subr.bf16.mxu1 %v6648_v19  ;;  %v6693_v19 = vld [vmem:[%s9186_s2 + $0x278] ss:$8 sps:$4 sm:$0xff]  }
 0x419   :  { %3470 = vmatpush1.bf16.msra.mxu1 %v6646_v21  ;;  %v5621_v21 = vld [vmem:[%s9186_s2 + $0x298] sm:$0x11] }
 0x41a   :  { %3471 = vmatprep.subr.bf16.mxu1 %v6651_v2  ;;  %v6696_v2 = vld [vmem:[%s9186_s2 + $0x288] ss:$8 sps:$4 sm:$0xff]  }
 0x41c   :  { %3247 = vmatmul.mubr.bf16.gmra.mrb[28].mxu1 %v8104_v17 }
 0x41d   :  { %5540 = vmatprep.mubr.msk.bf16.mxu1 %vm2909_vm4, %v8176_v22  ;;  %3472 = vmatpush1.bf16.msra.mxu1 %v6649_v37  ;;  %v5643_v37 = vcombine.high %v5621_v21, %v5621_v21 }
 0x41e   :  { %3473 = vmatprep.subr.bf16.mxu1 %v6654_v54  ;;  %v5642_v54 = vcombine.low %v5621_v21, %v5621_v21 }
 0x421   :  { %3474 = vmatpush1.bf16.msra.mxu1 %v6652_v53  ;;  %v3767_v53 = vsel %vm2940_vm2, %v5642_v54, 0 }
 0x422   :  { %3475 = vmatprep.subr.bf16.mxu1 %v6657_v10  ;;  %v6703_v10 = vld [vmem:[%s9186_s2 + $0x2a4] ss:$8 sps:$4 sm:$0xff]  }
 0x424   :  { %3257 = vmatmul.mubr.bf16.gmra.mrb[32].mxu1 %v8184_v59 }
 0x425   :  { %5541 = vmatprep.mubr.msk.bf16.mxu1 %vm2909_vm4, %v8220_v8  ;;  %3476 = vmatpush1.bf16.msra.mxu1 %v6655_v48  ;;  %v6430_v48 = vpop.permute.xlu1 %6429 }
 0x426   :  { %3477 = vmatprep.subr.bf16.mxu1 %v6660_v5  ;;  %v6425_v5 = vpop.permute.xlu0 %6424 }
 0x429   :  { %3478 = vmatpush1.bf16.msra.mxu1 %v6658_v28  ;;  %v6432_v28 = vunpack.i.h.bf16 %v6430_v48 }
 0x42a   :  { %3479 = vmatprep.subr.bf16.mxu1 %v6663_v36  ;;  %v6427_v36 = vunpack.i.h.bf16 %v6425_v5  ;;  %v6435_v54 = vpop.permute.xlu0 %6434 }
 0x42c   :  { %3267 = vmatmul.mubr.bf16.gmra.mrb[36].mxu1 %v8222_v62  ;;  %v2722_v35 = vmax.f32 %v8147_v46, %v6427_v36  ;;  %v6701_v46 = vld [vmem:[%s9186_s2 + $0x2a0] ss:$8 sps:$4 sm:$0xff]  }
 0x42d   :  { %5542 = vmatprep.mubr.msk.bf16.mxu1 %vm2909_vm4, %v8233_v58  ;;  %3480 = vmatpush1.bf16.msra.mxu1 %v6661_v12  ;;  %v2724_v12 = vmax.f32 %v8157_v20, %v6432_v28 }
 0x42e   :  { %3481 = vmatprep.subr.bf16.mxu1 %v6666_v32  ;;  %v6431_v32 = vunpack.i.l.bf16 %v6430_v48 }
 0x430   :  { %v2616_v49 = vsel %vm2592_vm3, %v6431_v32, %v6432_v28 }
 0x431   :  { %3482 = vmatpush1.bf16.msra.mxu1 %v6664_v18  ;;  %v6426_v18 = vunpack.i.l.bf16 %v6425_v5 }
 0x432   :  { %5590 = vmatprep.subr.msk.bf16.mxu1 %vm2940_vm2, %v5589_v34  ;;  %v8497_v34 = vpack.c.bf16 %v2724_v12, %v2722_v35 }
 0x434   :  { %3277 = vmatmul.mubr.bf16.gmra.mrb[40].mxu1 %v8235_v1 }
 0x435   :  { %5543 = vmatprep.mubr.msk.bf16.mxu1 %vm2909_vm4, %v8246_v55  ;;  %3484 = vmatpush1.bf16.msra.mxu1 %v3458_v47  ;;  %v2615_v47 = vsel %vm2592_vm3, %v6426_v18, %v6427_v36  ;;  %v6436_v36 = vunpack.i.l.bf16 %v6435_v54 }
 0x436   :  { %3772 = vmatprep.subr.bf16.mxu1 %v6671_v27  ;;  %v2723_v27 = vmax.f32 %v8155_v7, %v2616_v49  ;;  %v6709_v7 = vld [vmem:[%s9186_s2 + $0x2c4] ss:$8 sps:$4 sm:$0xff]  }
 0x43c   :  { %3287 = vmatmul.mubr.bf16.gmra.mrb[44].mxu1 %v8248_v29 }
 0x43d   :  { %5544 = vmatprep.mubr.msk.bf16.mxu1 %vm2909_vm4, %v8259_v3 }
 0x444   :  { %3297 = vmatmul.mubr.bf16.gmra.mrb[48].mxu1 %v8261_v9 }
 0x445   :  { %5545 = vmatprep.mubr.msk.bf16.mxu1 %vm2909_vm4, %v8272_v26 }
 0x44c   :  { %3307 = vmatmul.mubr.bf16.gmra.mrb[52].mxu1 %v8274_v24 }
 0x44d   :  { %5546 = vmatprep.mubr.msk.bf16.mxu1 %vm2909_vm4, %v8285_v16 }
 0x454   :  { %3317 = vmatmul.mubr.bf16.gmra.mrb[56].mxu1 %v8287_v30 }
 0x455   :  { %5591 = vmatprep.mubr.msk.bf16.mxu1 %vm2909_vm4, %v8095_v42  ;;  %v6677_v42 = vld [vmem:[%s9186_s2 + $0x21c] ss:$8 sps:$4 sm:$0xff]  }
 0x45c   :  { %3496 = vmatmul.mubr.bf16.vlgmr.msra.gmra.mrb[20].mxu1 %v8104_v17  ;;  %v6680_v17 = vld [vmem:[%s9186_s2 + $0x22c] ss:$8 sps:$4 sm:$0xff]  }
 0x45d   :  { %5592 = vmatprep.mubr.msk.bf16.mxu1 %vm2909_vm4, %v8176_v22  ;;  %3773 = vmatpush1.bf16.msra.mxu1 %v6669_v41  ;;  %v2721_v41 = vmax.f32 %v8142_v25, %v2615_v47  ;;  %v6704_v25 = vld [vmem:[%s9186_s2 + $0x2b0] ss:$8 sps:$4 sm:$0xff]  }
 0x45e   :  { %3774 = vmatprep.subr.bf16.mxu1 %v6674_v38  ;;  %v6706_v38 = vld [vmem:[%s9186_s2 + $0x2b4] ss:$8 sps:$4 sm:$0xff]  }
 0x45f   :  { %v8506_v20 = vpack.c.bf16 %v2723_v27, %v2721_v41  ;;  %v4254_v27 = vld [vmem:[%s9187_s3] sm:$0x3] }
 0x461   :  { %3775 = vmatpush1.bf16.msra.mxu1 %v6672_v61  ;;  %v6710_v61 = vld [vmem:[%s9186_s2 + $0x2d0] ss:$8 sps:$4 sm:$0xff]  }
 0x462   :  { %3776 = vmatprep.subr.bf16.mxu1 %v6677_v42  ;;  %v6715_v42 = vld [vmem:[%s9186_s2 + $0x2e4] ss:$8 sps:$4 sm:$0xff]  }
 0x464   :  { %3506 = vmatmul.mubr.bf16.gmra.mrb[24].mxu1 %v8184_v59 }
 0x465   :  { %5593 = vmatprep.mubr.msk.bf16.mxu1 %vm2909_vm4, %v8220_v8  ;;  %3777 = vmatpush1.bf16.msra.mxu1 %v6675_v23  ;;  %v6713_v23 = vld [vmem:[%s9186_s2 + $0x2e0] ss:$8 sps:$4 sm:$0xff]  }
 0x466   :  { %3778 = vmatprep.subr.bf16.mxu1 %v6680_v17  ;;  %v6718_v17 = vld [vmem:[%s9186_s2 + $0x2f4] ss:$8 sps:$4 sm:$0xff]  }
 0x469   :  { %3779 = vmatpush1.bf16.msra.mxu1 %v6678_v15  ;;  %v6716_v15 = vld [vmem:[%s9186_s2 + $0x2f0] ss:$8 sps:$4 sm:$0xff]  }
 0x46a   :  { %3780 = vmatprep.subr.bf16.mxu1 %v6683_v6  ;;  %v6721_v6 = vld [vmem:[%s9186_s2 + $0x304] ss:$8 sps:$4 sm:$0xff]  }
 0x46c   :  { %3516 = vmatmul.mubr.bf16.gmra.mrb[28].mxu1 %v8222_v62 }
 0x46d   :  { %5594 = vmatprep.mubr.msk.bf16.mxu1 %vm2909_vm4, %v8233_v58  ;;  %3781 = vmatpush1.bf16.msra.mxu1 %v6681_v52  ;;  %v6719_v52 = vld [vmem:[%s9186_s2 + $0x300] ss:$8 sps:$4 sm:$0xff]  }
 0x46e   :  { %3782 = vmatprep.subr.bf16.mxu1 %v6686_v11  ;;  %v6724_v11 = vld [vmem:[%s9186_s2 + $0x314] ss:$8 sps:$4 sm:$0xff]  }
 0x471   :  { %3783 = vmatpush1.bf16.msra.mxu1 %v6684_v51  ;;  %v6722_v51 = vld [vmem:[%s9186_s2 + $0x310] ss:$8 sps:$4 sm:$0xff]  }
 0x472   :  { %3784 = vmatprep.subr.bf16.mxu1 %v6689_v44  ;;  %v6727_v44 = vld [vmem:[%s9186_s2 + $0x324] ss:$8 sps:$4 sm:$0xff]  }
 0x474   :  { %3526 = vmatmul.mubr.bf16.gmra.mrb[32].mxu1 %v8235_v1 }
 0x475   :  { %5595 = vmatprep.mubr.msk.bf16.mxu1 %vm2909_vm4, %v8246_v55  ;;  %3785 = vmatpush1.bf16.msra.mxu1 %v6687_v57  ;;  %v6725_v57 = vld [vmem:[%s9186_s2 + $0x320] ss:$8 sps:$4 sm:$0xff]  }
 0x476   :  { %3786 = vmatprep.subr.bf16.mxu1 %v6692_v39  ;;  %v6730_v39 = vld [vmem:[%s9186_s2 + $0x334] ss:$8 sps:$4 sm:$0xff]  }
 0x479   :  { %3787 = vmatpush1.bf16.msra.mxu1 %v6690_v31  ;;  %v5675_v31 = vld [vmem:[%s9186_s2 + $0x340] sm:$0x11] }
 0x47a   :  { %3788 = vmatprep.subr.bf16.mxu1 %v6695_v4  ;;  %v6728_v4 = vld [vmem:[%s9186_s2 + $0x330] ss:$8 sps:$4 sm:$0xff]  }
 0x47c   :  { %3536 = vmatmul.mubr.bf16.gmra.mrb[36].mxu1 %v8248_v29 }
 0x47d   :  { %5596 = vmatprep.mubr.msk.bf16.mxu1 %vm2909_vm4, %v8259_v3  ;;  %3789 = vmatpush1.bf16.msra.mxu1 %v6693_v19  ;;  %v5697_v19 = vcombine.high %v5675_v31, %v5675_v31 }
 0x47e   :  { %3790 = vmatprep.subr.bf16.mxu1 %v6698_v33  ;;  %v5696_v33 = vcombine.low %v5675_v31, %v5675_v31 }
 0x480   :  { %v4076_v21 = vsel %vm2940_vm2, %v5696_v33, 0 }
 0x481   :  { %3791 = vmatpush1.bf16.msra.mxu1 %v6696_v2  ;;  %v9244_v2 = vmov 0  }
 0x482   :  { %5644 = vmatprep.subr.msk.bf16.mxu1 %vm2940_vm2, %v5643_v37  ;;  %v6440_v37 = vpop.permute.xlu1 %6439 }
 0x483   :  { %v6441_v5 = vunpack.i.l.bf16 %v6440_v37 }
 0x484   :  { %3546 = vmatmul.mubr.bf16.gmra.mrb[40].mxu1 %v8261_v9 }
 0x485   :  { %5597 = vmatprep.mubr.msk.bf16.mxu1 %vm2909_vm4, %v8272_v26  ;;  %3793 = vmatpush1.bf16.msra.mxu1 %v3767_v53  ;;  %v6442_v53 = vunpack.i.h.bf16 %v6440_v37 }
 0x486   :  { %4081 = vmatprep.subr.bf16.mxu1 %v6703_v10  ;;  %v6437_v10 = vunpack.i.h.bf16 %v6435_v54 }
 0x487   :  { %v2728_v48 = vmax.f32 %v7737_v43, %v6442_v53  ;;  %v2618_v32 = vsel %vm2592_vm3, %v6441_v5, %v6442_v53 }
 0x488   :  { %v2726_v28 = vmax.f32 %v7732_v13, %v6437_v10  ;;  %v2617_v35 = vsel %vm2592_vm3, %v6436_v36, %v6437_v10  ;;  %v2727_v18 = vmax.f32 %v7734_v63, %v2618_v32  ;;  %v6445_v13 = vpop.permute.xlu0 %6444 }
 0x489   :  { %v2725_v49 = vmax.f32 %v7730_v0, %v2617_v35  ;;  %v6450_v0 = vpop.permute.xlu1 %6449  ;;  %v6447_v43 = vunpack.i.h.bf16 %v6445_v13 }
 0x48a   :  { %v2758_v12 = vpack.c.bf16 %v2728_v48, %v2726_v28  ;;  %v6452_v63 = vunpack.i.h.bf16 %v6450_v0 }
 0x48b   :  { %v2757_v47 = vpack.c.bf16 %v2727_v18, %v2725_v49  ;;  %v6741_v18 = vld [vmem:[%s9188_s4 + $0x88] sm:$0xff]  }
 0x48c   :  { %3556 = vmatmul.mubr.bf16.gmra.mrb[44].mxu1 %v8274_v24 }
 0x48d   :  { %5598 = vmatprep.mubr.msk.bf16.mxu1 %vm2909_vm4, %v8285_v16 }
 0x494   :  { %3566 = vmatmul.mubr.bf16.gmra.mrb[48].mxu1 %v8287_v30 }
 0x495   :  { %5599 = vmatprep.mubr.msk.bf16.mxu1 %vm2909_vm4, %v8298_v40 }
 0x49c   :  { %3576 = vmatmul.mubr.bf16.gmra.mrb[52].mxu1 %v8300_v14 }
 0x49d   :  { %5600 = vmatprep.mubr.msk.bf16.mxu1 %vm2909_vm4, %v8497_v34 }
 0x4a4   :  { %3586 = vmatmul.mubr.bf16.gmra.mrb[56].mxu1 %v8506_v20 }
 0x4a5   :  { %5645 = vmatprep.mubr.msk.bf16.mxu1 %vm2909_vm4, %v8176_v22  ;;  %v6707_v22 = vld [vmem:[%s9186_s2 + $0x2c0] ss:$8 sps:$4 sm:$0xff]  }
 0x4ac   :  { %3805 = vmatmul.mubr.bf16.vlgmr.msra.gmra.mrb[20].mxu1 %v8184_v59  ;;  %v6712_v59 = vld [vmem:[%s9186_s2 + $0x2d4] ss:$8 sps:$4 sm:$0xff]  }
 0x4ad   :  { %5646 = vmatprep.mubr.msk.bf16.mxu1 %vm2909_vm4, %v8220_v8  ;;  %4082 = vmatpush1.bf16.msra.mxu1 %v6701_v46  ;;  %v9245_v46 = vld [vmem:[#allocation8_spill] sm:$0xff] }
 0x4ae   :  { %4083 = vmatprep.subr.bf16.mxu1 %v6706_v38  ;;  %v9246_v38 = vsub.s32 0, %v9245_v46 }
 0x4b1   :  { %4084 = vmatpush1.bf16.msra.mxu1 %v6704_v25  ;;  %v8675_v25 = vrot.slane %v4254_v27, %v9246_v38 }
 0x4b2   :  { %4085 = vmatprep.subr.bf16.mxu1 %v6709_v7 }
 0x4b4   :  { %3815 = vmatmul.mubr.bf16.gmra.mrb[24].mxu1 %v8222_v62 }
 0x4b5   :  { %5647 = vmatprep.mubr.msk.bf16.mxu1 %vm2909_vm4, %v8233_v58  ;;  %4086 = vmatpush1.bf16.msra.mxu1 %v6707_v22  ;;  %v9247_v22 = vsub.s32 1, %v9245_v46 }
 0x4b6   :  { %4087 = vmatprep.subr.bf16.mxu1 %v6712_v59 }
 0x4b7   :  { %v8679_v59 = vrot.slane %v4254_v27, %v9247_v22 }
 0x4b9   :  { %4088 = vmatpush1.bf16.msra.mxu1 %v6710_v61 }
 0x4ba   :  { %4089 = vmatprep.subr.bf16.mxu1 %v6715_v42 }
 0x4bc   :  { %3825 = vmatmul.mubr.bf16.gmra.mrb[28].mxu1 %v8235_v1 }
 0x4bd   :  { %5648 = vmatprep.mubr.msk.bf16.mxu1 %vm2909_vm4, %v8246_v55  ;;  %4090 = vmatpush1.bf16.msra.mxu1 %v6713_v23 }
 0x4be   :  { %4091 = vmatprep.subr.bf16.mxu1 %v6718_v17 }
 0x4c1   :  { %4092 = vmatpush1.bf16.msra.mxu1 %v6716_v15 }
 0x4c2   :  { %4093 = vmatprep.subr.bf16.mxu1 %v6721_v6 }
 0x4c4   :  { %3835 = vmatmul.mubr.bf16.gmra.mrb[32].mxu1 %v8248_v29 }
 0x4c5   :  { %5649 = vmatprep.mubr.msk.bf16.mxu1 %vm2909_vm4, %v8259_v3  ;;  %4094 = vmatpush1.bf16.msra.mxu1 %v6719_v52 }
 0x4c6   :  { %4095 = vmatprep.subr.bf16.mxu1 %v6724_v11 }
 0x4c9   :  { %4096 = vmatpush1.bf16.msra.mxu1 %v6722_v51 }
 0x4ca   :  { %4097 = vmatprep.subr.bf16.mxu1 %v6727_v44 }
 0x4cc   :  { %3845 = vmatmul.mubr.bf16.gmra.mrb[36].mxu1 %v8261_v9 }
 0x4cd   :  { %5650 = vmatprep.mubr.msk.bf16.mxu1 %vm2909_vm4, %v8272_v26  ;;  %4098 = vmatpush1.bf16.msra.mxu1 %v6725_v57 }
 0x4ce   :  { %4099 = vmatprep.subr.bf16.mxu1 %v6730_v39 }
 0x4d1   :  { %4100 = vmatpush1.bf16.msra.mxu1 %v6728_v4 }
 0x4d2   :  { %5698 = vmatprep.subr.msk.bf16.mxu1 %vm2940_vm2, %v5697_v19 }
 0x4d4   :  { %3855 = vmatmul.mubr.bf16.gmra.mrb[40].mxu1 %v8274_v24 }
 0x4d5   :  { %5651 = vmatprep.mubr.msk.bf16.mxu1 %vm2909_vm4, %v8285_v16  ;;  %4102 = vmatpush1.bf16.msra.mxu1 %v4076_v21 }
 0x4d6   :  { %4602 = vmatprep.subr.bf16.mxu1 %v9244_v2 }
 0x4dc   :  { %3865 = vmatmul.mubr.bf16.gmra.mrb[44].mxu1 %v8287_v30 }
 0x4dd   :  { %5652 = vmatprep.mubr.msk.bf16.mxu1 %vm2909_vm4, %v8298_v40 }
 0x4e4   :  { %3875 = vmatmul.mubr.bf16.gmra.mrb[48].mxu1 %v8300_v14 }
 0x4e5   :  { %5653 = vmatprep.mubr.msk.bf16.mxu1 %vm2909_vm4, %v8497_v34 }
 0x4ec   :  { %3885 = vmatmul.mubr.bf16.gmra.mrb[52].mxu1 %v8506_v20 }
 0x4ed   :  { %5654 = vmatprep.mubr.msk.bf16.mxu1 %vm2909_vm4, %v2758_v12 }
 0x4f4   :  { %3895 = vmatmul.mubr.bf16.gmra.mrb[56].mxu1 %v2757_v47 }
 0x4f5   :  { %5699 = vmatprep.mubr.msk.bf16.mxu1 %vm2909_vm4, %v8220_v8  ;;  %v2732_v8 = vmax.f32 %v7784_v60, %v6452_v63  ;;  %v6733_v60 = vld [vmem:[%s9188_s4 + $0x48] sm:$0xff]  }
 0x4fc   :  { %4114 = vmatmul.mubr.bf16.vlgmr.msra.gmra.mrb[20].mxu1 %v8222_v62  ;;  %v6451_v62 = vunpack.i.l.bf16 %v6450_v0 }
 0x4fd   :  { %5700 = vmatprep.mubr.msk.bf16.mxu1 %vm2909_vm4, %v8233_v58  ;;  %v2730_v58 = vmax.f32 %v7780_v50, %v6447_v43  ;;  %4603 = vmatpush1.bf16.msra.mxu1 %v6733_v60  ;;  %v6734_v50 = vld [vmem:[%s9188_s4 + $0x50] sm:$0xff]  }
 0x4fe   :  { %4604 = vmatprep.subr.bf16.mxu1 %v9244_v2 }
 0x501   :  { %4605 = vmatpush1.bf16.msra.mxu1 %v6734_v50 }
 0x502   :  { %4606 = vmatprep.subr.bf16.mxu1 %v9244_v2 }
 0x504   :  { %4124 = vmatmul.mubr.bf16.gmra.mrb[24].mxu1 %v8235_v1  ;;  %v6446_v1 = vunpack.i.l.bf16 %v6445_v13 }
 0x505   :  { %5701 = vmatprep.mubr.msk.bf16.mxu1 %vm2909_vm4, %v8246_v55  ;;  %v2760_v55 = vpack.c.bf16 %v2732_v8, %v2730_v58 }
 0x50c   :  { %4134 = vmatmul.mubr.bf16.gmra.mrb[28].mxu1 %v8248_v29  ;;  %v2620_v29 = vsel %vm2592_vm3, %v6451_v62, %v6452_v63 }
 0x50d   :  { %5702 = vmatprep.mubr.msk.bf16.mxu1 %vm2909_vm4, %v8259_v3  ;;  %v2619_v3 = vsel %vm2592_vm3, %v6446_v1, %v6447_v43 }
 0x514   :  { %4144 = vmatmul.mubr.bf16.gmra.mrb[32].mxu1 %v8261_v9  ;;  %v2731_v9 = vmax.f32 %v7782_v56, %v2620_v29  ;;  %v6735_v56 = vld [vmem:[%s9188_s4 + $0x58] sm:$0xff]  }
 0x515   :  { %5703 = vmatprep.mubr.msk.bf16.mxu1 %vm2909_vm4, %v8272_v26  ;;  %v2729_v26 = vmax.f32 %v7775_v45, %v2619_v3  ;;  %4607 = vmatpush1.bf16.msra.mxu1 %v6735_v56  ;;  %v6736_v45 = vld [vmem:[%s9188_s4 + $0x60] sm:$0xff]  }
 0x516   :  { %4608 = vmatprep.subr.bf16.mxu1 %v9244_v2 }
 0x519   :  { %4609 = vmatpush1.bf16.msra.mxu1 %v6736_v45 }
 0x51a   :  { %4610 = vmatprep.subr.bf16.mxu1 %v9244_v2 }
 0x51c   :  { %4154 = vmatmul.mubr.bf16.gmra.mrb[36].mxu1 %v8274_v24  ;;  %v2759_v24 = vpack.c.bf16 %v2731_v9, %v2729_v26 }
 0x51d   :  { %5704 = vmatprep.mubr.msk.bf16.mxu1 %vm2909_vm4, %v8285_v16  ;;  %v6737_v16 = vld [vmem:[%s9188_s4 + $0x68] sm:$0xff]  }
 0x51e   :  { %4611 = vmatpush1.bf16.msra.mxu1 %v6737_v16 }
 0x51f   :  { %4612 = vmatprep.subr.bf16.mxu1 %v9244_v2 }
 0x524   :  { %4164 = vmatmul.mubr.bf16.gmra.mrb[40].mxu1 %v8287_v30  ;;  %v6738_v30 = vld [vmem:[%s9188_s4 + $0x70] sm:$0xff]  }
 0x525   :  { %5705 = vmatprep.mubr.msk.bf16.mxu1 %vm2909_vm4, %v8298_v40  ;;  %4613 = vmatpush1.bf16.msra.mxu1 %v6738_v30  ;;  %v6739_v40 = vld [vmem:[%s9188_s4 + $0x78] sm:$0xff]  }
 0x526   :  { %4614 = vmatprep.subr.bf16.mxu1 %v9244_v2 }
 0x529   :  { %4615 = vmatpush1.bf16.msra.mxu1 %v6739_v40 }
 0x52a   :  { %4616 = vmatprep.subr.bf16.mxu1 %v9244_v2 }
 0x52c   :  { %4174 = vmatmul.mubr.bf16.gmra.mrb[44].mxu1 %v8300_v14  ;;  %v6740_v14 = vld [vmem:[%s9188_s4 + $0x80] sm:$0xff]  }
 0x52d   :  { %5706 = vmatprep.mubr.msk.bf16.mxu1 %vm2909_vm4, %v8497_v34  ;;  %4617 = vmatpush1.bf16.msra.mxu1 %v6740_v14 }
 0x52e   :  { %4618 = vmatprep.subr.bf16.mxu1 %v9244_v2 }
 0x531   :  { %4619 = vmatpush1.bf16.msra.mxu1 %v6741_v18 }
 0x532   :  { %4700 = vmatprep.subr.bf16.mxu1 %v9244_v2 }
 0x534   :  { %4184 = vmatmul.mubr.bf16.gmra.mrb[48].mxu1 %v8506_v20 }
 0x535   :  { %5707 = vmatprep.mubr.msk.bf16.mxu1 %vm2909_vm4, %v2758_v12 }
 0x53c   :  { %4194 = vmatmul.mubr.bf16.gmra.mrb[52].mxu1 %v2757_v47 }
 0x53d   :  { %5708 = vmatprep.mubr.msk.bf16.mxu1 %vm2909_vm4, %v2760_v55 }
 0x544   :  { %4204 = vmatmul.mubr.bf16.gmra.mrb[56].mxu1 %v2759_v24 }
 0x5cf   :  { %v4115_v34 = vpop.f32.mrb[20].mxu1 }
 0x5d0   :  { %v4117_v41 = vpop.f32.mrb[21].mxu1  ;;  %v4266_v61 = vadd.f32 %v8675_v25, %v4115_v34 }
 0x5d1   :  { %v4119_v20 = vpop.f32.mrb[22].mxu1  ;;  %v4267_v42 = vadd.f32 %v8679_v59, %v4117_v41 }
 0x5d2   :  { %v4121_v7 = vpop.f32.mrb[23].mxu1  ;;  %v4268_v17 = vadd.f32 %v8675_v25, %v4119_v20  ;;  %v4306_v44 = vmax.f32 %v4266_v61, 0.0 }
 0x5d3   :  { %v4269_v52 = vadd.f32 %v8679_v59, %v4121_v7  ;;  %v4307_v4 = vmax.f32 %v4267_v42, 0.0 }
 0x5d4   :  { %v4308_v21 = vmax.f32 %v4268_v17, 0.0 }
 0x5d5   :  { %v4309_v53 = vmax.f32 %v4269_v52, 0.0 }
 0x5d7   :  { %v4125_v23 = vpop.f32.mrb[24].mxu1 }
 0x5d8   :  { %v4270_v15 = vadd.f32 %v8675_v25, %v4125_v23  ;;  %v4127_v6 = vpop.f32.mrb[25].mxu1 }
 0x5d9   :  { %v4271_v11 = vadd.f32 %v8679_v59, %v4127_v6  ;;  %v4129_v51 = vpop.f32.mrb[26].mxu1 }
 0x5da   :  { %v4310_v57 = vmax.f32 %v4270_v15, 0.0  ;;  %v4272_v39 = vadd.f32 %v8675_v25, %v4129_v51  ;;  %v4131_v31 = vpop.f32.mrb[27].mxu1 }
 0x5db   :  { %v4311_v19 = vmax.f32 %v4271_v11, 0.0  ;;  %v4273_v33 = vadd.f32 %v8679_v59, %v4131_v31 }
 0x5dc   :  { %v8689_v37 = vmax.f32 %v4306_v44, %v4310_v57  ;;  %v4312_v54 = vmax.f32 %v4272_v39, 0.0 }
 0x5dd   :  { %v8691_v10 = vmax.f32 %v4307_v4, %v4311_v19  ;;  %v4313_v48 = vmax.f32 %v4273_v33, 0.0 }
 0x5de   :  { %v8693_v5 = vmax.f32 %v4308_v21, %v4312_v54 }
 0x5df   :  { %v8695_v28 = vmax.f32 %v4309_v53, %v4313_v48  ;;  %v4135_v36 = vpop.f32.mrb[28].mxu1 }
 0x5e0   :  { %v4137_v12 = vpop.f32.mrb[29].mxu1  ;;  %v4274_v49 = vadd.f32 %v8675_v25, %v4135_v36 }
 0x5e1   :  { %v4139_v32 = vpop.f32.mrb[30].mxu1  ;;  %v4275_v47 = vadd.f32 %v8679_v59, %v4137_v12 }
 0x5e2   :  { %v4141_v35 = vpop.f32.mrb[31].mxu1  ;;  %v4276_v13 = vadd.f32 %v8675_v25, %v4139_v32  ;;  %v4314_v1 = vmax.f32 %v4274_v49, 0.0 }
 0x5e3   :  { %v4277_v8 = vadd.f32 %v8679_v59, %v4141_v35  ;;  %v4315_v9 = vmax.f32 %v4275_v47, 0.0 }
 0x5e4   :  { %v4316_v60 = vmax.f32 %v4276_v13, 0.0 }
 0x5e5   :  { %v4317_v45 = vmax.f32 %v4277_v8, 0.0 }
 0x5e7   :  { %v4145_v0 = vpop.f32.mrb[32].mxu1 }
 0x5e8   :  { %v4278_v63 = vadd.f32 %v8675_v25, %v4145_v0  ;;  %v4147_v43 = vpop.f32.mrb[33].mxu1 }
 0x5e9   :  { %v4279_v62 = vadd.f32 %v8679_v59, %v4147_v43  ;;  %v4149_v58 = vpop.f32.mrb[34].mxu1 }
 0x5ea   :  { %v4318_v55 = vmax.f32 %v4278_v63, 0.0  ;;  %v4280_v29 = vadd.f32 %v8675_v25, %v4149_v58  ;;  %v4151_v3 = vpop.f32.mrb[35].mxu1 }
 0x5eb   :  { %v4319_v26 = vmax.f32 %v4279_v62, 0.0  ;;  %v4281_v24 = vadd.f32 %v8679_v59, %v4151_v3 }
 0x5ec   :  { %v8709_v50 = vmax.f32 %v4314_v1, %v4318_v55  ;;  %v4320_v56 = vmax.f32 %v4280_v29, 0.0 }
 0x5ed   :  { %v8711_v16 = vmax.f32 %v4315_v9, %v4319_v26  ;;  %v4321_v30 = vmax.f32 %v4281_v24, 0.0 }
 0x5ee   :  { %v8713_v40 = vmax.f32 %v4316_v60, %v4320_v56  ;;  %4394 = vrot.lane.b32.xlu0 %v8709_v50, %s6796_s17 }
 0x5ef   :  { %v8717_v14 = vmax.f32 %v4317_v45, %v4321_v30  ;;  %4396 = vrot.lane.b32.xlu1 %v8711_v16, %s6796_s17  ;;  %v4155_v34 = vpop.f32.mrb[36].mxu1 }
 0x5f0   :  { %v4157_v27 = vpop.f32.mrb[37].mxu1  ;;  %v4282_v46 = vadd.f32 %v8675_v25, %v4155_v34 }
 0x5f1   :  { %v4159_v41 = vpop.f32.mrb[38].mxu1  ;;  %v4283_v38 = vadd.f32 %v8679_v59, %v4157_v27 }
 0x5f2   :  { %4398 = vrot.lane.b32.xlu0 %v8713_v40, %s6796_s17  ;;  %v4161_v20 = vpop.f32.mrb[39].mxu1  ;;  %v4284_v22 = vadd.f32 %v8675_v25, %v4159_v41  ;;  %v4322_v6 = vmax.f32 %v4282_v46, 0.0 }
 0x5f3   :  { %4400 = vrot.lane.b32.xlu1 %v8717_v14, %s6796_s17  ;;  %v4285_v23 = vadd.f32 %v8679_v59, %v4161_v20  ;;  %v4323_v44 = vmax.f32 %v4283_v38, 0.0 }
 0x5f4   :  { %v4324_v31 = vmax.f32 %v4284_v22, 0.0 }
 0x5f5   :  { %v4325_v33 = vmax.f32 %v4285_v23, 0.0 }
 0x5f6   :  { %4386 = vrot.lane.b32.xlu0 %v8689_v37, %s6796_s17 }
 0x5f7   :  { %4388 = vrot.lane.b32.xlu1 %v8691_v10, %s6796_s17  ;;  %v4165_v7 = vpop.f32.mrb[40].mxu1 }
 0x5f8   :  { %v4286_v61 = vadd.f32 %v8675_v25, %v4165_v7  ;;  %v4167_v42 = vpop.f32.mrb[41].mxu1 }
 0x5f9   :  { %v4287_v17 = vadd.f32 %v8679_v59, %v4167_v42  ;;  %v4169_v15 = vpop.f32.mrb[42].mxu1 }
 0x5fa   :  { %v4326_v52 = vmax.f32 %v4286_v61, 0.0  ;;  %v4288_v11 = vadd.f32 %v8675_v25, %v4169_v15  ;;  %4390 = vrot.lane.b32.xlu0 %v8693_v5, %s6796_s17  ;;  %v4171_v51 = vpop.f32.mrb[43].mxu1 }
 0x5fb   :  { %v4327_v57 = vmax.f32 %v4287_v17, 0.0  ;;  %v4289_v39 = vadd.f32 %v8679_v59, %v4171_v51  ;;  %4392 = vrot.lane.b32.xlu1 %v8695_v28, %s6796_s17 }
 0x5fc   :  { %v8741_v4 = vmax.f32 %v4322_v6, %v4326_v52  ;;  %v4328_v19 = vmax.f32 %v4288_v11, 0.0 }
 0x5fd   :  { %v8743_v21 = vmax.f32 %v4323_v44, %v4327_v57  ;;  %v4329_v54 = vmax.f32 %v4289_v39, 0.0 }
 0x5fe   :  { %v8745_v53 = vmax.f32 %v4324_v31, %v4328_v19  ;;  %4402 = vrot.lane.b32.xlu0 %v8741_v4, %s6796_s17 }
 0x5ff   :  { %v8749_v48 = vmax.f32 %v4325_v33, %v4329_v54  ;;  %4404 = vrot.lane.b32.xlu1 %v8743_v21, %s6796_s17  ;;  %v4175_v36 = vpop.f32.mrb[44].mxu1 }
 0x600   :  { %v4177_v12 = vpop.f32.mrb[45].mxu1  ;;  %v4290_v18 = vadd.f32 %v8675_v25, %v4175_v36 }
 0x601   :  { %v4179_v32 = vpop.f32.mrb[46].mxu1  ;;  %v4291_v49 = vadd.f32 %v8679_v59, %v4177_v12 }
 0x602   :  { %4406 = vrot.lane.b32.xlu0 %v8745_v53, %s6796_s17  ;;  %v4181_v35 = vpop.f32.mrb[47].mxu1  ;;  %v4292_v0 = vadd.f32 %v8675_v25, %v4179_v32  ;;  %v4330_v58 = vmax.f32 %v4290_v18, 0.0 }
 0x603   :  { %4408 = vrot.lane.b32.xlu1 %v8749_v48, %s6796_s17  ;;  %v4293_v43 = vadd.f32 %v8679_v59, %v4181_v35  ;;  %v4331_v3 = vmax.f32 %v4291_v49, 0.0 }
 0x604   :  { %v4332_v24 = vmax.f32 %v4292_v0, 0.0 }
 0x605   :  { %v4333_v45 = vmax.f32 %v4293_v43, 0.0 }
 0x607   :  { %v4185_v47 = vpop.f32.mrb[48].mxu1 }
 0x608   :  { %v4294_v13 = vadd.f32 %v8675_v25, %v4185_v47  ;;  %v4187_v63 = vpop.f32.mrb[49].mxu1 }
 0x609   :  { %v4295_v8 = vadd.f32 %v8679_v59, %v4187_v63  ;;  %v4189_v62 = vpop.f32.mrb[50].mxu1 }
 0x60a   :  { %v4334_v1 = vmax.f32 %v4294_v13, 0.0  ;;  %v4296_v55 = vadd.f32 %v8675_v25, %v4189_v62  ;;  %v4191_v29 = vpop.f32.mrb[51].mxu1 }
 0x60b   :  { %v4335_v9 = vmax.f32 %v4295_v8, 0.0  ;;  %v4297_v26 = vadd.f32 %v8679_v59, %v4191_v29 }
 0x60c   :  { %v8765_v60 = vmax.f32 %v4330_v58, %v4334_v1  ;;  %v4336_v56 = vmax.f32 %v4296_v55, 0.0  ;;  %v6742_v55 = vld [vmem:[%s9188_s4] sm:$0xff]  }
 0x60d   :  { %v8767_v30 = vmax.f32 %v4331_v3, %v4335_v9  ;;  %v4337_v34 = vmax.f32 %v4297_v26, 0.0 }
 0x60e   :  { %v8769_v27 = vmax.f32 %v4332_v24, %v4336_v56  ;;  %4410 = vrot.lane.b32.xlu0 %v8765_v60, %s6796_s17  ;;  %v6743_v24 = vld [vmem:[%s9188_s4 + $0x8] sm:$0xff]  }
 0x60f   :  { %v8773_v41 = vmax.f32 %v4333_v45, %v4337_v34  ;;  %4412 = vrot.lane.b32.xlu1 %v8767_v30, %s6796_s17  ;;  %v4195_v20 = vpop.f32.mrb[52].mxu1 }
 0x610   :  { %v4197_v46 = vpop.f32.mrb[53].mxu1  ;;  %v4298_v22 = vadd.f32 %v8675_v25, %v4195_v20 }
 0x611   :  { %v4199_v38 = vpop.f32.mrb[54].mxu1  ;;  %v4299_v61 = vadd.f32 %v8679_v59, %v4197_v46  ;;  %v6744_v46 = vld [vmem:[%s9188_s4 + $0x10] sm:$0xff]  }
 0x612   :  { %4414 = vrot.lane.b32.xlu0 %v8769_v27, %s6796_s17  ;;  %v4201_v7 = vpop.f32.mrb[55].mxu1  ;;  %v4300_v23 = vadd.f32 %v8675_v25, %v4199_v38  ;;  %v4338_v51 = vmax.f32 %v4298_v22, 0.0 }
 0x613   :  { %4416 = vrot.lane.b32.xlu1 %v8773_v41, %s6796_s17  ;;  %v4301_v6 = vadd.f32 %v8679_v59, %v4201_v7  ;;  %v4339_v31 = vmax.f32 %v4299_v61, 0.0  ;;  %v6745_v61 = vld [vmem:[%s9188_s4 + $0x18] sm:$0xff]  }
 0x614   :  { %v4340_v54 = vmax.f32 %v4300_v23, 0.0 }
 0x615   :  { %v4341_v32 = vmax.f32 %v4301_v6, 0.0 }
 0x617   :  { %v4205_v42 = vpop.f32.mrb[56].mxu1 }
 0x618   :  { %v4302_v17 = vadd.f32 %v8675_v25, %v4205_v42  ;;  %v4207_v15 = vpop.f32.mrb[57].mxu1 }
 0x619   :  { %v4303_v52 = vadd.f32 %v8679_v59, %v4207_v15  ;;  %v4209_v11 = vpop.f32.mrb[58].mxu1  ;;  %v6748_v15 = vld [vmem:[%s9188_s4 + $0x30] sm:$0xff]  }
 0x61a   :  { %v4342_v44 = vmax.f32 %v4302_v17, 0.0  ;;  %v4304_v57 = vadd.f32 %v8675_v25, %v4209_v11  ;;  %v4211_v39 = vpop.f32.mrb[59].mxu1  ;;  %v6746_v17 = vld [vmem:[%s9188_s4 + $0x20] sm:$0xff]  }
 0x61b   :  { %v4343_v19 = vmax.f32 %v4303_v52, 0.0  ;;  %v4305_v33 = vadd.f32 %v8679_v59, %v4211_v39 }
 0x61c   :  { %v8789_v36 = vmax.f32 %v4338_v51, %v4342_v44  ;;  %v4344_v12 = vmax.f32 %v4304_v57, 0.0  ;;  %v6749_v57 = vld [vmem:[%s9188_s4 + $0x38] sm:$0xff]  }
 0x61d   :  { %v8791_v35 = vmax.f32 %v4339_v31, %v4343_v19  ;;  %v4345_v18 = vmax.f32 %v4305_v33, 0.0  ;;  %v6750_v19 = vld [vmem:[%s9188_s4 + $0x40] sm:$0xff]  }
 0x61e   :  { %v8793_v49 = vmax.f32 %v4340_v54, %v4344_v12  ;;  %4418 = vrot.lane.b32.xlu0 %v8789_v36, %s6796_s17 }
 0x61f   :  { %v8797_v47 = vmax.f32 %v4341_v32, %v4345_v18  ;;  %4420 = vrot.lane.b32.xlu1 %v8791_v35, %s6796_s17  ;;  %v6752_v32 = vld [vmem:[%s9188_s4 + $0x98] sm:$0xff]  }
 0x622   :  { %4422 = vrot.lane.b32.xlu0 %v8793_v49, %s6796_s17 }
 0x623   :  { %4424 = vrot.lane.b32.xlu1 %v8797_v47, %s6796_s17 }
 0x660   :  { %v4395_v25 = vpop.permute.xlu0 %4394 }
 0x661   :  { %v4397_v59 = vpop.permute.xlu1 %4396 }
 0x662   :  { %v4429_v0 = vsel %vm4426_vm5, %v4395_v25, %v4397_v59  ;;  %v4462_v13 = vmax.f32 %v8711_v16, %v4397_v59 }
 0x663   :  { %v4461_v63 = vmax.f32 %v8709_v50, %v4429_v0 }
 0x664   :  { %4483 = vst.msk [vmem:[%s9196_s12 + $0x28] sm:$0xff] %vm4478_vm6, %v4462_v13  ;;  %v4399_v43 = vpop.permute.xlu0 %4398 }
 0x665   :  { %4482 = vst [vmem:[%s9196_s12 + $0x20] sm:$0xff] %v4461_v63  ;;  %v4401_v8 = vpop.permute.xlu1 %4400 }
 0x666   :  { %v4430_v62 = vsel %vm4426_vm5, %v4399_v43, %v4401_v8  ;;  %v4464_v58 = vmax.f32 %v8717_v14, %v4401_v8 }
 0x667   :  { %v4463_v1 = vmax.f32 %v8713_v40, %v4430_v62  ;;  %v6754_v62 = vld [vmem:[%s9188_s4 + $0xa8] sm:$0xff]  }
 0x668   :  { %4485 = vst.msk [vmem:[%s9196_s12 + $0x38] sm:$0xff] %vm4478_vm6, %v4464_v58  ;;  %v4501_v50 = vpack.c.bf16 %v4464_v58, %v4462_v13  ;;  %v4387_v16 = vpop.permute.xlu0 %4386  ;;  %v6756_v58 = vld [vmem:[%s9188_s4 + $0xb8] sm:$0xff]  }
 0x669   :  { %4484 = vst [vmem:[%s9196_s12 + $0x30] sm:$0xff] %v4463_v1  ;;  %v4500_v29 = vpack.c.bf16 %v4463_v1, %v4461_v63  ;;  %v4389_v3 = vpop.permute.xlu1 %4388  ;;  %v6753_v63 = vld [vmem:[%s9188_s4 + $0xa0] sm:$0xff]  }
 0x66a   :  { %v4427_v14 = vsel %vm4426_vm5, %v4387_v16, %v4389_v3  ;;  %v4458_v40 = vmax.f32 %v8691_v10, %v4389_v3  ;;  %5736 = vmatprep.mubr.msk.bf16.mxu1 %vm4478_vm6, %v4501_v50  ;;  %v6757_v1 = vld [vmem:[%s9188_s4 + $0xc0] sm:$0xff]   ;;  %v6758_v50 = vld [vmem:[%s9188_s4 + $0xc8] sm:$0xff]   ;;  %v6759_v16 = vld [vmem:[%s9188_s4 + $0xd0] sm:$0xff]  }
 0x66b   :  { %v8832_v9 = vmax.f32 %v8689_v37, %v4427_v14  ;;  %4635 = vmatmul.mubr.bf16.vlgmr.msra.gmra.mrb[60].mxu1 %v4500_v29  ;;  %v6761_v14 = vld [vmem:[%s9188_s4 + $0xe0] sm:$0xff]  }
 0x66c   :  { %4479 = vst.msk [vmem:[%s9196_s12 + $0x8] sm:$0xff] %vm4478_vm6, %v4458_v40  ;;  %4701 = vmatpush1.bf16.msra.mxu1 %v6742_v55  ;;  %v4391_v26 = vpop.permute.xlu0 %4390  ;;  %v6760_v55 = vld [vmem:[%s9188_s4 + $0xd8] sm:$0xff]  }
 0x66d   :  { %4477 = vst [vmem:[%s9196_s12] sm:$0xff] %v8832_v9  ;;  %v4393_v10 = vpop.permute.xlu1 %4392  ;;  %4702 = vmatprep.subr.bf16.mxu1 %v9244_v2 }
 0x66e   :  { %v4428_v37 = vsel %vm4426_vm5, %v4391_v26, %v4393_v10  ;;  %v4460_v56 = vmax.f32 %v8695_v28, %v4393_v10  ;;  %v6764_v26 = vld [vmem:[%s9188_s4 + $0xf8] sm:$0xff]   ;;  %v6766_v10 = vld [vmem:[%s9188_s4 + $0x108] sm:$0xff]  }
 0x66f   :  { %v4459_v45 = vmax.f32 %v8693_v5, %v4428_v37  ;;  %v6767_v37 = vld [vmem:[%s9188_s4 + $0x110] sm:$0xff]  }
 0x670   :  { %4481 = vst.msk [vmem:[%s9196_s12 + $0x18] sm:$0xff] %vm4478_vm6, %v4460_v56  ;;  %v4499_v34 = vpack.c.bf16 %v4460_v56, %v4458_v40  ;;  %4703 = vmatpush1.bf16.msra.mxu1 %v6743_v24  ;;  %v4403_v20 = vpop.permute.xlu0 %4402  ;;  %v6762_v40 = vld [vmem:[%s9188_s4 + $0xe8] sm:$0xff]   ;;  %v6765_v24 = vld [vmem:[%s9188_s4 + $0x100] sm:$0xff]   ;;  %v6768_v56 = vld [vmem:[%s9188_s4 + $0x118] sm:$0xff]  }
 0x671   :  { %4480 = vst [vmem:[%s9196_s12 + $0x10] sm:$0xff] %v4459_v45  ;;  %v4405_v38 = vpop.permute.xlu1 %4404  ;;  %4704 = vmatprep.subr.bf16.mxu1 %v9244_v2  ;;  %v4498_v33 = vpack.c.bf16 %v4459_v45, %v8832_v9  ;;  %v6763_v9 = vld [vmem:[%s9188_s4 + $0xf0] sm:$0xff]   ;;  %v6769_v45 = vld [vmem:[%s9188_s4 + $0x120] sm:$0xff]  }
 0x672   :  { %v4431_v5 = vsel %vm4426_vm5, %v4403_v20, %v4405_v38  ;;  %v4466_v28 = vmax.f32 %v8743_v21, %v4405_v38  ;;  %5746 = vmatprep.mubr.msk.bf16.mxu1 %vm4478_vm6, %v4499_v34  ;;  %v6770_v20 = vld [vmem:[%s9188_s4 + $0x128] sm:$0xff]   ;;  %v6772_v38 = vld [vmem:[%s9188_s4 + $0x138] sm:$0xff]  }
 0x673   :  { %v8864_v7 = vmax.f32 %v8741_v4, %v4431_v5  ;;  %v6773_v5 = vld [vmem:[%s9188_s4 + $0x140] sm:$0xff]  }
 0x674   :  { %4487 = vst.msk [vmem:[%s9196_s12 + $0x48] sm:$0xff] %vm4478_vm6, %v4466_v28  ;;  %4705 = vmatpush1.bf16.msra.mxu1 %v6744_v46  ;;  %v4407_v22 = vpop.permute.xlu0 %4406  ;;  %v6771_v46 = vld [vmem:[%s9188_s4 + $0x130] sm:$0xff]  }
 0x675   :  { %4486 = vst [vmem:[%s9196_s12 + $0x40] sm:$0xff] %v8864_v7  ;;  %v4409_v21 = vpop.permute.xlu1 %4408  ;;  %4706 = vmatprep.subr.bf16.mxu1 %v9244_v2 }
 0x676   :  { %v4432_v4 = vsel %vm4426_vm5, %v4407_v22, %v4409_v21  ;;  %v4468_v42 = vmax.f32 %v8749_v48, %v4409_v21  ;;  %v6776_v22 = vld [vmem:[%s9188_s4 + $0x158] sm:$0xff]   ;;  %v6778_v21 = vld [vmem:[%s9190_s6] sm:$0xff]  }
 0x677   :  { %v8881_v23 = vmax.f32 %v8745_v53, %v4432_v4  ;;  %v6747_v53 = vld [vmem:[%s9188_s4 + $0x28] sm:$0xff]   ;;  %v6797_v4 = vmov 0.0  }
 0x678   :  { %4489 = vst.msk [vmem:[%s9196_s12 + $0x58] sm:$0xff] %vm4478_vm6, %v4468_v42  ;;  %4707 = vmatpush1.bf16.msra.mxu1 %v6745_v61  ;;  %v4503_v54 = vpack.c.bf16 %v4468_v42, %v4466_v28  ;;  %v6774_v28 = vld [vmem:[%s9188_s4 + $0x148] sm:$0xff]   ;;  %v6777_v61 = vld [vmem:[%s9188_s4 + $0x160] sm:$0xff]  }
 0x679   :  { %4488 = vst [vmem:[%s9196_s12 + $0x50] sm:$0xff] %v8881_v23  ;;  %4708 = vmatprep.subr.bf16.mxu1 %v9244_v2  ;;  %v4502_v29 = vpack.c.bf16 %v8881_v23, %v8864_v7  ;;  %v6775_v7 = vld [vmem:[%s9188_s4 + $0x150] sm:$0xff]   ;;  %v6779_v42 = vld [vmem:[%s9190_s6 + $0x8] sm:$0xff]   ;;  %v6781_v23 = vld [vmem:[%s9190_s6 + $0x18] sm:$0xff]  }
 0x67c   :  { %4709 = vmatpush1.bf16.msra.mxu1 %v6746_v17  ;;  %v6782_v17 = vld [vmem:[%s9190_s6 + $0x20] sm:$0xff]  }
 0x67d   :  { %4710 = vmatprep.subr.bf16.mxu1 %v9244_v2 }
 0x680   :  { %4711 = vmatpush1.bf16.msra.mxu1 %v6747_v53  ;;  %v4411_v48 = vpop.permute.xlu0 %4410 }
 0x681   :  { %v4413_v6 = vpop.permute.xlu1 %4412  ;;  %4712 = vmatprep.subr.bf16.mxu1 %v9244_v2 }
 0x682   :  { %v4433_v52 = vsel %vm4426_vm5, %v4411_v48, %v4413_v6  ;;  %v8905_v11 = vmax.f32 %v8767_v30, %v4413_v6 }
 0x683   :  { %v8908_v51 = vmax.f32 %v8765_v60, %v4433_v52  ;;  %v6783_v52 = vld [vmem:[%s9190_s6 + $0x28] sm:$0xff]  }
 0x684   :  { %4491 = vst.msk [vmem:[%s9196_s12 + $0x68] sm:$0xff] %vm4478_vm6, %v8905_v11  ;;  %4713 = vmatpush1.bf16.msra.mxu1 %v6748_v15  ;;  %v4415_v44 = vpop.permute.xlu0 %4414 }
 0x685   :  { %4490 = vst [vmem:[%s9196_s12 + $0x60] sm:$0xff] %v8908_v51  ;;  %v4417_v30 = vpop.permute.xlu1 %4416  ;;  %4714 = vmatprep.subr.bf16.mxu1 %v9244_v2 }
 0x686   :  { %v4434_v60 = vsel %vm4426_vm5, %v4415_v44, %v4417_v30  ;;  %v4472_v39 = vmax.f32 %v8773_v41, %v4417_v30 }
 0x687   :  { %v8926_v31 = vmax.f32 %v8769_v27, %v4434_v60  ;;  %v6751_v27 = vld [vmem:[%s9188_s4 + $0x90] sm:$0xff]  }
 0x688   :  { %4493 = vst.msk [vmem:[%s9196_s12 + $0x78] sm:$0xff] %vm4478_vm6, %v4472_v39  ;;  %4715 = vmatpush1.bf16.msra.mxu1 %v6749_v57  ;;  %v4505_v3 = vpack.c.bf16 %v4472_v39, %v8905_v11  ;;  %v6784_v11 = vld [vmem:[%s9190_s6 + $0x30] sm:$0xff]  }
 0x689   :  { %4492 = vst [vmem:[%s9196_s12 + $0x70] sm:$0xff] %v8926_v31  ;;  %v4504_v41 = vpack.c.bf16 %v8926_v31, %v8908_v51  ;;  %4716 = vmatprep.subr.bf16.mxu1 %v9244_v2  ;;  %v6785_v51 = vld [vmem:[%s9190_s6 + $0x38] sm:$0xff]  }
 0x68c   :  { %4717 = vmatpush1.bf16.msra.mxu1 %v6750_v19 }
 0x68d   :  { %4817 = vmatprep.subr.bf16.mxu1 %v9244_v2 }
 0x68f   :  { %4733 = vmatmul.mubr.bf16.vlgmr.msra.gmra.mrb[64].mxu1 %v4498_v33 }
 0x690   :  { %4818 = vmatpush1.bf16.msra.mxu1 %v6751_v27  ;;  %5774 = vmatprep.mubr.msk.bf16.mxu1 %vm4478_vm6, %v4503_v54  ;;  %v4419_v12 = vpop.permute.xlu0 %4418 }
 0x691   :  { %v4421_v18 = vpop.permute.xlu1 %4420  ;;  %4819 = vmatprep.subr.bf16.mxu1 %v9244_v2 }
 0x692   :  { %v4435_v25 = vsel %vm4426_vm5, %v4419_v12, %v4421_v18  ;;  %v8954_v59 = vmax.f32 %v8791_v35, %v4421_v18 }
 0x693   :  { %v8957_v0 = vmax.f32 %v8789_v36, %v4435_v25 }
 0x694   :  { %4495 = vst.msk [vmem:[%s9196_s12 + $0x88] sm:$0xff] %vm4478_vm6, %v8954_v59  ;;  %4820 = vmatpush1.bf16.msra.mxu1 %v6752_v32  ;;  %v4423_v13 = vpop.permute.xlu0 %4422 }
 0x695   :  { %4494 = vst [vmem:[%s9196_s12 + $0x80] sm:$0xff] %v8957_v0  ;;  %v4425_v35 = vpop.permute.xlu1 %4424  ;;  %4821 = vmatprep.subr.bf16.mxu1 %v9244_v2 }
 0x696   :  { %v4436_v36 = vsel %vm4426_vm5, %v4423_v13, %v4425_v35  ;;  %v4476_v43 = vmax.f32 %v8797_v47, %v4425_v35  ;;  %v5831_v35 = vld [vmem:[%s9189_s5] ss:$0 sm:$0xff] }
 0x697   :  { %v8975_v8 = vmax.f32 %v8793_v49, %v4436_v36  ;;  %v6755_v49 = vld [vmem:[%s9188_s4 + $0xb0] sm:$0xff]  }
 0x698   :  { %4497 = vst.msk [vmem:[%s9196_s12 + $0x98] sm:$0xff] %vm4478_vm6, %v4476_v43  ;;  %4822 = vmatpush1.bf16.msra.mxu1 %v6753_v63  ;;  %v4507_v34 = vpack.c.bf16 %v4476_v43, %v8954_v59 }
 0x699   :  { %4496 = vst [vmem:[%s9196_s12 + $0x90] sm:$0xff] %v8975_v8  ;;  %v4506_v47 = vpack.c.bf16 %v8975_v8, %v8957_v0  ;;  %4823 = vmatprep.subr.bf16.mxu1 %v9244_v2 }
 0x69c   :  { %4824 = vmatpush1.bf16.msra.mxu1 %v6754_v62 }
 0x69d   :  { %4825 = vmatprep.subr.bf16.mxu1 %v9244_v2 }
 0x6a0   :  { %4826 = vmatpush1.bf16.msra.mxu1 %v6755_v49 }
 0x6a1   :  { %4827 = vmatprep.subr.bf16.mxu1 %v9244_v2 }
 0x6a4   :  { %4828 = vmatpush1.bf16.msra.mxu1 %v6756_v58 }
 0x6a5   :  { %4829 = vmatprep.subr.bf16.mxu1 %v9244_v2 }
 0x6a8   :  { %4830 = vmatpush1.bf16.msra.mxu1 %v6757_v1 }
 0x6a9   :  { %4831 = vmatprep.subr.bf16.mxu1 %v9244_v2 }
 0x6ac   :  { %4832 = vmatpush1.bf16.msra.mxu1 %v6758_v50 }
 0x6ad   :  { %4833 = vmatprep.subr.bf16.mxu1 %v9244_v2 }
 0x6b0   :  { %4834 = vmatpush1.bf16.msra.mxu1 %v6759_v16  ;;  %v6786_v16 = vld [vmem:[%s9192_s8] sm:$0xff]  }
 0x6b1   :  { %4936 = vmatprep.subr.bf16.mxu1 %v9244_v2 }
 0x6b3   :  { %4850 = vmatmul.mubr.bf16.vlgmr.msra.gmra.mrb[68].mxu1 %v4502_v29  ;;  %v6787_v29 = vld [vmem:[%s9192_s8 + $0x8] sm:$0xff]  }
 0x6b4   :  { %4937 = vmatpush1.bf16.msra.mxu1 %v6760_v55  ;;  %5802 = vmatprep.mubr.msk.bf16.mxu1 %vm4478_vm6, %v4505_v3  ;;  %v6788_v3 = vld [vmem:[%s9192_s8 + $0x10] sm:$0xff]  }
 0x6b5   :  { %4938 = vmatprep.subr.bf16.mxu1 %v9244_v2 }
 0x6b8   :  { %4939 = vmatpush1.bf16.msra.mxu1 %v6761_v14  ;;  %v6789_v14 = vld [vmem:[%s9192_s8 + $0x18] sm:$0xff]  }
 0x6b9   :  { %4940 = vmatprep.subr.bf16.mxu1 %v9244_v2 }
 0x6bc   :  { %4941 = vmatpush1.bf16.msra.mxu1 %v6762_v40  ;;  %v6790_v40 = vld [vmem:[%s9192_s8 + $0x20] sm:$0xff]  }
 0x6bd   :  { %4942 = vmatprep.subr.bf16.mxu1 %v9244_v2 }
 0x6c0   :  { %4943 = vmatpush1.bf16.msra.mxu1 %v6763_v9  ;;  %v6791_v9 = vld [vmem:[%s9192_s8 + $0x28] sm:$0xff]  }
 0x6c1   :  { %4944 = vmatprep.subr.bf16.mxu1 %v9244_v2 }
 0x6c4   :  { %4945 = vmatpush1.bf16.msra.mxu1 %v6764_v26  ;;  %v6792_v26 = vld [vmem:[%s9192_s8 + $0x30] sm:$0xff]  }
 0x6c5   :  { %4946 = vmatprep.subr.bf16.mxu1 %v9244_v2 }
 0x6c8   :  { %4947 = vmatpush1.bf16.msra.mxu1 %v6765_v24  ;;  %v6793_v24 = vld [vmem:[%s9192_s8 + $0x38] sm:$0xff]  }
 0x6c9   :  { %4948 = vmatprep.subr.bf16.mxu1 %v9244_v2 }
 0x6cc   :  { %4949 = vmatpush1.bf16.msra.mxu1 %v6766_v10  ;;  %v5832_v10 = vld [vmem:[%s9191_s7] ss:$0 sm:$0xff] }
 0x6cd   :  { %4950 = vmatprep.subr.bf16.mxu1 %v9244_v2 }
 0x6d0   :  { %4951 = vmatpush1.bf16.msra.mxu1 %v6767_v37 }
 0x6d1   :  { %4952 = vmatprep.subr.bf16.mxu1 %v9244_v2 }
 0x6d4   :  { %4953 = vmatpush1.bf16.msra.mxu1 %v6768_v56 }
 0x6d5   :  { %5055 = vmatprep.subr.bf16.mxu1 %v9244_v2 }
 0x6d7   :  { %4969 = vmatmul.mubr.bf16.vlgmr.msra.gmra.mrb[72].mxu1 %v4504_v41 }
 0x6d8   :  { %5056 = vmatpush1.bf16.msra.mxu1 %v6769_v45  ;;  %5830 = vmatprep.mubr.msk.bf16.mxu1 %vm4478_vm6, %v4507_v34 }
 0x6d9   :  { %5057 = vmatprep.subr.bf16.mxu1 %v9244_v2 }
 0x6dc   :  { %5058 = vmatpush1.bf16.msra.mxu1 %v6770_v20 }
 0x6dd   :  { %5059 = vmatprep.subr.bf16.mxu1 %v9244_v2 }
 0x6e0   :  { %5060 = vmatpush1.bf16.msra.mxu1 %v6771_v46 }
 0x6e1   :  { %5061 = vmatprep.subr.bf16.mxu1 %v9244_v2 }
 0x6e4   :  { %5062 = vmatpush1.bf16.msra.mxu1 %v6772_v38 }
 0x6e5   :  { %5063 = vmatprep.subr.bf16.mxu1 %v9244_v2 }
 0x6e8   :  { %5064 = vmatpush1.bf16.msra.mxu1 %v6773_v5 }
 0x6e9   :  { %5065 = vmatprep.subr.bf16.mxu1 %v9244_v2 }
 0x6ec   :  { %5066 = vmatpush1.bf16.msra.mxu1 %v6774_v28 }
 0x6ed   :  { %5067 = vmatprep.subr.bf16.mxu1 %v9244_v2 }
 0x6f0   :  { %5068 = vmatpush1.bf16.msra.mxu1 %v6775_v7  ;;  %v5841_v7 = vld [vmem:[%s9193_s9] ss:$0 sm:$0xff] }
 0x6f1   :  { %5069 = vmatprep.subr.bf16.mxu1 %v9244_v2 }
 0x6f4   :  { %5070 = vmatpush1.bf16.msra.mxu1 %v6776_v22 }
 0x6f5   :  { %5071 = vmatprep.subr.bf16.mxu1 %v9244_v2  ;;  %v6780_v2 = vld [vmem:[%s9190_s6 + $0x10] sm:$0xff]  }
 0x6f8   :  { %5072 = vmatpush1.bf16.msra.mxu1 %v6777_v61 }
 0x6f9   :  { %5868 = vmatprep.subr.bf16.mxu1 %v6797_v4 }
 0x6fb   :  { %5088 = vmatmul.mubr.bf16.vlgmr.msra.gmra.mrb[76].mxu1 %v4506_v47 }
 0x6fc   :  { %5869 = vmatpush3.bf16.msra.mxu1 %v6778_v21  ;;  %5884 = vmatprep.mubr.msk.bf16.mxu1 %vm6798_vm7, %v6797_v4 }
 0x6fd   :  { %5870 = vmatprep.subr.bf16.mxu1 %v6797_v4 }
 0x700   :  { %5871 = vmatpush3.bf16.msra.mxu1 %v6779_v42 }
 0x701   :  { %5872 = vmatprep.subr.bf16.mxu1 %v6797_v4 }
 0x704   :  { %5873 = vmatpush3.bf16.msra.mxu1 %v6780_v2 }
 0x705   :  { %5874 = vmatprep.subr.bf16.mxu1 %v6797_v4 }
 0x708   :  { %5875 = vmatpush3.bf16.msra.mxu1 %v6781_v23 }
 0x709   :  { %5876 = vmatprep.subr.bf16.mxu1 %v6797_v4 }
 0x70c   :  { %5877 = vmatpush3.bf16.msra.mxu1 %v6782_v17 }
 0x70d   :  { %5878 = vmatprep.subr.bf16.mxu1 %v6797_v4 }
 0x710   :  { %5879 = vmatpush3.bf16.msra.mxu1 %v6783_v52 }
 0x711   :  { %5880 = vmatprep.subr.bf16.mxu1 %v6797_v4 }
 0x714   :  { %5881 = vmatpush3.bf16.msra.mxu1 %v6784_v11 }
 0x715   :  { %5882 = vmatprep.subr.bf16.mxu1 %v6797_v4 }
 0x718   :  { %5883 = vmatpush3.bf16.msra.mxu1 %v6785_v51 }
 0x719   :  { %5888 = vmatprep.subr.bf16.mxu1 %v6797_v4 }
 0x73e   :  { %v4636_v53 = vpop.f32.mrb[60].mxu1 }
 0x73f   :  { %v4638_v48 = vpop.f32.mrb[61].mxu1 }
 0x740   :  { %v4639_v15 = vpop.f32.mrb[62].mxu1 }
 0x741   :  { %v4641_v6 = vpop.f32.mrb[63].mxu1 }
 0x762   :  { %v4734_v44 = vpop.f32.mrb[64].mxu1 }
 0x763   :  { %v4735_v57 = vadd.f32 %v4734_v44, %v4636_v53  ;;  %v4736_v30 = vpop.f32.mrb[65].mxu1 }
 0x764   :  { %v4737_v60 = vpop.f32.mrb[66].mxu1 }
 0x765   :  { %v4738_v39 = vadd.f32 %v4737_v60, %v4639_v15  ;;  %v4739_v31 = vpop.f32.mrb[67].mxu1 }
 0x786   :  { %v4851_v19 = vpop.f32.mrb[68].mxu1 }
 0x787   :  { %v4858_v41 = vadd.f32 %v4851_v19, %v4735_v57  ;;  %v4853_v27 = vpop.f32.mrb[69].mxu1 }
 0x788   :  { %v4854_v33 = vpop.f32.mrb[70].mxu1 }
 0x789   :  { %v4859_v54 = vadd.f32 %v4854_v33, %v4738_v39  ;;  %v4856_v12 = vpop.f32.mrb[71].mxu1 }
 0x7aa   :  { %v4970_v32 = vpop.f32.mrb[72].mxu1 }
 0x7ab   :  { %v4977_v18 = vadd.f32 %v4970_v32, %v4858_v41  ;;  %v4972_v25 = vpop.f32.mrb[73].mxu1 }
 0x7ac   :  { %v4973_v59 = vpop.f32.mrb[74].mxu1 }
 0x7ad   :  { %v4978_v0 = vadd.f32 %v4973_v59, %v4859_v54  ;;  %v4975_v13 = vpop.f32.mrb[75].mxu1 }
 0x7ce   :  { %v5089_v63 = vpop.f32.mrb[76].mxu1 }
 0x7cf   :  { %v5096_v36 = vadd.f32 %v5089_v63, %v4977_v18  ;;  %v5091_v43 = vpop.f32.mrb[77].mxu1 }
 0x7d0   :  { %v5092_v8 = vpop.f32.mrb[78].mxu1 }
 0x7d1   :  { %v5105_v62 = vadd.f32 %v5831_v35, %v5096_v36  ;;  %v5097_v47 = vadd.f32 %v5092_v8, %v4978_v0  ;;  %v5094_v49 = vpop.f32.mrb[79].mxu1 }
 0x7d3   :  { %v5106_v58 = vadd.f32 %v5831_v35, %v5097_v47  ;;  %v5107_v1 = vmax.f32 %v5105_v62, 0.0 }
 0x7d5   :  { %v5108_v50 = vmax.f32 %v5106_v58, 0.0 }
 0x7d7   :  { %v5109_v55 = vpack.c.bf16 %v5108_v50, %v5107_v1 }
 0x7d9   :  { %5885 = vmatmul.mubr.bf16.vlgmr.msra.gmra.mrb[80].mxu1 %v5109_v55 }
 0x7da   :  { %5889 = vmatpush3.bf16.msra.mxu1 %v6786_v16  ;;  %5904 = vmatprep.mubr.msk.bf16.mxu1 %vm6798_vm7, %v6797_v4 }
 0x7db   :  { %5890 = vmatprep.subr.bf16.mxu1 %v6797_v4 }
 0x7de   :  { %5891 = vmatpush3.bf16.msra.mxu1 %v6787_v29 }
 0x7df   :  { %5892 = vmatprep.subr.bf16.mxu1 %v6797_v4 }
 0x7e2   :  { %5893 = vmatpush3.bf16.msra.mxu1 %v6788_v3 }
 0x7e3   :  { %5894 = vmatprep.subr.bf16.mxu1 %v6797_v4 }
 0x7e6   :  { %5895 = vmatpush3.bf16.msra.mxu1 %v6789_v14 }
 0x7e7   :  { %5896 = vmatprep.subr.bf16.mxu1 %v6797_v4 }
 0x7ea   :  { %5897 = vmatpush3.bf16.msra.mxu1 %v6790_v40 }
 0x7eb   :  { %5898 = vmatprep.subr.bf16.mxu1 %v6797_v4 }
 0x7ee   :  { %5899 = vmatpush3.bf16.msra.mxu1 %v6791_v9 }
 0x7ef   :  { %5900 = vmatprep.subr.bf16.mxu1 %v6797_v4 }
 0x7f2   :  { %5901 = vmatpush3.bf16.msra.mxu1 %v6792_v26 }
 0x7f3   :  { %5902 = vmatprep.subr.bf16.mxu1 %v6797_v4 }
 0x7f6   :  { %5903 = vmatpush3.bf16.msra.mxu1 %v6793_v24 }
 0x8ac   :  { %v5215_v37 = vpop.f32.mrb[80].mxu1 }
 0x8ad   :  { %v5216_v56 = vadd.f32 %v5832_v10, %v5215_v37  ;;  %v5886_v45 = vpop.f32.mrb[81].mxu1 }
 0x8ae   :  { %v5218_v34 = vpop.f32.mrb[82].mxu1 }
 0x8af   :  { %v5222_v20 = vmax.f32 %v5216_v56, 0.0  ;;  %v5219_v46 = vadd.f32 %v5832_v10, %v5218_v34  ;;  %v5887_v38 = vpop.f32.mrb[83].mxu1 }
 0x8b1   :  { %5337 = vst [vmem:[%s9197_s13] sm:$0xff] %v5222_v20  ;;  %v5223_v5 = vmax.f32 %v5219_v46, 0.0 }
 0x8b3   :  { %v5224_v28 = vpack.c.bf16 %v5223_v5, %v5222_v20  ;;  %5339 = vst [vmem:[%s9197_s13 + $0x10] sm:$0xff] %v5223_v5 }
 0x8b5   :  { %5905 = vmatmul.mubr.bf16.vlgmr.msra.gmra.mrb[84].mxu1 %v5224_v28 }
 0x988   :  { %v5330_v22 = vpop.f32.mrb[84].mxu1 }
 0x989   :  { %v5331_v61 = vadd.f32 %v5841_v7, %v5330_v22  ;;  %v5906_v21 = vpop.f32.mrb[85].mxu1 }
 0x98a   :  { %v5333_v4 = vpop.f32.mrb[86].mxu1 }
 0x98b   :  { %5338 = vst [vmem:[%s9197_s13 + $0x8] sm:$0xff] %v5331_v61  ;;  %v5334_v42 = vadd.f32 %v5841_v7, %v5333_v4  ;;  %v5907_v2 = vpop.f32.mrb[87].mxu1 }
 0x98d   :  { %5340 = vst [vmem:[%s9197_s13 + $0x18] sm:$0xff] %v5334_v42 }

</bundles_post_ra>
